<compile_context>
chip_gen: v5e
topology: v5e:2x2
jax: 0.10.0
libtpu: 0.0.40
codegen_flags: <defaults>
</compile_context>

<pallas_src>
import functools

import jax
import jax.numpy as jnp
from jax.experimental import pallas as pl
from jax.experimental.pallas import tpu as pltpu


def _sigmoid(x):
    return 1.0 / (1.0 + jnp.exp(-x))


def _round_up(x, m):
    return (x + m - 1) // m * m


def _pick_time_block(t, max_tt=8):
    """Largest divisor of t that is <= max_tt (avoids any time padding)."""
    tt = 1
    for d in range(1, min(t, max_tt) + 1):
        if t % d == 0:
            tt = d
    return tt


# ---------------- input projection: gates = X @ [Wf | Wb] + b ----------------

def _proj_kernel(x_ref, w_ref, b_ref, of_ref, ob_ref, *, gate_width):
    y = jnp.dot(x_ref[...], w_ref[...], preferred_element_type=jnp.float32)
    y = y + b_ref[...]
    of_ref[...] = y[:, :gate_width]
    ob_ref[...] = y[:, gate_width:]


def _input_projection(x2d, w, b, hidden_size):
    """x2d: (M, K) f32, w: (K, 8H) f32, b: (1, 8H) f32 -> (gxf, gxb) (M, 4H)."""
    M, K = x2d.shape
    H = hidden_size
    GW = 4 * H
    if M <= 1024:
        tm = _round_up(max(M, 8), 8)
    else:
        tm = 256
    m_pad = _round_up(M, tm)
    if m_pad != M:
        x2d = jnp.pad(x2d, ((0, m_pad - M), (0, 0)))

    kernel = functools.partial(_proj_kernel, gate_width=GW)
    gxf, gxb = pl.pallas_call(
        kernel,
        out_shape=(jax.ShapeDtypeStruct((m_pad, GW), jnp.float32),
                   jax.ShapeDtypeStruct((m_pad, GW), jnp.float32)),
        grid_spec=pltpu.PrefetchScalarGridSpec(
            num_scalar_prefetch=0,
            grid=(m_pad // tm,),
            in_specs=[
                pl.BlockSpec((tm, K), lambda i: (i, 0)),        # activations
                pl.BlockSpec((K, 2 * GW), lambda i: (0, 0)),    # fused weight
                pl.BlockSpec((1, 2 * GW), lambda i: (0, 0)),    # fused bias
            ],
            out_specs=[
                pl.BlockSpec((tm, GW), lambda i: (i, 0)),       # fwd gates
                pl.BlockSpec((tm, GW), lambda i: (i, 0)),       # bwd gates
            ],
        ),
        compiler_params=pltpu.CompilerParams(
            dimension_semantics=("parallel",)),
    )(x2d, w, b)
    if m_pad != M:
        gxf = gxf[:M]
        gxb = gxb[:M]
    return gxf, gxb


# ---------------- bidirectional recurrent scan over time ----------------

def _bilstm_scan_kernel(gxf_ref, gxb_ref, whf_ref, whb_ref,
                        hf_out_ref, hb_out_ref,
                        hf_st, cf_st, hb_st, cb_st,
                        *, hidden_size, time_block):
    H = hidden_size
    TT = time_block
    tb = pl.program_id(0)

    @pl.when(tb == 0)
    def _():
        hf_st[...] = jnp.zeros_like(hf_st)
        cf_st[...] = jnp.zeros_like(cf_st)
        hb_st[...] = jnp.zeros_like(hb_st)
        cb_st[...] = jnp.zeros_like(cb_st)

    whf = whf_ref[...]   # (H, 4H), hoisted out of the inner loop
    whb = whb_ref[...]

    def cell(gx, h_prev, c_prev, whh):
        # gx: (B, 4H) precomputed x-projection (+ both biases); whh: (H, 4H)
        gates = gx + jnp.dot(h_prev, whh, preferred_element_type=jnp.float32)
        i = _sigmoid(gates[:, 0:H])
        f = _sigmoid(gates[:, H:2 * H])
        g = jnp.tanh(gates[:, 2 * H:3 * H])
        o = _sigmoid(gates[:, 3 * H:4 * H])
        c = f * c_prev + i * g
        h = o * jnp.tanh(c)
        return h, c

    def body(kk, carry):
        hf, cf, hb, cb = carry
        # forward direction walks the block front-to-back
        hf, cf = cell(gxf_ref[kk], hf, cf, whf)
        hf_out_ref[kk] = hf
        # backward direction walks the (time-reversed) block back-to-front
        kb = TT - 1 - kk
        hb, cb = cell(gxb_ref[kb], hb, cb, whb)
        hb_out_ref[kb] = hb
        return hf, cf, hb, cb

    carry0 = (hf_st[...], cf_st[...], hb_st[...], cb_st[...])
    hf, cf, hb, cb = jax.lax.fori_loop(0, TT, body, carry0, unroll=True)
    hf_st[...] = hf
    cf_st[...] = cf
    hb_st[...] = hb
    cb_st[...] = cb


def _bilstm_scan(gxf, gxb, whf_t, whb_t, hidden_size, time_block):
    """gxf/gxb: (T, B, 4H) f32; whh*_t: (H, 4H) f32 -> (hf, hb), (T, B, H)."""
    T, B, G = gxf.shape
    H = hidden_size
    TT = time_block
    ntb = T // TT
    last = ntb - 1
    kernel = functools.partial(_bilstm_scan_kernel, hidden_size=H,
                               time_block=TT)
    hf, hb = pl.pallas_call(
        kernel,
        out_shape=(jax.ShapeDtypeStruct((T, B, H), jnp.float32),
                   jax.ShapeDtypeStruct((T, B, H), jnp.float32)),
        grid_spec=pltpu.PrefetchScalarGridSpec(
            num_scalar_prefetch=0,
            grid=(ntb,),
            in_specs=[
                pl.BlockSpec((TT, B, G), lambda t: (t, 0, 0)),         # fwd gx
                pl.BlockSpec((TT, B, G), lambda t: (last - t, 0, 0)),  # bwd gx
                pl.BlockSpec((H, G), lambda t: (0, 0)),                # W_hh fwd
                pl.BlockSpec((H, G), lambda t: (0, 0)),                # W_hh bwd
            ],
            out_specs=[
                pl.BlockSpec((TT, B, H), lambda t: (t, 0, 0)),
                pl.BlockSpec((TT, B, H), lambda t: (last - t, 0, 0)),
            ],
            scratch_shapes=[pltpu.VMEM((B, H), jnp.float32)
                            for _ in range(4)],
        ),
        compiler_params=pltpu.CompilerParams(
            dimension_semantics=("arbitrary",)),   # carried (h, c) state
    )(gxf, gxb, whf_t, whb_t)
    return hf, hb


def bilstm_forward(x, params, *, hidden_size):
    """x: (B, T, input_size).

    params: tuple over layers of
      ((w_ih_f, w_hh_f, b_ih_f, b_hh_f), (w_ih_b, w_hh_b, b_ih_b, b_hh_b))
    with PyTorch layouts: w_ih (4H, D_in), w_hh (4H, H), biases (4H,),
    gate order (i, f, g, o).  Returns (B, T, 2H).
    """
    B, T, _ = x.shape
    H = hidden_size
    tt = _pick_time_block(T)
    # Keep everything time-major across layers; transpose once in, once out.
    layer_in = x.astype(jnp.float32).transpose(1, 0, 2)        # (T, B, D)
    for (fwd, bwd) in params:
        wf_ih, wf_hh, bf_ih, bf_hh = fwd
        wb_ih, wb_hh, bb_ih, bb_hh = bwd
        d_in = layer_in.shape[-1]
        x2d = layer_in.reshape(T * B, d_in)

        # Fuse both directions' input projections into one (T*B, 8H) matmul;
        # fold the two biases together on the host.
        w_cat = jnp.concatenate(
            [wf_ih.T.astype(jnp.float32), wb_ih.T.astype(jnp.float32)], axis=1)
        b_cat = jnp.concatenate(
            [(bf_ih + bf_hh).astype(jnp.float32),
             (bb_ih + bb_hh).astype(jnp.float32)])[None, :]
        gxf2d, gxb2d = _input_projection(x2d, w_cat, b_cat, H)
        gxf = gxf2d.reshape(T, B, 4 * H)
        gxb = gxb2d.reshape(T, B, 4 * H)

        hf, hb = _bilstm_scan(gxf, gxb,
                              wf_hh.T.astype(jnp.float32),
                              wb_hh.T.astype(jnp.float32), H, tt)
        layer_in = jnp.concatenate([hf, hb], axis=-1)           # (T, B, 2H)
    return layer_in.transpose(1, 0, 2)                          # (B, T, 2H)


# ---------------- pure-JAX reference (PyTorch LSTM semantics) ----------------

def _reference_bilstm(x, params, hidden_size):
    B, T, _ = x.shape
    H = hidden_size

    def cell(x_t, h, c, w_ih, w_hh, b_ih, b_hh):
        gates = x_t @ w_ih.T + b_ih + h @ w_hh.T + b_hh
        i = _sigmoid(gates[:, 0:H])
        f = _sigmoid(gates[:, H:2 * H])
        g = jnp.tanh(gates[:, 2 * H:3 * H])
        o = _sigmoid(gates[:, 3 * H:4 * H])
        c = f * c + i * g
        h = o * jnp.tanh(c)
        return h, c

    layer_in = x.astype(jnp.float32)
    for (fwd, bwd) in params:
        outs = []
        for d, p in enumerate((fwd, bwd)):
            w_ih, w_hh, b_ih, b_hh = p
            h = jnp.zeros((B, H), jnp.float32)
            c = jnp.zeros((B, H), jnp.float32)
            hs = [None] * T
            order = range(T) if d == 0 else range(T - 1, -1, -1)
            for t in order:
                h, c = cell(layer_in[:, t], h, c, w_ih, w_hh, b_ih, b_hh)
                hs[t] = h
            outs.append(jnp.stack(hs, axis=1))   # (B, T, H)
        layer_in = jnp.concatenate(outs, axis=-1)
    return layer_in


if __name__ == "__main__":
    batch = 2
    seq = 8
    input_size = 16
    hidden_size = 32
    num_layers = 2

    key = jax.random.PRNGKey(0)
    params = []
    for layer in range(num_layers):
        d_in = input_size if layer == 0 else 2 * hidden_size
        dirs = []
        for _ in range(2):
            key, k1, k2, k3, k4 = jax.random.split(key, 5)
            w_ih = jax.random.normal(k1, (4 * hidden_size, d_in),
                                     jnp.float32) * 0.1
            w_hh = jax.random.normal(k2, (4 * hidden_size, hidden_size),
                                     jnp.float32) * 0.1
            b_ih = jax.random.normal(k3, (4 * hidden_size,), jnp.float32) * 0.1
            b_hh = jax.random.normal(k4, (4 * hidden_size,), jnp.float32) * 0.1
            dirs.append((w_ih, w_hh, b_ih, b_hh))
        params.append(tuple(dirs))
    params = tuple(params)

    key, kx = jax.random.split(key)
    x = jax.random.normal(kx, (batch, seq, input_size), jnp.float32)

    fn = jax.jit(functools.partial(bilstm_forward, hidden_size=hidden_size))
    out = fn(x, params)
    jax.block_until_ready(out)

    ref = _reference_bilstm(x, params, hidden_size)
    assert out.shape == (batch, seq, 2 * hidden_size), out.shape
    assert jnp.allclose(out, ref, atol=1e-4, rtol=1e-4), \
        float(jnp.max(jnp.abs(out - ref)))

    print("KERNEL_OK")
</pallas_src>

<mosaic_0001>
module attributes {stable_mosaic.version = 11 : i64} {
  func.func @_proj_kernel(%arg0: i32, %arg1: memref<16x16xf32, #tpu.memory_space<vmem>>, %arg2: memref<16x256xf32, #tpu.memory_space<vmem>>, %arg3: memref<1x256xf32, #tpu.memory_space<vmem>>, %arg4: memref<16x128xf32, #tpu.memory_space<vmem>>, %arg5: memref<16x128xf32, #tpu.memory_space<vmem>>) attributes {dimension_semantics = [#tpu.dimension_semantics<parallel>], iteration_bounds = array<i64: 1>, scalar_prefetch = 0 : i64, scratch_operands = 0 : i64, tpu.core_type = #tpu.core_type<tc>, window_params = [{transform_indices = @transform_0, window_bounds = array<i64: 16, 16>}, {pipeline_mode = #tpu.pipeline_mode<synchronous>, transform_indices = @transform_1, window_bounds = array<i64: 16, 256>}, {pipeline_mode = #tpu.pipeline_mode<synchronous>, transform_indices = @transform_2, window_bounds = array<i64: 1, 256>}, {transform_indices = @transform_3, window_bounds = array<i64: 16, 128>}, {transform_indices = @transform_4, window_bounds = array<i64: 16, 128>}]} {
    %c0 = arith.constant 0 : index
    %c0_0 = arith.constant 0 : index
    %0 = vector.load %arg1[%c0, %c0_0] : memref<16x16xf32, #tpu.memory_space<vmem>>, vector<16x16xf32>
    %c0_1 = arith.constant 0 : index
    %c0_2 = arith.constant 0 : index
    %1 = vector.load %arg2[%c0_1, %c0_2] : memref<16x256xf32, #tpu.memory_space<vmem>>, vector<16x256xf32>
    %cst = arith.constant dense<0.000000e+00> : vector<16x256xf32>
    %2 = tpu.matmul %0, %1, %cst {dimension_numbers = #tpu.dot_dimension_numbers<[1], [0], [0], [1], [0, 0, 1, 1], [], []>} : vector<16x16xf32>, vector<16x256xf32>, vector<16x256xf32> -> vector<16x256xf32>
    %c0_3 = arith.constant 0 : index
    %c0_4 = arith.constant 0 : index
    %3 = vector.load %arg3[%c0_3, %c0_4] : memref<1x256xf32, #tpu.memory_space<vmem>>, vector<1x256xf32>
    %4 = vector.broadcast %3 : vector<1x256xf32> to vector<16x256xf32>
    %5 = arith.addf %2, %4 : vector<16x256xf32>
    %6 = vector.extract_strided_slice %5 {offsets = [0, 0], sizes = [16, 128], strides = [1, 1]} : vector<16x256xf32> to vector<16x128xf32>
    %c0_5 = arith.constant 0 : index
    %c0_6 = arith.constant 0 : index
    %7 = vector.load %arg4[%c0_5, %c0_6] : memref<16x128xf32, #tpu.memory_space<vmem>>, vector<16x128xf32>
    tpu.vector_store %arg4[%c0_5, %c0_6], %6 {strides = array<i32>} : memref<16x128xf32, #tpu.memory_space<vmem>>, vector<16x128xf32>,
    %8 = vector.extract_strided_slice %5 {offsets = [0, 128], sizes = [16, 128], strides = [1, 1]} : vector<16x256xf32> to vector<16x128xf32>
    %c0_7 = arith.constant 0 : index
    %c0_8 = arith.constant 0 : index
    %9 = vector.load %arg5[%c0_7, %c0_8] : memref<16x128xf32, #tpu.memory_space<vmem>>, vector<16x128xf32>
    tpu.vector_store %arg5[%c0_7, %c0_8], %8 {strides = array<i32>} : memref<16x128xf32, #tpu.memory_space<vmem>>, vector<16x128xf32>,
    return
  }
  func.func @transform_0(%arg0: i32) -> (i32, i32) {
    %c0_i32 = arith.constant 0 : i32
    %c0_i32_0 = arith.constant 0 : i32
    return %arg0, %c0_i32 : i32, i32
  }
  func.func @transform_1(%arg0: i32) -> (i32, i32) {
    %c0_i32 = arith.constant 0 : i32
    %c0_i32_0 = arith.constant 0 : i32
    %c0_i32_1 = arith.constant 0 : i32
    return %c0_i32, %c0_i32_0 : i32, i32
  }
  func.func @transform_2(%arg0: i32) -> (i32, i32) {
    %c0_i32 = arith.constant 0 : i32
    %c0_i32_0 = arith.constant 0 : i32
    %c0_i32_1 = arith.constant 0 : i32
    return %c0_i32, %c0_i32_0 : i32, i32
  }
  func.func @transform_3(%arg0: i32) -> (i32, i32) {
    %c0_i32 = arith.constant 0 : i32
    %c0_i32_0 = arith.constant 0 : i32
    return %arg0, %c0_i32 : i32, i32
  }
  func.func @transform_4(%arg0: i32) -> (i32, i32) {
    %c0_i32 = arith.constant 0 : i32
    %c0_i32_0 = arith.constant 0 : i32
    return %arg0, %c0_i32 : i32, i32
  }
}

module attributes {stable_mosaic.version = 11 : i64} {
  func.func @_proj_kernel(%arg0: i32, %arg1: memref<16x64xf32, #tpu.memory_space<vmem>>, %arg2: memref<64x256xf32, #tpu.memory_space<vmem>>, %arg3: memref<1x256xf32, #tpu.memory_space<vmem>>, %arg4: memref<16x128xf32, #tpu.memory_space<vmem>>, %arg5: memref<16x128xf32, #tpu.memory_space<vmem>>) attributes {dimension_semantics = [#tpu.dimension_semantics<parallel>], iteration_bounds = array<i64: 1>, scalar_prefetch = 0 : i64, scratch_operands = 0 : i64, tpu.core_type = #tpu.core_type<tc>, window_params = [{transform_indices = @transform_0, window_bounds = array<i64: 16, 64>}, {pipeline_mode = #tpu.pipeline_mode<synchronous>, transform_indices = @transform_1, window_bounds = array<i64: 64, 256>}, {pipeline_mode = #tpu.pipeline_mode<synchronous>, transform_indices = @transform_2, window_bounds = array<i64: 1, 256>}, {transform_indices = @transform_3, window_bounds = array<i64: 16, 128>}, {transform_indices = @transform_4, window_bounds = array<i64: 16, 128>}]} {
    %c0 = arith.constant 0 : index
    %c0_0 = arith.constant 0 : index
    %0 = vector.load %arg1[%c0, %c0_0] : memref<16x64xf32, #tpu.memory_space<vmem>>, vector<16x64xf32>
    %c0_1 = arith.constant 0 : index
    %c0_2 = arith.constant 0 : index
    %1 = vector.load %arg2[%c0_1, %c0_2] : memref<64x256xf32, #tpu.memory_space<vmem>>, vector<64x256xf32>
    %cst = arith.constant dense<0.000000e+00> : vector<16x256xf32>
    %2 = tpu.matmul %0, %1, %cst {dimension_numbers = #tpu.dot_dimension_numbers<[1], [0], [0], [1], [0, 0, 1, 1], [], []>} : vector<16x64xf32>, vector<64x256xf32>, vector<16x256xf32> -> vector<16x256xf32>
    %c0_3 = arith.constant 0 : index
    %c0_4 = arith.constant 0 : index
    %3 = vector.load %arg3[%c0_3, %c0_4] : memref<1x256xf32, #tpu.memory_space<vmem>>, vector<1x256xf32>
    %4 = vector.broadcast %3 : vector<1x256xf32> to vector<16x256xf32>
    %5 = arith.addf %2, %4 : vector<16x256xf32>
    %6 = vector.extract_strided_slice %5 {offsets = [0, 0], sizes = [16, 128], strides = [1, 1]} : vector<16x256xf32> to vector<16x128xf32>
    %c0_5 = arith.constant 0 : index
    %c0_6 = arith.constant 0 : index
    %7 = vector.load %arg4[%c0_5, %c0_6] : memref<16x128xf32, #tpu.memory_space<vmem>>, vector<16x128xf32>
    tpu.vector_store %arg4[%c0_5, %c0_6], %6 {strides = array<i32>} : memref<16x128xf32, #tpu.memory_space<vmem>>, vector<16x128xf32>,
    %8 = vector.extract_strided_slice %5 {offsets = [0, 128], sizes = [16, 128], strides = [1, 1]} : vector<16x256xf32> to vector<16x128xf32>
    %c0_7 = arith.constant 0 : index
    %c0_8 = arith.constant 0 : index
    %9 = vector.load %arg5[%c0_7, %c0_8] : memref<16x128xf32, #tpu.memory_space<vmem>>, vector<16x128xf32>
    tpu.vector_store %arg5[%c0_7, %c0_8], %8 {strides = array<i32>} : memref<16x128xf32, #tpu.memory_space<vmem>>, vector<16x128xf32>,
    return
  }
  func.func @transform_0(%arg0: i32) -> (i32, i32) {
    %c0_i32 = arith.constant 0 : i32
    %c0_i32_0 = arith.constant 0 : i32
    return %arg0, %c0_i32 : i32, i32
  }
  func.func @transform_1(%arg0: i32) -> (i32, i32) {
    %c0_i32 = arith.constant 0 : i32
    %c0_i32_0 = arith.constant 0 : i32
    %c0_i32_1 = arith.constant 0 : i32
    return %c0_i32, %c0_i32_0 : i32, i32
  }
  func.func @transform_2(%arg0: i32) -> (i32, i32) {
    %c0_i32 = arith.constant 0 : i32
    %c0_i32_0 = arith.constant 0 : i32
    %c0_i32_1 = arith.constant 0 : i32
    return %c0_i32, %c0_i32_0 : i32, i32
  }
  func.func @transform_3(%arg0: i32) -> (i32, i32) {
    %c0_i32 = arith.constant 0 : i32
    %c0_i32_0 = arith.constant 0 : i32
    return %arg0, %c0_i32 : i32, i32
  }
  func.func @transform_4(%arg0: i32) -> (i32, i32) {
    %c0_i32 = arith.constant 0 : i32
    %c0_i32_0 = arith.constant 0 : i32
    return %arg0, %c0_i32 : i32, i32
  }
}

module attributes {stable_mosaic.version = 11 : i64} {
  func.func @_bilstm_scan_kernel(%arg0: i32, %arg1: memref<8x2x128xf32, #tpu.memory_space<vmem>>, %arg2: memref<8x2x128xf32, #tpu.memory_space<vmem>>, %arg3: memref<32x128xf32, #tpu.memory_space<vmem>>, %arg4: memref<32x128xf32, #tpu.memory_space<vmem>>, %arg5: memref<8x2x32xf32, #tpu.memory_space<vmem>>, %arg6: memref<8x2x32xf32, #tpu.memory_space<vmem>>, %arg7: memref<2x32xf32, #tpu.memory_space<vmem>>, %arg8: memref<2x32xf32, #tpu.memory_space<vmem>>, %arg9: memref<2x32xf32, #tpu.memory_space<vmem>>, %arg10: memref<2x32xf32, #tpu.memory_space<vmem>>) attributes {dimension_semantics = [#tpu.dimension_semantics<arbitrary>], iteration_bounds = array<i64: 1>, scalar_prefetch = 0 : i64, scratch_operands = 4 : i64, tpu.core_type = #tpu.core_type<tc>, window_params = [{transform_indices = @transform_0, window_bounds = array<i64: 8, 2, 128>}, {transform_indices = @transform_1, window_bounds = array<i64: 8, 2, 128>}, {pipeline_mode = #tpu.pipeline_mode<synchronous>, transform_indices = @transform_2, window_bounds = array<i64: 32, 128>}, {pipeline_mode = #tpu.pipeline_mode<synchronous>, transform_indices = @transform_3, window_bounds = array<i64: 32, 128>}, {transform_indices = @transform_4, window_bounds = array<i64: 8, 2, 32>}, {transform_indices = @transform_5, window_bounds = array<i64: 8, 2, 32>}]} {
    %c0_i32 = arith.constant 0 : i32
    %0 = arith.cmpi eq, %arg0, %c0_i32 : i32
    %1 = arith.extui %0 : i1 to i32
    %c0_i32_0 = arith.constant 0 : i32
    %2 = arith.cmpi ne, %1, %c0_i32_0 : i32
    scf.if %2 {
      %cst_252 = arith.constant 0.000000e+00 : f32
      %661 = vector.broadcast %cst_252 : f32 to vector<2x32xf32>
      %c0_253 = arith.constant 0 : index
      %c0_254 = arith.constant 0 : index
      %662 = vector.load %arg7[%c0_253, %c0_254] : memref<2x32xf32, #tpu.memory_space<vmem>>, vector<2x32xf32>
      tpu.vector_store %arg7[%c0_253, %c0_254], %661 {strides = array<i32>} : memref<2x32xf32, #tpu.memory_space<vmem>>, vector<2x32xf32>,
      %cst_255 = arith.constant 0.000000e+00 : f32
      %663 = vector.broadcast %cst_255 : f32 to vector<2x32xf32>
      %c0_256 = arith.constant 0 : index
      %c0_257 = arith.constant 0 : index
      %664 = vector.load %arg8[%c0_256, %c0_257] : memref<2x32xf32, #tpu.memory_space<vmem>>, vector<2x32xf32>
      tpu.vector_store %arg8[%c0_256, %c0_257], %663 {strides = array<i32>} : memref<2x32xf32, #tpu.memory_space<vmem>>, vector<2x32xf32>,
      %cst_258 = arith.constant 0.000000e+00 : f32
      %665 = vector.broadcast %cst_258 : f32 to vector<2x32xf32>
      %c0_259 = arith.constant 0 : index
      %c0_260 = arith.constant 0 : index
      %666 = vector.load %arg9[%c0_259, %c0_260] : memref<2x32xf32, #tpu.memory_space<vmem>>, vector<2x32xf32>
      tpu.vector_store %arg9[%c0_259, %c0_260], %665 {strides = array<i32>} : memref<2x32xf32, #tpu.memory_space<vmem>>, vector<2x32xf32>,
      %cst_261 = arith.constant 0.000000e+00 : f32
      %667 = vector.broadcast %cst_261 : f32 to vector<2x32xf32>
      %c0_262 = arith.constant 0 : index
      %c0_263 = arith.constant 0 : index
      %668 = vector.load %arg10[%c0_262, %c0_263] : memref<2x32xf32, #tpu.memory_space<vmem>>, vector<2x32xf32>
      tpu.vector_store %arg10[%c0_262, %c0_263], %667 {strides = array<i32>} : memref<2x32xf32, #tpu.memory_space<vmem>>, vector<2x32xf32>,
    } else {
    }
    %c0 = arith.constant 0 : index
    %c0_1 = arith.constant 0 : index
    %3 = vector.load %arg3[%c0, %c0_1] : memref<32x128xf32, #tpu.memory_space<vmem>>, vector<32x128xf32>
    %c0_2 = arith.constant 0 : index
    %c0_3 = arith.constant 0 : index
    %4 = vector.load %arg4[%c0_2, %c0_3] : memref<32x128xf32, #tpu.memory_space<vmem>>, vector<32x128xf32>
    %c0_4 = arith.constant 0 : index
    %c0_5 = arith.constant 0 : index
    %5 = vector.load %arg7[%c0_4, %c0_5] : memref<2x32xf32, #tpu.memory_space<vmem>>, vector<2x32xf32>
    %c0_6 = arith.constant 0 : index
    %c0_7 = arith.constant 0 : index
    %6 = vector.load %arg8[%c0_6, %c0_7] : memref<2x32xf32, #tpu.memory_space<vmem>>, vector<2x32xf32>
    %c0_8 = arith.constant 0 : index
    %c0_9 = arith.constant 0 : index
    %7 = vector.load %arg9[%c0_8, %c0_9] : memref<2x32xf32, #tpu.memory_space<vmem>>, vector<2x32xf32>
    %c0_10 = arith.constant 0 : index
    %c0_11 = arith.constant 0 : index
    %8 = vector.load %arg10[%c0_10, %c0_11] : memref<2x32xf32, #tpu.memory_space<vmem>>, vector<2x32xf32>
    %c0_i32_12 = arith.constant 0 : i32
    %9 = arith.index_cast %c0_i32_12 : i32 to index
    %c0_13 = arith.constant 0 : index
    %c0_14 = arith.constant 0 : index
    %10 = vector.load %arg1[%9, %c0_13, %c0_14] : memref<8x2x128xf32, #tpu.memory_space<vmem>>, vector<1x2x128xf32>
    %11 = vector.shape_cast %10 : vector<1x2x128xf32> to vector<2x128xf32>
    %cst = arith.constant dense<0.000000e+00> : vector<2x128xf32>
    %12 = tpu.matmul %5, %3, %cst {dimension_numbers = #tpu.dot_dimension_numbers<[1], [0], [0], [1], [0, 0, 1, 1], [], []>} : vector<2x32xf32>, vector<32x128xf32>, vector<2x128xf32> -> vector<2x128xf32>
    %13 = arith.addf %11, %12 : vector<2x128xf32>
    %14 = vector.extract_strided_slice %13 {offsets = [0, 0], sizes = [2, 32], strides = [1, 1]} : vector<2x128xf32> to vector<2x32xf32>
    %cst_15 = arith.constant 0.000000e+00 : f32
    %15 = vector.broadcast %cst_15 : f32 to vector<2x32xf32>
    %16 = arith.subf %15, %14 : vector<2x32xf32>
    %17 = math.exp %16 : vector<2x32xf32>
    %cst_16 = arith.constant 1.000000e+00 : f32
    %18 = vector.broadcast %cst_16 : f32 to vector<2x32xf32>
    %19 = arith.addf %18, %17 : vector<2x32xf32>
    %cst_17 = arith.constant 1.000000e+00 : f32
    %20 = vector.broadcast %cst_17 : f32 to vector<2x32xf32>
    %21 = arith.divf %20, %19 : vector<2x32xf32>
    %22 = vector.extract_strided_slice %13 {offsets = [0, 32], sizes = [2, 32], strides = [1, 1]} : vector<2x128xf32> to vector<2x32xf32>
    %cst_18 = arith.constant 0.000000e+00 : f32
    %23 = vector.broadcast %cst_18 : f32 to vector<2x32xf32>
    %24 = arith.subf %23, %22 : vector<2x32xf32>
    %25 = math.exp %24 : vector<2x32xf32>
    %cst_19 = arith.constant 1.000000e+00 : f32
    %26 = vector.broadcast %cst_19 : f32 to vector<2x32xf32>
    %27 = arith.addf %26, %25 : vector<2x32xf32>
    %cst_20 = arith.constant 1.000000e+00 : f32
    %28 = vector.broadcast %cst_20 : f32 to vector<2x32xf32>
    %29 = arith.divf %28, %27 : vector<2x32xf32>
    %30 = vector.extract_strided_slice %13 {offsets = [0, 64], sizes = [2, 32], strides = [1, 1]} : vector<2x128xf32> to vector<2x32xf32>
    %31 = math.tanh %30 : vector<2x32xf32>
    %32 = vector.extract_strided_slice %13 {offsets = [0, 96], sizes = [2, 32], strides = [1, 1]} : vector<2x128xf32> to vector<2x32xf32>
    %cst_21 = arith.constant 0.000000e+00 : f32
    %33 = vector.broadcast %cst_21 : f32 to vector<2x32xf32>
    %34 = arith.subf %33, %32 : vector<2x32xf32>
    %35 = math.exp %34 : vector<2x32xf32>
    %cst_22 = arith.constant 1.000000e+00 : f32
    %36 = vector.broadcast %cst_22 : f32 to vector<2x32xf32>
    %37 = arith.addf %36, %35 : vector<2x32xf32>
    %cst_23 = arith.constant 1.000000e+00 : f32
    %38 = vector.broadcast %cst_23 : f32 to vector<2x32xf32>
    %39 = arith.divf %38, %37 : vector<2x32xf32>
    %40 = arith.mulf %29, %6 : vector<2x32xf32>
    %41 = arith.mulf %21, %31 : vector<2x32xf32>
    %42 = arith.addf %40, %41 : vector<2x32xf32>
    %43 = math.tanh %42 : vector<2x32xf32>
    %44 = arith.mulf %39, %43 : vector<2x32xf32>
    %45 = arith.index_cast %c0_i32_12 : i32 to index
    %c0_24 = arith.constant 0 : index
    %c0_25 = arith.constant 0 : index
    %46 = vector.load %arg5[%45, %c0_24, %c0_25] : memref<8x2x32xf32, #tpu.memory_space<vmem>>, vector<1x2x32xf32>
    %47 = vector.shape_cast %46 : vector<1x2x32xf32> to vector<2x32xf32>
    %48 = vector.shape_cast %44 : vector<2x32xf32> to vector<1x2x32xf32>
    tpu.vector_store %arg5[%45, %c0_24, %c0_25], %48 {strides = array<i32>} : memref<8x2x32xf32, #tpu.memory_space<vmem>>, vector<1x2x32xf32>,
    %c7_i32 = arith.constant 7 : i32
    %49 = arith.subi %c7_i32, %c0_i32_12 : i32
    %50 = arith.index_cast %49 : i32 to index
    %c0_26 = arith.constant 0 : index
    %c0_27 = arith.constant 0 : index
    %51 = vector.load %arg2[%50, %c0_26, %c0_27] : memref<8x2x128xf32, #tpu.memory_space<vmem>>, vector<1x2x128xf32>
    %52 = vector.shape_cast %51 : vector<1x2x128xf32> to vector<2x128xf32>
    %cst_28 = arith.constant dense<0.000000e+00> : vector<2x128xf32>
    %53 = tpu.matmul %7, %4, %cst_28 {dimension_numbers = #tpu.dot_dimension_numbers<[1], [0], [0], [1], [0, 0, 1, 1], [], []>} : vector<2x32xf32>, vector<32x128xf32>, vector<2x128xf32> -> vector<2x128xf32>
    %54 = arith.addf %52, %53 : vector<2x128xf32>
    %55 = vector.extract_strided_slice %54 {offsets = [0, 0], sizes = [2, 32], strides = [1, 1]} : vector<2x128xf32> to vector<2x32xf32>
    %cst_29 = arith.constant 0.000000e+00 : f32
    %56 = vector.broadcast %cst_29 : f32 to vector<2x32xf32>
    %57 = arith.subf %56, %55 : vector<2x32xf32>
    %58 = math.exp %57 : vector<2x32xf32>
    %cst_30 = arith.constant 1.000000e+00 : f32
    %59 = vector.broadcast %cst_30 : f32 to vector<2x32xf32>
    %60 = arith.addf %59, %58 : vector<2x32xf32>
    %cst_31 = arith.constant 1.000000e+00 : f32
    %61 = vector.broadcast %cst_31 : f32 to vector<2x32xf32>
    %62 = arith.divf %61, %60 : vector<2x32xf32>
    %63 = vector.extract_strided_slice %54 {offsets = [0, 32], sizes = [2, 32], strides = [1, 1]} : vector<2x128xf32> to vector<2x32xf32>
    %cst_32 = arith.constant 0.000000e+00 : f32
    %64 = vector.broadcast %cst_32 : f32 to vector<2x32xf32>
    %65 = arith.subf %64, %63 : vector<2x32xf32>
    %66 = math.exp %65 : vector<2x32xf32>
    %cst_33 = arith.constant 1.000000e+00 : f32
    %67 = vector.broadcast %cst_33 : f32 to vector<2x32xf32>
    %68 = arith.addf %67, %66 : vector<2x32xf32>
    %cst_34 = arith.constant 1.000000e+00 : f32
    %69 = vector.broadcast %cst_34 : f32 to vector<2x32xf32>
    %70 = arith.divf %69, %68 : vector<2x32xf32>
    %71 = vector.extract_strided_slice %54 {offsets = [0, 64], sizes = [2, 32], strides = [1, 1]} : vector<2x128xf32> to vector<2x32xf32>
    %72 = math.tanh %71 : vector<2x32xf32>
    %73 = vector.extract_strided_slice %54 {offsets = [0, 96], sizes = [2, 32], strides = [1, 1]} : vector<2x128xf32> to vector<2x32xf32>
    %cst_35 = arith.constant 0.000000e+00 : f32
    %74 = vector.broadcast %cst_35 : f32 to vector<2x32xf32>
    %75 = arith.subf %74, %73 : vector<2x32xf32>
    %76 = math.exp %75 : vector<2x32xf32>
    %cst_36 = arith.constant 1.000000e+00 : f32
    %77 = vector.broadcast %cst_36 : f32 to vector<2x32xf32>
    %78 = arith.addf %77, %76 : vector<2x32xf32>
    %cst_37 = arith.constant 1.000000e+00 : f32
    %79 = vector.broadcast %cst_37 : f32 to vector<2x32xf32>
    %80 = arith.divf %79, %78 : vector<2x32xf32>
    %81 = arith.mulf %70, %8 : vector<2x32xf32>
    %82 = arith.mulf %62, %72 : vector<2x32xf32>
    %83 = arith.addf %81, %82 : vector<2x32xf32>
    %84 = math.tanh %83 : vector<2x32xf32>
    %85 = arith.mulf %80, %84 : vector<2x32xf32>
    %86 = arith.index_cast %49 : i32 to index
    %c0_38 = arith.constant 0 : index
    %c0_39 = arith.constant 0 : index
    %87 = vector.load %arg6[%86, %c0_38, %c0_39] : memref<8x2x32xf32, #tpu.memory_space<vmem>>, vector<1x2x32xf32>
    %88 = vector.shape_cast %87 : vector<1x2x32xf32> to vector<2x32xf32>
    %89 = vector.shape_cast %85 : vector<2x32xf32> to vector<1x2x32xf32>
    tpu.vector_store %arg6[%86, %c0_38, %c0_39], %89 {strides = array<i32>} : memref<8x2x32xf32, #tpu.memory_space<vmem>>, vector<1x2x32xf32>,
    %c1_i32 = arith.constant 1 : i32
    %90 = arith.index_cast %c1_i32 : i32 to index
    %c0_40 = arith.constant 0 : index
    %c0_41 = arith.constant 0 : index
    %91 = vector.load %arg1[%90, %c0_40, %c0_41] : memref<8x2x128xf32, #tpu.memory_space<vmem>>, vector<1x2x128xf32>
    %92 = vector.shape_cast %91 : vector<1x2x128xf32> to vector<2x128xf32>
    %cst_42 = arith.constant dense<0.000000e+00> : vector<2x128xf32>
    %93 = tpu.matmul %44, %3, %cst_42 {dimension_numbers = #tpu.dot_dimension_numbers<[1], [0], [0], [1], [0, 0, 1, 1], [], []>} : vector<2x32xf32>, vector<32x128xf32>, vector<2x128xf32> -> vector<2x128xf32>
    %94 = arith.addf %92, %93 : vector<2x128xf32>
    %95 = vector.extract_strided_slice %94 {offsets = [0, 0], sizes = [2, 32], strides = [1, 1]} : vector<2x128xf32> to vector<2x32xf32>
    %cst_43 = arith.constant 0.000000e+00 : f32
    %96 = vector.broadcast %cst_43 : f32 to vector<2x32xf32>
    %97 = arith.subf %96, %95 : vector<2x32xf32>
    %98 = math.exp %97 : vector<2x32xf32>
    %cst_44 = arith.constant 1.000000e+00 : f32
    %99 = vector.broadcast %cst_44 : f32 to vector<2x32xf32>
    %100 = arith.addf %99, %98 : vector<2x32xf32>
    %cst_45 = arith.constant 1.000000e+00 : f32
    %101 = vector.broadcast %cst_45 : f32 to vector<2x32xf32>
    %102 = arith.divf %101, %100 : vector<2x32xf32>
    %103 = vector.extract_strided_slice %94 {offsets = [0, 32], sizes = [2, 32], strides = [1, 1]} : vector<2x128xf32> to vector<2x32xf32>
    %cst_46 = arith.constant 0.000000e+00 : f32
    %104 = vector.broadcast %cst_46 : f32 to vector<2x32xf32>
    %105 = arith.subf %104, %103 : vector<2x32xf32>
    %106 = math.exp %105 : vector<2x32xf32>
    %cst_47 = arith.constant 1.000000e+00 : f32
    %107 = vector.broadcast %cst_47 : f32 to vector<2x32xf32>
    %108 = arith.addf %107, %106 : vector<2x32xf32>
    %cst_48 = arith.constant 1.000000e+00 : f32
    %109 = vector.broadcast %cst_48 : f32 to vector<2x32xf32>
    %110 = arith.divf %109, %108 : vector<2x32xf32>
    %111 = vector.extract_strided_slice %94 {offsets = [0, 64], sizes = [2, 32], strides = [1, 1]} : vector<2x128xf32> to vector<2x32xf32>
    %112 = math.tanh %111 : vector<2x32xf32>
    %113 = vector.extract_strided_slice %94 {offsets = [0, 96], sizes = [2, 32], strides = [1, 1]} : vector<2x128xf32> to vector<2x32xf32>
    %cst_49 = arith.constant 0.000000e+00 : f32
    %114 = vector.broadcast %cst_49 : f32 to vector<2x32xf32>
    %115 = arith.subf %114, %113 : vector<2x32xf32>
    %116 = math.exp %115 : vector<2x32xf32>
    %cst_50 = arith.constant 1.000000e+00 : f32
    %117 = vector.broadcast %cst_50 : f32 to vector<2x32xf32>
    %118 = arith.addf %117, %116 : vector<2x32xf32>
    %cst_51 = arith.constant 1.000000e+00 : f32
    %119 = vector.broadcast %cst_51 : f32 to vector<2x32xf32>
    %120 = arith.divf %119, %118 : vector<2x32xf32>
    %121 = arith.mulf %110, %42 : vector<2x32xf32>
    %122 = arith.mulf %102, %112 : vector<2x32xf32>
    %123 = arith.addf %121, %122 : vector<2x32xf32>
    %124 = math.tanh %123 : vector<2x32xf32>
    %125 = arith.mulf %120, %124 : vector<2x32xf32>
    %126 = arith.index_cast %c1_i32 : i32 to index
    %c0_52 = arith.constant 0 : index
    %c0_53 = arith.constant 0 : index
    %127 = vector.load %arg5[%126, %c0_52, %c0_53] : memref<8x2x32xf32, #tpu.memory_space<vmem>>, vector<1x2x32xf32>
    %128 = vector.shape_cast %127 : vector<1x2x32xf32> to vector<2x32xf32>
    %129 = vector.shape_cast %125 : vector<2x32xf32> to vector<1x2x32xf32>
    tpu.vector_store %arg5[%126, %c0_52, %c0_53], %129 {strides = array<i32>} : memref<8x2x32xf32, #tpu.memory_space<vmem>>, vector<1x2x32xf32>,
    %c7_i32_54 = arith.constant 7 : i32
    %130 = arith.subi %c7_i32_54, %c1_i32 : i32
    %131 = arith.index_cast %130 : i32 to index
    %c0_55 = arith.constant 0 : index
    %c0_56 = arith.constant 0 : index
    %132 = vector.load %arg2[%131, %c0_55, %c0_56] : memref<8x2x128xf32, #tpu.memory_space<vmem>>, vector<1x2x128xf32>
    %133 = vector.shape_cast %132 : vector<1x2x128xf32> to vector<2x128xf32>
    %cst_57 = arith.constant dense<0.000000e+00> : vector<2x128xf32>
    %134 = tpu.matmul %85, %4, %cst_57 {dimension_numbers = #tpu.dot_dimension_numbers<[1], [0], [0], [1], [0, 0, 1, 1], [], []>} : vector<2x32xf32>, vector<32x128xf32>, vector<2x128xf32> -> vector<2x128xf32>
    %135 = arith.addf %133, %134 : vector<2x128xf32>
    %136 = vector.extract_strided_slice %135 {offsets = [0, 0], sizes = [2, 32], strides = [1, 1]} : vector<2x128xf32> to vector<2x32xf32>
    %cst_58 = arith.constant 0.000000e+00 : f32
    %137 = vector.broadcast %cst_58 : f32 to vector<2x32xf32>
    %138 = arith.subf %137, %136 : vector<2x32xf32>
    %139 = math.exp %138 : vector<2x32xf32>
    %cst_59 = arith.constant 1.000000e+00 : f32
    %140 = vector.broadcast %cst_59 : f32 to vector<2x32xf32>
    %141 = arith.addf %140, %139 : vector<2x32xf32>
    %cst_60 = arith.constant 1.000000e+00 : f32
    %142 = vector.broadcast %cst_60 : f32 to vector<2x32xf32>
    %143 = arith.divf %142, %141 : vector<2x32xf32>
    %144 = vector.extract_strided_slice %135 {offsets = [0, 32], sizes = [2, 32], strides = [1, 1]} : vector<2x128xf32> to vector<2x32xf32>
    %cst_61 = arith.constant 0.000000e+00 : f32
    %145 = vector.broadcast %cst_61 : f32 to vector<2x32xf32>
    %146 = arith.subf %145, %144 : vector<2x32xf32>
    %147 = math.exp %146 : vector<2x32xf32>
    %cst_62 = arith.constant 1.000000e+00 : f32
    %148 = vector.broadcast %cst_62 : f32 to vector<2x32xf32>
    %149 = arith.addf %148, %147 : vector<2x32xf32>
    %cst_63 = arith.constant 1.000000e+00 : f32
    %150 = vector.broadcast %cst_63 : f32 to vector<2x32xf32>
    %151 = arith.divf %150, %149 : vector<2x32xf32>
    %152 = vector.extract_strided_slice %135 {offsets = [0, 64], sizes = [2, 32], strides = [1, 1]} : vector<2x128xf32> to vector<2x32xf32>
    %153 = math.tanh %152 : vector<2x32xf32>
    %154 = vector.extract_strided_slice %135 {offsets = [0, 96], sizes = [2, 32], strides = [1, 1]} : vector<2x128xf32> to vector<2x32xf32>
    %cst_64 = arith.constant 0.000000e+00 : f32
    %155 = vector.broadcast %cst_64 : f32 to vector<2x32xf32>
    %156 = arith.subf %155, %154 : vector<2x32xf32>
    %157 = math.exp %156 : vector<2x32xf32>
    %cst_65 = arith.constant 1.000000e+00 : f32
    %158 = vector.broadcast %cst_65 : f32 to vector<2x32xf32>
    %159 = arith.addf %158, %157 : vector<2x32xf32>
    %cst_66 = arith.constant 1.000000e+00 : f32
    %160 = vector.broadcast %cst_66 : f32 to vector<2x32xf32>
    %161 = arith.divf %160, %159 : vector<2x32xf32>
    %162 = arith.mulf %151, %83 : vector<2x32xf32>
    %163 = arith.mulf %143, %153 : vector<2x32xf32>
    %164 = arith.addf %162, %163 : vector<2x32xf32>
    %165 = math.tanh %164 : vector<2x32xf32>
    %166 = arith.mulf %161, %165 : vector<2x32xf32>
    %167 = arith.index_cast %130 : i32 to index
    %c0_67 = arith.constant 0 : index
    %c0_68 = arith.constant 0 : index
    %168 = vector.load %arg6[%167, %c0_67, %c0_68] : memref<8x2x32xf32, #tpu.memory_space<vmem>>, vector<1x2x32xf32>
    %169 = vector.shape_cast %168 : vector<1x2x32xf32> to vector<2x32xf32>
    %170 = vector.shape_cast %166 : vector<2x32xf32> to vector<1x2x32xf32>
    tpu.vector_store %arg6[%167, %c0_67, %c0_68], %170 {strides = array<i32>} : memref<8x2x32xf32, #tpu.memory_space<vmem>>, vector<1x2x32xf32>,
    %c2_i32 = arith.constant 2 : i32
    %171 = arith.index_cast %c2_i32 : i32 to index
    %c0_69 = arith.constant 0 : index
    %c0_70 = arith.constant 0 : index
    %172 = vector.load %arg1[%171, %c0_69, %c0_70] : memref<8x2x128xf32, #tpu.memory_space<vmem>>, vector<1x2x128xf32>
    %173 = vector.shape_cast %172 : vector<1x2x128xf32> to vector<2x128xf32>
    %cst_71 = arith.constant dense<0.000000e+00> : vector<2x128xf32>
    %174 = tpu.matmul %125, %3, %cst_71 {dimension_numbers = #tpu.dot_dimension_numbers<[1], [0], [0], [1], [0, 0, 1, 1], [], []>} : vector<2x32xf32>, vector<32x128xf32>, vector<2x128xf32> -> vector<2x128xf32>
    %175 = arith.addf %173, %174 : vector<2x128xf32>
    %176 = vector.extract_strided_slice %175 {offsets = [0, 0], sizes = [2, 32], strides = [1, 1]} : vector<2x128xf32> to vector<2x32xf32>
    %cst_72 = arith.constant 0.000000e+00 : f32
    %177 = vector.broadcast %cst_72 : f32 to vector<2x32xf32>
    %178 = arith.subf %177, %176 : vector<2x32xf32>
    %179 = math.exp %178 : vector<2x32xf32>
    %cst_73 = arith.constant 1.000000e+00 : f32
    %180 = vector.broadcast %cst_73 : f32 to vector<2x32xf32>
    %181 = arith.addf %180, %179 : vector<2x32xf32>
    %cst_74 = arith.constant 1.000000e+00 : f32
    %182 = vector.broadcast %cst_74 : f32 to vector<2x32xf32>
    %183 = arith.divf %182, %181 : vector<2x32xf32>
    %184 = vector.extract_strided_slice %175 {offsets = [0, 32], sizes = [2, 32], strides = [1, 1]} : vector<2x128xf32> to vector<2x32xf32>
    %cst_75 = arith.constant 0.000000e+00 : f32
    %185 = vector.broadcast %cst_75 : f32 to vector<2x32xf32>
    %186 = arith.subf %185, %184 : vector<2x32xf32>
    %187 = math.exp %186 : vector<2x32xf32>
    %cst_76 = arith.constant 1.000000e+00 : f32
    %188 = vector.broadcast %cst_76 : f32 to vector<2x32xf32>
    %189 = arith.addf %188, %187 : vector<2x32xf32>
    %cst_77 = arith.constant 1.000000e+00 : f32
    %190 = vector.broadcast %cst_77 : f32 to vector<2x32xf32>
    %191 = arith.divf %190, %189 : vector<2x32xf32>
    %192 = vector.extract_strided_slice %175 {offsets = [0, 64], sizes = [2, 32], strides = [1, 1]} : vector<2x128xf32> to vector<2x32xf32>
    %193 = math.tanh %192 : vector<2x32xf32>
    %194 = vector.extract_strided_slice %175 {offsets = [0, 96], sizes = [2, 32], strides = [1, 1]} : vector<2x128xf32> to vector<2x32xf32>
    %cst_78 = arith.constant 0.000000e+00 : f32
    %195 = vector.broadcast %cst_78 : f32 to vector<2x32xf32>
    %196 = arith.subf %195, %194 : vector<2x32xf32>
    %197 = math.exp %196 : vector<2x32xf32>
    %cst_79 = arith.constant 1.000000e+00 : f32
    %198 = vector.broadcast %cst_79 : f32 to vector<2x32xf32>
    %199 = arith.addf %198, %197 : vector<2x32xf32>
    %cst_80 = arith.constant 1.000000e+00 : f32
    %200 = vector.broadcast %cst_80 : f32 to vector<2x32xf32>
    %201 = arith.divf %200, %199 : vector<2x32xf32>
    %202 = arith.mulf %191, %123 : vector<2x32xf32>
    %203 = arith.mulf %183, %193 : vector<2x32xf32>
    %204 = arith.addf %202, %203 : vector<2x32xf32>
    %205 = math.tanh %204 : vector<2x32xf32>
    %206 = arith.mulf %201, %205 : vector<2x32xf32>
    %207 = arith.index_cast %c2_i32 : i32 to index
    %c0_81 = arith.constant 0 : index
    %c0_82 = arith.constant 0 : index
    %208 = vector.load %arg5[%207, %c0_81, %c0_82] : memref<8x2x32xf32, #tpu.memory_space<vmem>>, vector<1x2x32xf32>
    %209 = vector.shape_cast %208 : vector<1x2x32xf32> to vector<2x32xf32>
    %210 = vector.shape_cast %206 : vector<2x32xf32> to vector<1x2x32xf32>
    tpu.vector_store %arg5[%207, %c0_81, %c0_82], %210 {strides = array<i32>} : memref<8x2x32xf32, #tpu.memory_space<vmem>>, vector<1x2x32xf32>,
    %c7_i32_83 = arith.constant 7 : i32
    %211 = arith.subi %c7_i32_83, %c2_i32 : i32
    %212 = arith.index_cast %211 : i32 to index
    %c0_84 = arith.constant 0 : index
    %c0_85 = arith.constant 0 : index
    %213 = vector.load %arg2[%212, %c0_84, %c0_85] : memref<8x2x128xf32, #tpu.memory_space<vmem>>, vector<1x2x128xf32>
    %214 = vector.shape_cast %213 : vector<1x2x128xf32> to vector<2x128xf32>
    %cst_86 = arith.constant dense<0.000000e+00> : vector<2x128xf32>
    %215 = tpu.matmul %166, %4, %cst_86 {dimension_numbers = #tpu.dot_dimension_numbers<[1], [0], [0], [1], [0, 0, 1, 1], [], []>} : vector<2x32xf32>, vector<32x128xf32>, vector<2x128xf32> -> vector<2x128xf32>
    %216 = arith.addf %214, %215 : vector<2x128xf32>
    %217 = vector.extract_strided_slice %216 {offsets = [0, 0], sizes = [2, 32], strides = [1, 1]} : vector<2x128xf32> to vector<2x32xf32>
    %cst_87 = arith.constant 0.000000e+00 : f32
    %218 = vector.broadcast %cst_87 : f32 to vector<2x32xf32>
    %219 = arith.subf %218, %217 : vector<2x32xf32>
    %220 = math.exp %219 : vector<2x32xf32>
    %cst_88 = arith.constant 1.000000e+00 : f32
    %221 = vector.broadcast %cst_88 : f32 to vector<2x32xf32>
    %222 = arith.addf %221, %220 : vector<2x32xf32>
    %cst_89 = arith.constant 1.000000e+00 : f32
    %223 = vector.broadcast %cst_89 : f32 to vector<2x32xf32>
    %224 = arith.divf %223, %222 : vector<2x32xf32>
    %225 = vector.extract_strided_slice %216 {offsets = [0, 32], sizes = [2, 32], strides = [1, 1]} : vector<2x128xf32> to vector<2x32xf32>
    %cst_90 = arith.constant 0.000000e+00 : f32
    %226 = vector.broadcast %cst_90 : f32 to vector<2x32xf32>
    %227 = arith.subf %226, %225 : vector<2x32xf32>
    %228 = math.exp %227 : vector<2x32xf32>
    %cst_91 = arith.constant 1.000000e+00 : f32
    %229 = vector.broadcast %cst_91 : f32 to vector<2x32xf32>
    %230 = arith.addf %229, %228 : vector<2x32xf32>
    %cst_92 = arith.constant 1.000000e+00 : f32
    %231 = vector.broadcast %cst_92 : f32 to vector<2x32xf32>
    %232 = arith.divf %231, %230 : vector<2x32xf32>
    %233 = vector.extract_strided_slice %216 {offsets = [0, 64], sizes = [2, 32], strides = [1, 1]} : vector<2x128xf32> to vector<2x32xf32>
    %234 = math.tanh %233 : vector<2x32xf32>
    %235 = vector.extract_strided_slice %216 {offsets = [0, 96], sizes = [2, 32], strides = [1, 1]} : vector<2x128xf32> to vector<2x32xf32>
    %cst_93 = arith.constant 0.000000e+00 : f32
    %236 = vector.broadcast %cst_93 : f32 to vector<2x32xf32>
    %237 = arith.subf %236, %235 : vector<2x32xf32>
    %238 = math.exp %237 : vector<2x32xf32>
    %cst_94 = arith.constant 1.000000e+00 : f32
    %239 = vector.broadcast %cst_94 : f32 to vector<2x32xf32>
    %240 = arith.addf %239, %238 : vector<2x32xf32>
    %cst_95 = arith.constant 1.000000e+00 : f32
    %241 = vector.broadcast %cst_95 : f32 to vector<2x32xf32>
    %242 = arith.divf %241, %240 : vector<2x32xf32>
    %243 = arith.mulf %232, %164 : vector<2x32xf32>
    %244 = arith.mulf %224, %234 : vector<2x32xf32>
    %245 = arith.addf %243, %244 : vector<2x32xf32>
    %246 = math.tanh %245 : vector<2x32xf32>
    %247 = arith.mulf %242, %246 : vector<2x32xf32>
    %248 = arith.index_cast %211 : i32 to index
    %c0_96 = arith.constant 0 : index
    %c0_97 = arith.constant 0 : index
    %249 = vector.load %arg6[%248, %c0_96, %c0_97] : memref<8x2x32xf32, #tpu.memory_space<vmem>>, vector<1x2x32xf32>
    %250 = vector.shape_cast %249 : vector<1x2x32xf32> to vector<2x32xf32>
    %251 = vector.shape_cast %247 : vector<2x32xf32> to vector<1x2x32xf32>
    tpu.vector_store %arg6[%248, %c0_96, %c0_97], %251 {strides = array<i32>} : memref<8x2x32xf32, #tpu.memory_space<vmem>>, vector<1x2x32xf32>,
    %c3_i32 = arith.constant 3 : i32
    %252 = arith.index_cast %c3_i32 : i32 to index
    %c0_98 = arith.constant 0 : index
    %c0_99 = arith.constant 0 : index
    %253 = vector.load %arg1[%252, %c0_98, %c0_99] : memref<8x2x128xf32, #tpu.memory_space<vmem>>, vector<1x2x128xf32>
    %254 = vector.shape_cast %253 : vector<1x2x128xf32> to vector<2x128xf32>
    %cst_100 = arith.constant dense<0.000000e+00> : vector<2x128xf32>
    %255 = tpu.matmul %206, %3, %cst_100 {dimension_numbers = #tpu.dot_dimension_numbers<[1], [0], [0], [1], [0, 0, 1, 1], [], []>} : vector<2x32xf32>, vector<32x128xf32>, vector<2x128xf32> -> vector<2x128xf32>
    %256 = arith.addf %254, %255 : vector<2x128xf32>
    %257 = vector.extract_strided_slice %256 {offsets = [0, 0], sizes = [2, 32], strides = [1, 1]} : vector<2x128xf32> to vector<2x32xf32>
    %cst_101 = arith.constant 0.000000e+00 : f32
    %258 = vector.broadcast %cst_101 : f32 to vector<2x32xf32>
    %259 = arith.subf %258, %257 : vector<2x32xf32>
    %260 = math.exp %259 : vector<2x32xf32>
    %cst_102 = arith.constant 1.000000e+00 : f32
    %261 = vector.broadcast %cst_102 : f32 to vector<2x32xf32>
    %262 = arith.addf %261, %260 : vector<2x32xf32>
    %cst_103 = arith.constant 1.000000e+00 : f32
    %263 = vector.broadcast %cst_103 : f32 to vector<2x32xf32>
    %264 = arith.divf %263, %262 : vector<2x32xf32>
    %265 = vector.extract_strided_slice %256 {offsets = [0, 32], sizes = [2, 32], strides = [1, 1]} : vector<2x128xf32> to vector<2x32xf32>
    %cst_104 = arith.constant 0.000000e+00 : f32
    %266 = vector.broadcast %cst_104 : f32 to vector<2x32xf32>
    %267 = arith.subf %266, %265 : vector<2x32xf32>
    %268 = math.exp %267 : vector<2x32xf32>
    %cst_105 = arith.constant 1.000000e+00 : f32
    %269 = vector.broadcast %cst_105 : f32 to vector<2x32xf32>
    %270 = arith.addf %269, %268 : vector<2x32xf32>
    %cst_106 = arith.constant 1.000000e+00 : f32
    %271 = vector.broadcast %cst_106 : f32 to vector<2x32xf32>
    %272 = arith.divf %271, %270 : vector<2x32xf32>
    %273 = vector.extract_strided_slice %256 {offsets = [0, 64], sizes = [2, 32], strides = [1, 1]} : vector<2x128xf32> to vector<2x32xf32>
    %274 = math.tanh %273 : vector<2x32xf32>
    %275 = vector.extract_strided_slice %256 {offsets = [0, 96], sizes = [2, 32], strides = [1, 1]} : vector<2x128xf32> to vector<2x32xf32>
    %cst_107 = arith.constant 0.000000e+00 : f32
    %276 = vector.broadcast %cst_107 : f32 to vector<2x32xf32>
    %277 = arith.subf %276, %275 : vector<2x32xf32>
    %278 = math.exp %277 : vector<2x32xf32>
    %cst_108 = arith.constant 1.000000e+00 : f32
    %279 = vector.broadcast %cst_108 : f32 to vector<2x32xf32>
    %280 = arith.addf %279, %278 : vector<2x32xf32>
    %cst_109 = arith.constant 1.000000e+00 : f32
    %281 = vector.broadcast %cst_109 : f32 to vector<2x32xf32>
    %282 = arith.divf %281, %280 : vector<2x32xf32>
    %283 = arith.mulf %272, %204 : vector<2x32xf32>
    %284 = arith.mulf %264, %274 : vector<2x32xf32>
    %285 = arith.addf %283, %284 : vector<2x32xf32>
    %286 = math.tanh %285 : vector<2x32xf32>
    %287 = arith.mulf %282, %286 : vector<2x32xf32>
    %288 = arith.index_cast %c3_i32 : i32 to index
    %c0_110 = arith.constant 0 : index
    %c0_111 = arith.constant 0 : index
    %289 = vector.load %arg5[%288, %c0_110, %c0_111] : memref<8x2x32xf32, #tpu.memory_space<vmem>>, vector<1x2x32xf32>
    %290 = vector.shape_cast %289 : vector<1x2x32xf32> to vector<2x32xf32>
    %291 = vector.shape_cast %287 : vector<2x32xf32> to vector<1x2x32xf32>
    tpu.vector_store %arg5[%288, %c0_110, %c0_111], %291 {strides = array<i32>} : memref<8x2x32xf32, #tpu.memory_space<vmem>>, vector<1x2x32xf32>,
    %c7_i32_112 = arith.constant 7 : i32
    %292 = arith.subi %c7_i32_112, %c3_i32 : i32
    %293 = arith.index_cast %292 : i32 to index
    %c0_113 = arith.constant 0 : index
    %c0_114 = arith.constant 0 : index
    %294 = vector.load %arg2[%293, %c0_113, %c0_114] : memref<8x2x128xf32, #tpu.memory_space<vmem>>, vector<1x2x128xf32>
    %295 = vector.shape_cast %294 : vector<1x2x128xf32> to vector<2x128xf32>
    %cst_115 = arith.constant dense<0.000000e+00> : vector<2x128xf32>
    %296 = tpu.matmul %247, %4, %cst_115 {dimension_numbers = #tpu.dot_dimension_numbers<[1], [0], [0], [1], [0, 0, 1, 1], [], []>} : vector<2x32xf32>, vector<32x128xf32>, vector<2x128xf32> -> vector<2x128xf32>
    %297 = arith.addf %295, %296 : vector<2x128xf32>
    %298 = vector.extract_strided_slice %297 {offsets = [0, 0], sizes = [2, 32], strides = [1, 1]} : vector<2x128xf32> to vector<2x32xf32>
    %cst_116 = arith.constant 0.000000e+00 : f32
    %299 = vector.broadcast %cst_116 : f32 to vector<2x32xf32>
    %300 = arith.subf %299, %298 : vector<2x32xf32>
    %301 = math.exp %300 : vector<2x32xf32>
    %cst_117 = arith.constant 1.000000e+00 : f32
    %302 = vector.broadcast %cst_117 : f32 to vector<2x32xf32>
    %303 = arith.addf %302, %301 : vector<2x32xf32>
    %cst_118 = arith.constant 1.000000e+00 : f32
    %304 = vector.broadcast %cst_118 : f32 to vector<2x32xf32>
    %305 = arith.divf %304, %303 : vector<2x32xf32>
    %306 = vector.extract_strided_slice %297 {offsets = [0, 32], sizes = [2, 32], strides = [1, 1]} : vector<2x128xf32> to vector<2x32xf32>
    %cst_119 = arith.constant 0.000000e+00 : f32
    %307 = vector.broadcast %cst_119 : f32 to vector<2x32xf32>
    %308 = arith.subf %307, %306 : vector<2x32xf32>
    %309 = math.exp %308 : vector<2x32xf32>
    %cst_120 = arith.constant 1.000000e+00 : f32
    %310 = vector.broadcast %cst_120 : f32 to vector<2x32xf32>
    %311 = arith.addf %310, %309 : vector<2x32xf32>
    %cst_121 = arith.constant 1.000000e+00 : f32
    %312 = vector.broadcast %cst_121 : f32 to vector<2x32xf32>
    %313 = arith.divf %312, %311 : vector<2x32xf32>
    %314 = vector.extract_strided_slice %297 {offsets = [0, 64], sizes = [2, 32], strides = [1, 1]} : vector<2x128xf32> to vector<2x32xf32>
    %315 = math.tanh %314 : vector<2x32xf32>
    %316 = vector.extract_strided_slice %297 {offsets = [0, 96], sizes = [2, 32], strides = [1, 1]} : vector<2x128xf32> to vector<2x32xf32>
    %cst_122 = arith.constant 0.000000e+00 : f32
    %317 = vector.broadcast %cst_122 : f32 to vector<2x32xf32>
    %318 = arith.subf %317, %316 : vector<2x32xf32>
    %319 = math.exp %318 : vector<2x32xf32>
    %cst_123 = arith.constant 1.000000e+00 : f32
    %320 = vector.broadcast %cst_123 : f32 to vector<2x32xf32>
    %321 = arith.addf %320, %319 : vector<2x32xf32>
    %cst_124 = arith.constant 1.000000e+00 : f32
    %322 = vector.broadcast %cst_124 : f32 to vector<2x32xf32>
    %323 = arith.divf %322, %321 : vector<2x32xf32>
    %324 = arith.mulf %313, %245 : vector<2x32xf32>
    %325 = arith.mulf %305, %315 : vector<2x32xf32>
    %326 = arith.addf %324, %325 : vector<2x32xf32>
    %327 = math.tanh %326 : vector<2x32xf32>
    %328 = arith.mulf %323, %327 : vector<2x32xf32>
    %329 = arith.index_cast %292 : i32 to index
    %c0_125 = arith.constant 0 : index
    %c0_126 = arith.constant 0 : index
    %330 = vector.load %arg6[%329, %c0_125, %c0_126] : memref<8x2x32xf32, #tpu.memory_space<vmem>>, vector<1x2x32xf32>
    %331 = vector.shape_cast %330 : vector<1x2x32xf32> to vector<2x32xf32>
    %332 = vector.shape_cast %328 : vector<2x32xf32> to vector<1x2x32xf32>
    tpu.vector_store %arg6[%329, %c0_125, %c0_126], %332 {strides = array<i32>} : memref<8x2x32xf32, #tpu.memory_space<vmem>>, vector<1x2x32xf32>,
    %c4_i32 = arith.constant 4 : i32
    %333 = arith.index_cast %c4_i32 : i32 to index
    %c0_127 = arith.constant 0 : index
    %c0_128 = arith.constant 0 : index
    %334 = vector.load %arg1[%333, %c0_127, %c0_128] : memref<8x2x128xf32, #tpu.memory_space<vmem>>, vector<1x2x128xf32>
    %335 = vector.shape_cast %334 : vector<1x2x128xf32> to vector<2x128xf32>
    %cst_129 = arith.constant dense<0.000000e+00> : vector<2x128xf32>
    %336 = tpu.matmul %287, %3, %cst_129 {dimension_numbers = #tpu.dot_dimension_numbers<[1], [0], [0], [1], [0, 0, 1, 1], [], []>} : vector<2x32xf32>, vector<32x128xf32>, vector<2x128xf32> -> vector<2x128xf32>
    %337 = arith.addf %335, %336 : vector<2x128xf32>
    %338 = vector.extract_strided_slice %337 {offsets = [0, 0], sizes = [2, 32], strides = [1, 1]} : vector<2x128xf32> to vector<2x32xf32>
    %cst_130 = arith.constant 0.000000e+00 : f32
    %339 = vector.broadcast %cst_130 : f32 to vector<2x32xf32>
    %340 = arith.subf %339, %338 : vector<2x32xf32>
    %341 = math.exp %340 : vector<2x32xf32>
    %cst_131 = arith.constant 1.000000e+00 : f32
    %342 = vector.broadcast %cst_131 : f32 to vector<2x32xf32>
    %343 = arith.addf %342, %341 : vector<2x32xf32>
    %cst_132 = arith.constant 1.000000e+00 : f32
    %344 = vector.broadcast %cst_132 : f32 to vector<2x32xf32>
    %345 = arith.divf %344, %343 : vector<2x32xf32>
    %346 = vector.extract_strided_slice %337 {offsets = [0, 32], sizes = [2, 32], strides = [1, 1]} : vector<2x128xf32> to vector<2x32xf32>
    %cst_133 = arith.constant 0.000000e+00 : f32
    %347 = vector.broadcast %cst_133 : f32 to vector<2x32xf32>
    %348 = arith.subf %347, %346 : vector<2x32xf32>
    %349 = math.exp %348 : vector<2x32xf32>
    %cst_134 = arith.constant 1.000000e+00 : f32
    %350 = vector.broadcast %cst_134 : f32 to vector<2x32xf32>
    %351 = arith.addf %350, %349 : vector<2x32xf32>
    %cst_135 = arith.constant 1.000000e+00 : f32
    %352 = vector.broadcast %cst_135 : f32 to vector<2x32xf32>
    %353 = arith.divf %352, %351 : vector<2x32xf32>
    %354 = vector.extract_strided_slice %337 {offsets = [0, 64], sizes = [2, 32], strides = [1, 1]} : vector<2x128xf32> to vector<2x32xf32>
    %355 = math.tanh %354 : vector<2x32xf32>
    %356 = vector.extract_strided_slice %337 {offsets = [0, 96], sizes = [2, 32], strides = [1, 1]} : vector<2x128xf32> to vector<2x32xf32>
    %cst_136 = arith.constant 0.000000e+00 : f32
    %357 = vector.broadcast %cst_136 : f32 to vector<2x32xf32>
    %358 = arith.subf %357, %356 : vector<2x32xf32>
    %359 = math.exp %358 : vector<2x32xf32>
    %cst_137 = arith.constant 1.000000e+00 : f32
    %360 = vector.broadcast %cst_137 : f32 to vector<2x32xf32>
    %361 = arith.addf %360, %359 : vector<2x32xf32>
    %cst_138 = arith.constant 1.000000e+00 : f32
    %362 = vector.broadcast %cst_138 : f32 to vector<2x32xf32>
    %363 = arith.divf %362, %361 : vector<2x32xf32>
    %364 = arith.mulf %353, %285 : vector<2x32xf32>
    %365 = arith.mulf %345, %355 : vector<2x32xf32>
    %366 = arith.addf %364, %365 : vector<2x32xf32>
    %367 = math.tanh %366 : vector<2x32xf32>
    %368 = arith.mulf %363, %367 : vector<2x32xf32>
    %369 = arith.index_cast %c4_i32 : i32 to index
    %c0_139 = arith.constant 0 : index
    %c0_140 = arith.constant 0 : index
    %370 = vector.load %arg5[%369, %c0_139, %c0_140] : memref<8x2x32xf32, #tpu.memory_space<vmem>>, vector<1x2x32xf32>
    %371 = vector.shape_cast %370 : vector<1x2x32xf32> to vector<2x32xf32>
    %372 = vector.shape_cast %368 : vector<2x32xf32> to vector<1x2x32xf32>
    tpu.vector_store %arg5[%369, %c0_139, %c0_140], %372 {strides = array<i32>} : memref<8x2x32xf32, #tpu.memory_space<vmem>>, vector<1x2x32xf32>,
    %c7_i32_141 = arith.constant 7 : i32
    %373 = arith.subi %c7_i32_141, %c4_i32 : i32
    %374 = arith.index_cast %373 : i32 to index
    %c0_142 = arith.constant 0 : index
    %c0_143 = arith.constant 0 : index
    %375 = vector.load %arg2[%374, %c0_142, %c0_143] : memref<8x2x128xf32, #tpu.memory_space<vmem>>, vector<1x2x128xf32>
    %376 = vector.shape_cast %375 : vector<1x2x128xf32> to vector<2x128xf32>
    %cst_144 = arith.constant dense<0.000000e+00> : vector<2x128xf32>
    %377 = tpu.matmul %328, %4, %cst_144 {dimension_numbers = #tpu.dot_dimension_numbers<[1], [0], [0], [1], [0, 0, 1, 1], [], []>} : vector<2x32xf32>, vector<32x128xf32>, vector<2x128xf32> -> vector<2x128xf32>
    %378 = arith.addf %376, %377 : vector<2x128xf32>
    %379 = vector.extract_strided_slice %378 {offsets = [0, 0], sizes = [2, 32], strides = [1, 1]} : vector<2x128xf32> to vector<2x32xf32>
    %cst_145 = arith.constant 0.000000e+00 : f32
    %380 = vector.broadcast %cst_145 : f32 to vector<2x32xf32>
    %381 = arith.subf %380, %379 : vector<2x32xf32>
    %382 = math.exp %381 : vector<2x32xf32>
    %cst_146 = arith.constant 1.000000e+00 : f32
    %383 = vector.broadcast %cst_146 : f32 to vector<2x32xf32>
    %384 = arith.addf %383, %382 : vector<2x32xf32>
    %cst_147 = arith.constant 1.000000e+00 : f32
    %385 = vector.broadcast %cst_147 : f32 to vector<2x32xf32>
    %386 = arith.divf %385, %384 : vector<2x32xf32>
    %387 = vector.extract_strided_slice %378 {offsets = [0, 32], sizes = [2, 32], strides = [1, 1]} : vector<2x128xf32> to vector<2x32xf32>
    %cst_148 = arith.constant 0.000000e+00 : f32
    %388 = vector.broadcast %cst_148 : f32 to vector<2x32xf32>
    %389 = arith.subf %388, %387 : vector<2x32xf32>
    %390 = math.exp %389 : vector<2x32xf32>
    %cst_149 = arith.constant 1.000000e+00 : f32
    %391 = vector.broadcast %cst_149 : f32 to vector<2x32xf32>
    %392 = arith.addf %391, %390 : vector<2x32xf32>
    %cst_150 = arith.constant 1.000000e+00 : f32
    %393 = vector.broadcast %cst_150 : f32 to vector<2x32xf32>
    %394 = arith.divf %393, %392 : vector<2x32xf32>
    %395 = vector.extract_strided_slice %378 {offsets = [0, 64], sizes = [2, 32], strides = [1, 1]} : vector<2x128xf32> to vector<2x32xf32>
    %396 = math.tanh %395 : vector<2x32xf32>
    %397 = vector.extract_strided_slice %378 {offsets = [0, 96], sizes = [2, 32], strides = [1, 1]} : vector<2x128xf32> to vector<2x32xf32>
    %cst_151 = arith.constant 0.000000e+00 : f32
    %398 = vector.broadcast %cst_151 : f32 to vector<2x32xf32>
    %399 = arith.subf %398, %397 : vector<2x32xf32>
    %400 = math.exp %399 : vector<2x32xf32>
    %cst_152 = arith.constant 1.000000e+00 : f32
    %401 = vector.broadcast %cst_152 : f32 to vector<2x32xf32>
    %402 = arith.addf %401, %400 : vector<2x32xf32>
    %cst_153 = arith.constant 1.000000e+00 : f32
    %403 = vector.broadcast %cst_153 : f32 to vector<2x32xf32>
    %404 = arith.divf %403, %402 : vector<2x32xf32>
    %405 = arith.mulf %394, %326 : vector<2x32xf32>
    %406 = arith.mulf %386, %396 : vector<2x32xf32>
    %407 = arith.addf %405, %406 : vector<2x32xf32>
    %408 = math.tanh %407 : vector<2x32xf32>
    %409 = arith.mulf %404, %408 : vector<2x32xf32>
    %410 = arith.index_cast %373 : i32 to index
    %c0_154 = arith.constant 0 : index
    %c0_155 = arith.constant 0 : index
    %411 = vector.load %arg6[%410, %c0_154, %c0_155] : memref<8x2x32xf32, #tpu.memory_space<vmem>>, vector<1x2x32xf32>
    %412 = vector.shape_cast %411 : vector<1x2x32xf32> to vector<2x32xf32>
    %413 = vector.shape_cast %409 : vector<2x32xf32> to vector<1x2x32xf32>
    tpu.vector_store %arg6[%410, %c0_154, %c0_155], %413 {strides = array<i32>} : memref<8x2x32xf32, #tpu.memory_space<vmem>>, vector<1x2x32xf32>,
    %c5_i32 = arith.constant 5 : i32
    %414 = arith.index_cast %c5_i32 : i32 to index
    %c0_156 = arith.constant 0 : index
    %c0_157 = arith.constant 0 : index
    %415 = vector.load %arg1[%414, %c0_156, %c0_157] : memref<8x2x128xf32, #tpu.memory_space<vmem>>, vector<1x2x128xf32>
    %416 = vector.shape_cast %415 : vector<1x2x128xf32> to vector<2x128xf32>
    %cst_158 = arith.constant dense<0.000000e+00> : vector<2x128xf32>
    %417 = tpu.matmul %368, %3, %cst_158 {dimension_numbers = #tpu.dot_dimension_numbers<[1], [0], [0], [1], [0, 0, 1, 1], [], []>} : vector<2x32xf32>, vector<32x128xf32>, vector<2x128xf32> -> vector<2x128xf32>
    %418 = arith.addf %416, %417 : vector<2x128xf32>
    %419 = vector.extract_strided_slice %418 {offsets = [0, 0], sizes = [2, 32], strides = [1, 1]} : vector<2x128xf32> to vector<2x32xf32>
    %cst_159 = arith.constant 0.000000e+00 : f32
    %420 = vector.broadcast %cst_159 : f32 to vector<2x32xf32>
    %421 = arith.subf %420, %419 : vector<2x32xf32>
    %422 = math.exp %421 : vector<2x32xf32>
    %cst_160 = arith.constant 1.000000e+00 : f32
    %423 = vector.broadcast %cst_160 : f32 to vector<2x32xf32>
    %424 = arith.addf %423, %422 : vector<2x32xf32>
    %cst_161 = arith.constant 1.000000e+00 : f32
    %425 = vector.broadcast %cst_161 : f32 to vector<2x32xf32>
    %426 = arith.divf %425, %424 : vector<2x32xf32>
    %427 = vector.extract_strided_slice %418 {offsets = [0, 32], sizes = [2, 32], strides = [1, 1]} : vector<2x128xf32> to vector<2x32xf32>
    %cst_162 = arith.constant 0.000000e+00 : f32
    %428 = vector.broadcast %cst_162 : f32 to vector<2x32xf32>
    %429 = arith.subf %428, %427 : vector<2x32xf32>
    %430 = math.exp %429 : vector<2x32xf32>
    %cst_163 = arith.constant 1.000000e+00 : f32
    %431 = vector.broadcast %cst_163 : f32 to vector<2x32xf32>
    %432 = arith.addf %431, %430 : vector<2x32xf32>
    %cst_164 = arith.constant 1.000000e+00 : f32
    %433 = vector.broadcast %cst_164 : f32 to vector<2x32xf32>
    %434 = arith.divf %433, %432 : vector<2x32xf32>
    %435 = vector.extract_strided_slice %418 {offsets = [0, 64], sizes = [2, 32], strides = [1, 1]} : vector<2x128xf32> to vector<2x32xf32>
    %436 = math.tanh %435 : vector<2x32xf32>
    %437 = vector.extract_strided_slice %418 {offsets = [0, 96], sizes = [2, 32], strides = [1, 1]} : vector<2x128xf32> to vector<2x32xf32>
    %cst_165 = arith.constant 0.000000e+00 : f32
    %438 = vector.broadcast %cst_165 : f32 to vector<2x32xf32>
    %439 = arith.subf %438, %437 : vector<2x32xf32>
    %440 = math.exp %439 : vector<2x32xf32>
    %cst_166 = arith.constant 1.000000e+00 : f32
    %441 = vector.broadcast %cst_166 : f32 to vector<2x32xf32>
    %442 = arith.addf %441, %440 : vector<2x32xf32>
    %cst_167 = arith.constant 1.000000e+00 : f32
    %443 = vector.broadcast %cst_167 : f32 to vector<2x32xf32>
    %444 = arith.divf %443, %442 : vector<2x32xf32>
    %445 = arith.mulf %434, %366 : vector<2x32xf32>
    %446 = arith.mulf %426, %436 : vector<2x32xf32>
    %447 = arith.addf %445, %446 : vector<2x32xf32>
    %448 = math.tanh %447 : vector<2x32xf32>
    %449 = arith.mulf %444, %448 : vector<2x32xf32>
    %450 = arith.index_cast %c5_i32 : i32 to index
    %c0_168 = arith.constant 0 : index
    %c0_169 = arith.constant 0 : index
    %451 = vector.load %arg5[%450, %c0_168, %c0_169] : memref<8x2x32xf32, #tpu.memory_space<vmem>>, vector<1x2x32xf32>
    %452 = vector.shape_cast %451 : vector<1x2x32xf32> to vector<2x32xf32>
    %453 = vector.shape_cast %449 : vector<2x32xf32> to vector<1x2x32xf32>
    tpu.vector_store %arg5[%450, %c0_168, %c0_169], %453 {strides = array<i32>} : memref<8x2x32xf32, #tpu.memory_space<vmem>>, vector<1x2x32xf32>,
    %c7_i32_170 = arith.constant 7 : i32
    %454 = arith.subi %c7_i32_170, %c5_i32 : i32
    %455 = arith.index_cast %454 : i32 to index
    %c0_171 = arith.constant 0 : index
    %c0_172 = arith.constant 0 : index
    %456 = vector.load %arg2[%455, %c0_171, %c0_172] : memref<8x2x128xf32, #tpu.memory_space<vmem>>, vector<1x2x128xf32>
    %457 = vector.shape_cast %456 : vector<1x2x128xf32> to vector<2x128xf32>
    %cst_173 = arith.constant dense<0.000000e+00> : vector<2x128xf32>
    %458 = tpu.matmul %409, %4, %cst_173 {dimension_numbers = #tpu.dot_dimension_numbers<[1], [0], [0], [1], [0, 0, 1, 1], [], []>} : vector<2x32xf32>, vector<32x128xf32>, vector<2x128xf32> -> vector<2x128xf32>
    %459 = arith.addf %457, %458 : vector<2x128xf32>
    %460 = vector.extract_strided_slice %459 {offsets = [0, 0], sizes = [2, 32], strides = [1, 1]} : vector<2x128xf32> to vector<2x32xf32>
    %cst_174 = arith.constant 0.000000e+00 : f32
    %461 = vector.broadcast %cst_174 : f32 to vector<2x32xf32>
    %462 = arith.subf %461, %460 : vector<2x32xf32>
    %463 = math.exp %462 : vector<2x32xf32>
    %cst_175 = arith.constant 1.000000e+00 : f32
    %464 = vector.broadcast %cst_175 : f32 to vector<2x32xf32>
    %465 = arith.addf %464, %463 : vector<2x32xf32>
    %cst_176 = arith.constant 1.000000e+00 : f32
    %466 = vector.broadcast %cst_176 : f32 to vector<2x32xf32>
    %467 = arith.divf %466, %465 : vector<2x32xf32>
    %468 = vector.extract_strided_slice %459 {offsets = [0, 32], sizes = [2, 32], strides = [1, 1]} : vector<2x128xf32> to vector<2x32xf32>
    %cst_177 = arith.constant 0.000000e+00 : f32
    %469 = vector.broadcast %cst_177 : f32 to vector<2x32xf32>
    %470 = arith.subf %469, %468 : vector<2x32xf32>
    %471 = math.exp %470 : vector<2x32xf32>
    %cst_178 = arith.constant 1.000000e+00 : f32
    %472 = vector.broadcast %cst_178 : f32 to vector<2x32xf32>
    %473 = arith.addf %472, %471 : vector<2x32xf32>
    %cst_179 = arith.constant 1.000000e+00 : f32
    %474 = vector.broadcast %cst_179 : f32 to vector<2x32xf32>
    %475 = arith.divf %474, %473 : vector<2x32xf32>
    %476 = vector.extract_strided_slice %459 {offsets = [0, 64], sizes = [2, 32], strides = [1, 1]} : vector<2x128xf32> to vector<2x32xf32>
    %477 = math.tanh %476 : vector<2x32xf32>
    %478 = vector.extract_strided_slice %459 {offsets = [0, 96], sizes = [2, 32], strides = [1, 1]} : vector<2x128xf32> to vector<2x32xf32>
    %cst_180 = arith.constant 0.000000e+00 : f32
    %479 = vector.broadcast %cst_180 : f32 to vector<2x32xf32>
    %480 = arith.subf %479, %478 : vector<2x32xf32>
    %481 = math.exp %480 : vector<2x32xf32>
    %cst_181 = arith.constant 1.000000e+00 : f32
    %482 = vector.broadcast %cst_181 : f32 to vector<2x32xf32>
    %483 = arith.addf %482, %481 : vector<2x32xf32>
    %cst_182 = arith.constant 1.000000e+00 : f32
    %484 = vector.broadcast %cst_182 : f32 to vector<2x32xf32>
    %485 = arith.divf %484, %483 : vector<2x32xf32>
    %486 = arith.mulf %475, %407 : vector<2x32xf32>
    %487 = arith.mulf %467, %477 : vector<2x32xf32>
    %488 = arith.addf %486, %487 : vector<2x32xf32>
    %489 = math.tanh %488 : vector<2x32xf32>
    %490 = arith.mulf %485, %489 : vector<2x32xf32>
    %491 = arith.index_cast %454 : i32 to index
    %c0_183 = arith.constant 0 : index
    %c0_184 = arith.constant 0 : index
    %492 = vector.load %arg6[%491, %c0_183, %c0_184] : memref<8x2x32xf32, #tpu.memory_space<vmem>>, vector<1x2x32xf32>
    %493 = vector.shape_cast %492 : vector<1x2x32xf32> to vector<2x32xf32>
    %494 = vector.shape_cast %490 : vector<2x32xf32> to vector<1x2x32xf32>
    tpu.vector_store %arg6[%491, %c0_183, %c0_184], %494 {strides = array<i32>} : memref<8x2x32xf32, #tpu.memory_space<vmem>>, vector<1x2x32xf32>,
    %c6_i32 = arith.constant 6 : i32
    %495 = arith.index_cast %c6_i32 : i32 to index
    %c0_185 = arith.constant 0 : index
    %c0_186 = arith.constant 0 : index
    %496 = vector.load %arg1[%495, %c0_185, %c0_186] : memref<8x2x128xf32, #tpu.memory_space<vmem>>, vector<1x2x128xf32>
    %497 = vector.shape_cast %496 : vector<1x2x128xf32> to vector<2x128xf32>
    %cst_187 = arith.constant dense<0.000000e+00> : vector<2x128xf32>
    %498 = tpu.matmul %449, %3, %cst_187 {dimension_numbers = #tpu.dot_dimension_numbers<[1], [0], [0], [1], [0, 0, 1, 1], [], []>} : vector<2x32xf32>, vector<32x128xf32>, vector<2x128xf32> -> vector<2x128xf32>
    %499 = arith.addf %497, %498 : vector<2x128xf32>
    %500 = vector.extract_strided_slice %499 {offsets = [0, 0], sizes = [2, 32], strides = [1, 1]} : vector<2x128xf32> to vector<2x32xf32>
    %cst_188 = arith.constant 0.000000e+00 : f32
    %501 = vector.broadcast %cst_188 : f32 to vector<2x32xf32>
    %502 = arith.subf %501, %500 : vector<2x32xf32>
    %503 = math.exp %502 : vector<2x32xf32>
    %cst_189 = arith.constant 1.000000e+00 : f32
    %504 = vector.broadcast %cst_189 : f32 to vector<2x32xf32>
    %505 = arith.addf %504, %503 : vector<2x32xf32>
    %cst_190 = arith.constant 1.000000e+00 : f32
    %506 = vector.broadcast %cst_190 : f32 to vector<2x32xf32>
    %507 = arith.divf %506, %505 : vector<2x32xf32>
    %508 = vector.extract_strided_slice %499 {offsets = [0, 32], sizes = [2, 32], strides = [1, 1]} : vector<2x128xf32> to vector<2x32xf32>
    %cst_191 = arith.constant 0.000000e+00 : f32
    %509 = vector.broadcast %cst_191 : f32 to vector<2x32xf32>
    %510 = arith.subf %509, %508 : vector<2x32xf32>
    %511 = math.exp %510 : vector<2x32xf32>
    %cst_192 = arith.constant 1.000000e+00 : f32
    %512 = vector.broadcast %cst_192 : f32 to vector<2x32xf32>
    %513 = arith.addf %512, %511 : vector<2x32xf32>
    %cst_193 = arith.constant 1.000000e+00 : f32
    %514 = vector.broadcast %cst_193 : f32 to vector<2x32xf32>
    %515 = arith.divf %514, %513 : vector<2x32xf32>
    %516 = vector.extract_strided_slice %499 {offsets = [0, 64], sizes = [2, 32], strides = [1, 1]} : vector<2x128xf32> to vector<2x32xf32>
    %517 = math.tanh %516 : vector<2x32xf32>
    %518 = vector.extract_strided_slice %499 {offsets = [0, 96], sizes = [2, 32], strides = [1, 1]} : vector<2x128xf32> to vector<2x32xf32>
    %cst_194 = arith.constant 0.000000e+00 : f32
    %519 = vector.broadcast %cst_194 : f32 to vector<2x32xf32>
    %520 = arith.subf %519, %518 : vector<2x32xf32>
    %521 = math.exp %520 : vector<2x32xf32>
    %cst_195 = arith.constant 1.000000e+00 : f32
    %522 = vector.broadcast %cst_195 : f32 to vector<2x32xf32>
    %523 = arith.addf %522, %521 : vector<2x32xf32>
    %cst_196 = arith.constant 1.000000e+00 : f32
    %524 = vector.broadcast %cst_196 : f32 to vector<2x32xf32>
    %525 = arith.divf %524, %523 : vector<2x32xf32>
    %526 = arith.mulf %515, %447 : vector<2x32xf32>
    %527 = arith.mulf %507, %517 : vector<2x32xf32>
    %528 = arith.addf %526, %527 : vector<2x32xf32>
    %529 = math.tanh %528 : vector<2x32xf32>
    %530 = arith.mulf %525, %529 : vector<2x32xf32>
    %531 = arith.index_cast %c6_i32 : i32 to index
    %c0_197 = arith.constant 0 : index
    %c0_198 = arith.constant 0 : index
    %532 = vector.load %arg5[%531, %c0_197, %c0_198] : memref<8x2x32xf32, #tpu.memory_space<vmem>>, vector<1x2x32xf32>
    %533 = vector.shape_cast %532 : vector<1x2x32xf32> to vector<2x32xf32>
    %534 = vector.shape_cast %530 : vector<2x32xf32> to vector<1x2x32xf32>
    tpu.vector_store %arg5[%531, %c0_197, %c0_198], %534 {strides = array<i32>} : memref<8x2x32xf32, #tpu.memory_space<vmem>>, vector<1x2x32xf32>,
    %c7_i32_199 = arith.constant 7 : i32
    %535 = arith.subi %c7_i32_199, %c6_i32 : i32
    %536 = arith.index_cast %535 : i32 to index
    %c0_200 = arith.constant 0 : index
    %c0_201 = arith.constant 0 : index
    %537 = vector.load %arg2[%536, %c0_200, %c0_201] : memref<8x2x128xf32, #tpu.memory_space<vmem>>, vector<1x2x128xf32>
    %538 = vector.shape_cast %537 : vector<1x2x128xf32> to vector<2x128xf32>
    %cst_202 = arith.constant dense<0.000000e+00> : vector<2x128xf32>
    %539 = tpu.matmul %490, %4, %cst_202 {dimension_numbers = #tpu.dot_dimension_numbers<[1], [0], [0], [1], [0, 0, 1, 1], [], []>} : vector<2x32xf32>, vector<32x128xf32>, vector<2x128xf32> -> vector<2x128xf32>
    %540 = arith.addf %538, %539 : vector<2x128xf32>
    %541 = vector.extract_strided_slice %540 {offsets = [0, 0], sizes = [2, 32], strides = [1, 1]} : vector<2x128xf32> to vector<2x32xf32>
    %cst_203 = arith.constant 0.000000e+00 : f32
    %542 = vector.broadcast %cst_203 : f32 to vector<2x32xf32>
    %543 = arith.subf %542, %541 : vector<2x32xf32>
    %544 = math.exp %543 : vector<2x32xf32>
    %cst_204 = arith.constant 1.000000e+00 : f32
    %545 = vector.broadcast %cst_204 : f32 to vector<2x32xf32>
    %546 = arith.addf %545, %544 : vector<2x32xf32>
    %cst_205 = arith.constant 1.000000e+00 : f32
    %547 = vector.broadcast %cst_205 : f32 to vector<2x32xf32>
    %548 = arith.divf %547, %546 : vector<2x32xf32>
    %549 = vector.extract_strided_slice %540 {offsets = [0, 32], sizes = [2, 32], strides = [1, 1]} : vector<2x128xf32> to vector<2x32xf32>
    %cst_206 = arith.constant 0.000000e+00 : f32
    %550 = vector.broadcast %cst_206 : f32 to vector<2x32xf32>
    %551 = arith.subf %550, %549 : vector<2x32xf32>
    %552 = math.exp %551 : vector<2x32xf32>
    %cst_207 = arith.constant 1.000000e+00 : f32
    %553 = vector.broadcast %cst_207 : f32 to vector<2x32xf32>
    %554 = arith.addf %553, %552 : vector<2x32xf32>
    %cst_208 = arith.constant 1.000000e+00 : f32
    %555 = vector.broadcast %cst_208 : f32 to vector<2x32xf32>
    %556 = arith.divf %555, %554 : vector<2x32xf32>
    %557 = vector.extract_strided_slice %540 {offsets = [0, 64], sizes = [2, 32], strides = [1, 1]} : vector<2x128xf32> to vector<2x32xf32>
    %558 = math.tanh %557 : vector<2x32xf32>
    %559 = vector.extract_strided_slice %540 {offsets = [0, 96], sizes = [2, 32], strides = [1, 1]} : vector<2x128xf32> to vector<2x32xf32>
    %cst_209 = arith.constant 0.000000e+00 : f32
    %560 = vector.broadcast %cst_209 : f32 to vector<2x32xf32>
    %561 = arith.subf %560, %559 : vector<2x32xf32>
    %562 = math.exp %561 : vector<2x32xf32>
    %cst_210 = arith.constant 1.000000e+00 : f32
    %563 = vector.broadcast %cst_210 : f32 to vector<2x32xf32>
    %564 = arith.addf %563, %562 : vector<2x32xf32>
    %cst_211 = arith.constant 1.000000e+00 : f32
    %565 = vector.broadcast %cst_211 : f32 to vector<2x32xf32>
    %566 = arith.divf %565, %564 : vector<2x32xf32>
    %567 = arith.mulf %556, %488 : vector<2x32xf32>
    %568 = arith.mulf %548, %558 : vector<2x32xf32>
    %569 = arith.addf %567, %568 : vector<2x32xf32>
    %570 = math.tanh %569 : vector<2x32xf32>
    %571 = arith.mulf %566, %570 : vector<2x32xf32>
    %572 = arith.index_cast %535 : i32 to index
    %c0_212 = arith.constant 0 : index
    %c0_213 = arith.constant 0 : index
    %573 = vector.load %arg6[%572, %c0_212, %c0_213] : memref<8x2x32xf32, #tpu.memory_space<vmem>>, vector<1x2x32xf32>
    %574 = vector.shape_cast %573 : vector<1x2x32xf32> to vector<2x32xf32>
    %575 = vector.shape_cast %571 : vector<2x32xf32> to vector<1x2x32xf32>
    tpu.vector_store %arg6[%572, %c0_212, %c0_213], %575 {strides = array<i32>} : memref<8x2x32xf32, #tpu.memory_space<vmem>>, vector<1x2x32xf32>,
    %c7_i32_214 = arith.constant 7 : i32
    %576 = arith.index_cast %c7_i32_214 : i32 to index
    %c0_215 = arith.constant 0 : index
    %c0_216 = arith.constant 0 : index
    %577 = vector.load %arg1[%576, %c0_215, %c0_216] : memref<8x2x128xf32, #tpu.memory_space<vmem>>, vector<1x2x128xf32>
    %578 = vector.shape_cast %577 : vector<1x2x128xf32> to vector<2x128xf32>
    %cst_217 = arith.constant dense<0.000000e+00> : vector<2x128xf32>
    %579 = tpu.matmul %530, %3, %cst_217 {dimension_numbers = #tpu.dot_dimension_numbers<[1], [0], [0], [1], [0, 0, 1, 1], [], []>} : vector<2x32xf32>, vector<32x128xf32>, vector<2x128xf32> -> vector<2x128xf32>
    %580 = arith.addf %578, %579 : vector<2x128xf32>
    %581 = vector.extract_strided_slice %580 {offsets = [0, 0], sizes = [2, 32], strides = [1, 1]} : vector<2x128xf32> to vector<2x32xf32>
    %cst_218 = arith.constant 0.000000e+00 : f32
    %582 = vector.broadcast %cst_218 : f32 to vector<2x32xf32>
    %583 = arith.subf %582, %581 : vector<2x32xf32>
    %584 = math.exp %583 : vector<2x32xf32>
    %cst_219 = arith.constant 1.000000e+00 : f32
    %585 = vector.broadcast %cst_219 : f32 to vector<2x32xf32>
    %586 = arith.addf %585, %584 : vector<2x32xf32>
    %cst_220 = arith.constant 1.000000e+00 : f32
    %587 = vector.broadcast %cst_220 : f32 to vector<2x32xf32>
    %588 = arith.divf %587, %586 : vector<2x32xf32>
    %589 = vector.extract_strided_slice %580 {offsets = [0, 32], sizes = [2, 32], strides = [1, 1]} : vector<2x128xf32> to vector<2x32xf32>
    %cst_221 = arith.constant 0.000000e+00 : f32
    %590 = vector.broadcast %cst_221 : f32 to vector<2x32xf32>
    %591 = arith.subf %590, %589 : vector<2x32xf32>
    %592 = math.exp %591 : vector<2x32xf32>
    %cst_222 = arith.constant 1.000000e+00 : f32
    %593 = vector.broadcast %cst_222 : f32 to vector<2x32xf32>
    %594 = arith.addf %593, %592 : vector<2x32xf32>
    %cst_223 = arith.constant 1.000000e+00 : f32
    %595 = vector.broadcast %cst_223 : f32 to vector<2x32xf32>
    %596 = arith.divf %595, %594 : vector<2x32xf32>
    %597 = vector.extract_strided_slice %580 {offsets = [0, 64], sizes = [2, 32], strides = [1, 1]} : vector<2x128xf32> to vector<2x32xf32>
    %598 = math.tanh %597 : vector<2x32xf32>
    %599 = vector.extract_strided_slice %580 {offsets = [0, 96], sizes = [2, 32], strides = [1, 1]} : vector<2x128xf32> to vector<2x32xf32>
    %cst_224 = arith.constant 0.000000e+00 : f32
    %600 = vector.broadcast %cst_224 : f32 to vector<2x32xf32>
    %601 = arith.subf %600, %599 : vector<2x32xf32>
    %602 = math.exp %601 : vector<2x32xf32>
    %cst_225 = arith.constant 1.000000e+00 : f32
    %603 = vector.broadcast %cst_225 : f32 to vector<2x32xf32>
    %604 = arith.addf %603, %602 : vector<2x32xf32>
    %cst_226 = arith.constant 1.000000e+00 : f32
    %605 = vector.broadcast %cst_226 : f32 to vector<2x32xf32>
    %606 = arith.divf %605, %604 : vector<2x32xf32>
    %607 = arith.mulf %596, %528 : vector<2x32xf32>
    %608 = arith.mulf %588, %598 : vector<2x32xf32>
    %609 = arith.addf %607, %608 : vector<2x32xf32>
    %610 = math.tanh %609 : vector<2x32xf32>
    %611 = arith.mulf %606, %610 : vector<2x32xf32>
    %612 = arith.index_cast %c7_i32_214 : i32 to index
    %c0_227 = arith.constant 0 : index
    %c0_228 = arith.constant 0 : index
    %613 = vector.load %arg5[%612, %c0_227, %c0_228] : memref<8x2x32xf32, #tpu.memory_space<vmem>>, vector<1x2x32xf32>
    %614 = vector.shape_cast %613 : vector<1x2x32xf32> to vector<2x32xf32>
    %615 = vector.shape_cast %611 : vector<2x32xf32> to vector<1x2x32xf32>
    tpu.vector_store %arg5[%612, %c0_227, %c0_228], %615 {strides = array<i32>} : memref<8x2x32xf32, #tpu.memory_space<vmem>>, vector<1x2x32xf32>,
    %c7_i32_229 = arith.constant 7 : i32
    %616 = arith.subi %c7_i32_229, %c7_i32_214 : i32
    %617 = arith.index_cast %616 : i32 to index
    %c0_230 = arith.constant 0 : index
    %c0_231 = arith.constant 0 : index
    %618 = vector.load %arg2[%617, %c0_230, %c0_231] : memref<8x2x128xf32, #tpu.memory_space<vmem>>, vector<1x2x128xf32>
    %619 = vector.shape_cast %618 : vector<1x2x128xf32> to vector<2x128xf32>
    %cst_232 = arith.constant dense<0.000000e+00> : vector<2x128xf32>
    %620 = tpu.matmul %571, %4, %cst_232 {dimension_numbers = #tpu.dot_dimension_numbers<[1], [0], [0], [1], [0, 0, 1, 1], [], []>} : vector<2x32xf32>, vector<32x128xf32>, vector<2x128xf32> -> vector<2x128xf32>
    %621 = arith.addf %619, %620 : vector<2x128xf32>
    %622 = vector.extract_strided_slice %621 {offsets = [0, 0], sizes = [2, 32], strides = [1, 1]} : vector<2x128xf32> to vector<2x32xf32>
    %cst_233 = arith.constant 0.000000e+00 : f32
    %623 = vector.broadcast %cst_233 : f32 to vector<2x32xf32>
    %624 = arith.subf %623, %622 : vector<2x32xf32>
    %625 = math.exp %624 : vector<2x32xf32>
    %cst_234 = arith.constant 1.000000e+00 : f32
    %626 = vector.broadcast %cst_234 : f32 to vector<2x32xf32>
    %627 = arith.addf %626, %625 : vector<2x32xf32>
    %cst_235 = arith.constant 1.000000e+00 : f32
    %628 = vector.broadcast %cst_235 : f32 to vector<2x32xf32>
    %629 = arith.divf %628, %627 : vector<2x32xf32>
    %630 = vector.extract_strided_slice %621 {offsets = [0, 32], sizes = [2, 32], strides = [1, 1]} : vector<2x128xf32> to vector<2x32xf32>
    %cst_236 = arith.constant 0.000000e+00 : f32
    %631 = vector.broadcast %cst_236 : f32 to vector<2x32xf32>
    %632 = arith.subf %631, %630 : vector<2x32xf32>
    %633 = math.exp %632 : vector<2x32xf32>
    %cst_237 = arith.constant 1.000000e+00 : f32
    %634 = vector.broadcast %cst_237 : f32 to vector<2x32xf32>
    %635 = arith.addf %634, %633 : vector<2x32xf32>
    %cst_238 = arith.constant 1.000000e+00 : f32
    %636 = vector.broadcast %cst_238 : f32 to vector<2x32xf32>
    %637 = arith.divf %636, %635 : vector<2x32xf32>
    %638 = vector.extract_strided_slice %621 {offsets = [0, 64], sizes = [2, 32], strides = [1, 1]} : vector<2x128xf32> to vector<2x32xf32>
    %639 = math.tanh %638 : vector<2x32xf32>
    %640 = vector.extract_strided_slice %621 {offsets = [0, 96], sizes = [2, 32], strides = [1, 1]} : vector<2x128xf32> to vector<2x32xf32>
    %cst_239 = arith.constant 0.000000e+00 : f32
    %641 = vector.broadcast %cst_239 : f32 to vector<2x32xf32>
    %642 = arith.subf %641, %640 : vector<2x32xf32>
    %643 = math.exp %642 : vector<2x32xf32>
    %cst_240 = arith.constant 1.000000e+00 : f32
    %644 = vector.broadcast %cst_240 : f32 to vector<2x32xf32>
    %645 = arith.addf %644, %643 : vector<2x32xf32>
    %cst_241 = arith.constant 1.000000e+00 : f32
    %646 = vector.broadcast %cst_241 : f32 to vector<2x32xf32>
    %647 = arith.divf %646, %645 : vector<2x32xf32>
    %648 = arith.mulf %637, %569 : vector<2x32xf32>
    %649 = arith.mulf %629, %639 : vector<2x32xf32>
    %650 = arith.addf %648, %649 : vector<2x32xf32>
    %651 = math.tanh %650 : vector<2x32xf32>
    %652 = arith.mulf %647, %651 : vector<2x32xf32>
    %653 = arith.index_cast %616 : i32 to index
    %c0_242 = arith.constant 0 : index
    %c0_243 = arith.constant 0 : index
    %654 = vector.load %arg6[%653, %c0_242, %c0_243] : memref<8x2x32xf32, #tpu.memory_space<vmem>>, vector<1x2x32xf32>
    %655 = vector.shape_cast %654 : vector<1x2x32xf32> to vector<2x32xf32>
    %656 = vector.shape_cast %652 : vector<2x32xf32> to vector<1x2x32xf32>
    tpu.vector_store %arg6[%653, %c0_242, %c0_243], %656 {strides = array<i32>} : memref<8x2x32xf32, #tpu.memory_space<vmem>>, vector<1x2x32xf32>,
    %c8_i32 = arith.constant 8 : i32
    %c0_244 = arith.constant 0 : index
    %c0_245 = arith.constant 0 : index
    %657 = vector.load %arg7[%c0_244, %c0_245] : memref<2x32xf32, #tpu.memory_space<vmem>>, vector<2x32xf32>
    tpu.vector_store %arg7[%c0_244, %c0_245], %611 {strides = array<i32>} : memref<2x32xf32, #tpu.memory_space<vmem>>, vector<2x32xf32>,
    %c0_246 = arith.constant 0 : index
    %c0_247 = arith.constant 0 : index
    %658 = vector.load %arg8[%c0_246, %c0_247] : memref<2x32xf32, #tpu.memory_space<vmem>>, vector<2x32xf32>
    tpu.vector_store %arg8[%c0_246, %c0_247], %609 {strides = array<i32>} : memref<2x32xf32, #tpu.memory_space<vmem>>, vector<2x32xf32>,
    %c0_248 = arith.constant 0 : index
    %c0_249 = arith.constant 0 : index
    %659 = vector.load %arg9[%c0_248, %c0_249] : memref<2x32xf32, #tpu.memory_space<vmem>>, vector<2x32xf32>
    tpu.vector_store %arg9[%c0_248, %c0_249], %652 {strides = array<i32>} : memref<2x32xf32, #tpu.memory_space<vmem>>, vector<2x32xf32>,
    %c0_250 = arith.constant 0 : index
    %c0_251 = arith.constant 0 : index
    %660 = vector.load %arg10[%c0_250, %c0_251] : memref<2x32xf32, #tpu.memory_space<vmem>>, vector<2x32xf32>
    tpu.vector_store %arg10[%c0_250, %c0_251], %650 {strides = array<i32>} : memref<2x32xf32, #tpu.memory_space<vmem>>, vector<2x32xf32>,
    return
  }
  func.func @transform_0(%arg0: i32) -> (i32, i32, i32) {
    %c0_i32 = arith.constant 0 : i32
    %c0_i32_0 = arith.constant 0 : i32
    %c0_i32_1 = arith.constant 0 : i32
    return %arg0, %c0_i32, %c0_i32_0 : i32, i32, i32
  }
  func.func @transform_1(%arg0: i32) -> (i32, i32, i32) {
    %c0_i32 = arith.constant 0 : i32
    %0 = arith.subi %c0_i32, %arg0 : i32
    %c0_i32_0 = arith.constant 0 : i32
    %c0_i32_1 = arith.constant 0 : i32
    %c0_i32_2 = arith.constant 0 : i32
    return %0, %c0_i32_0, %c0_i32_1 : i32, i32, i32
  }
  func.func @transform_2(%arg0: i32) -> (i32, i32) {
    %c0_i32 = arith.constant 0 : i32
    %c0_i32_0 = arith.constant 0 : i32
    %c0_i32_1 = arith.constant 0 : i32
    return %c0_i32, %c0_i32_0 : i32, i32
  }
  func.func @transform_3(%arg0: i32) -> (i32, i32) {
    %c0_i32 = arith.constant 0 : i32
    %c0_i32_0 = arith.constant 0 : i32
    %c0_i32_1 = arith.constant 0 : i32
    return %c0_i32, %c0_i32_0 : i32, i32
  }
  func.func @transform_4(%arg0: i32) -> (i32, i32, i32) {
    %c0_i32 = arith.constant 0 : i32
    %c0_i32_0 = arith.constant 0 : i32
    %c0_i32_1 = arith.constant 0 : i32
    return %arg0, %c0_i32, %c0_i32_0 : i32, i32, i32
  }
  func.func @transform_5(%arg0: i32) -> (i32, i32, i32) {
    %c0_i32 = arith.constant 0 : i32
    %0 = arith.subi %c0_i32, %arg0 : i32
    %c0_i32_0 = arith.constant 0 : i32
    %c0_i32_1 = arith.constant 0 : i32
    %c0_i32_2 = arith.constant 0 : i32
    return %0, %c0_i32_0, %c0_i32_1 : i32, i32, i32
  }
}

module attributes {stable_mosaic.version = 11 : i64} {
  func.func @_bilstm_scan_kernel(%arg0: i32, %arg1: memref<8x2x128xf32, #tpu.memory_space<vmem>>, %arg2: memref<8x2x128xf32, #tpu.memory_space<vmem>>, %arg3: memref<32x128xf32, #tpu.memory_space<vmem>>, %arg4: memref<32x128xf32, #tpu.memory_space<vmem>>, %arg5: memref<8x2x32xf32, #tpu.memory_space<vmem>>, %arg6: memref<8x2x32xf32, #tpu.memory_space<vmem>>, %arg7: memref<2x32xf32, #tpu.memory_space<vmem>>, %arg8: memref<2x32xf32, #tpu.memory_space<vmem>>, %arg9: memref<2x32xf32, #tpu.memory_space<vmem>>, %arg10: memref<2x32xf32, #tpu.memory_space<vmem>>) attributes {dimension_semantics = [#tpu.dimension_semantics<arbitrary>], iteration_bounds = array<i64: 1>, scalar_prefetch = 0 : i64, scratch_operands = 4 : i64, tpu.core_type = #tpu.core_type<tc>, window_params = [{transform_indices = @transform_0, window_bounds = array<i64: 8, 2, 128>}, {transform_indices = @transform_1, window_bounds = array<i64: 8, 2, 128>}, {pipeline_mode = #tpu.pipeline_mode<synchronous>, transform_indices = @transform_2, window_bounds = array<i64: 32, 128>}, {pipeline_mode = #tpu.pipeline_mode<synchronous>, transform_indices = @transform_3, window_bounds = array<i64: 32, 128>}, {transform_indices = @transform_4, window_bounds = array<i64: 8, 2, 32>}, {transform_indices = @transform_5, window_bounds = array<i64: 8, 2, 32>}]} {
    %c0_i32 = arith.constant 0 : i32
    %0 = arith.cmpi eq, %arg0, %c0_i32 : i32
    %1 = arith.extui %0 : i1 to i32
    %c0_i32_0 = arith.constant 0 : i32
    %2 = arith.cmpi ne, %1, %c0_i32_0 : i32
    scf.if %2 {
      %cst_252 = arith.constant 0.000000e+00 : f32
      %661 = vector.broadcast %cst_252 : f32 to vector<2x32xf32>
      %c0_253 = arith.constant 0 : index
      %c0_254 = arith.constant 0 : index
      %662 = vector.load %arg7[%c0_253, %c0_254] : memref<2x32xf32, #tpu.memory_space<vmem>>, vector<2x32xf32>
      tpu.vector_store %arg7[%c0_253, %c0_254], %661 {strides = array<i32>} : memref<2x32xf32, #tpu.memory_space<vmem>>, vector<2x32xf32>,
      %cst_255 = arith.constant 0.000000e+00 : f32
      %663 = vector.broadcast %cst_255 : f32 to vector<2x32xf32>
      %c0_256 = arith.constant 0 : index
      %c0_257 = arith.constant 0 : index
      %664 = vector.load %arg8[%c0_256, %c0_257] : memref<2x32xf32, #tpu.memory_space<vmem>>, vector<2x32xf32>
      tpu.vector_store %arg8[%c0_256, %c0_257], %663 {strides = array<i32>} : memref<2x32xf32, #tpu.memory_space<vmem>>, vector<2x32xf32>,
      %cst_258 = arith.constant 0.000000e+00 : f32
      %665 = vector.broadcast %cst_258 : f32 to vector<2x32xf32>
      %c0_259 = arith.constant 0 : index
      %c0_260 = arith.constant 0 : index
      %666 = vector.load %arg9[%c0_259, %c0_260] : memref<2x32xf32, #tpu.memory_space<vmem>>, vector<2x32xf32>
      tpu.vector_store %arg9[%c0_259, %c0_260], %665 {strides = array<i32>} : memref<2x32xf32, #tpu.memory_space<vmem>>, vector<2x32xf32>,
      %cst_261 = arith.constant 0.000000e+00 : f32
      %667 = vector.broadcast %cst_261 : f32 to vector<2x32xf32>
      %c0_262 = arith.constant 0 : index
      %c0_263 = arith.constant 0 : index
      %668 = vector.load %arg10[%c0_262, %c0_263] : memref<2x32xf32, #tpu.memory_space<vmem>>, vector<2x32xf32>
      tpu.vector_store %arg10[%c0_262, %c0_263], %667 {strides = array<i32>} : memref<2x32xf32, #tpu.memory_space<vmem>>, vector<2x32xf32>,
    } else {
    }
    %c0 = arith.constant 0 : index
    %c0_1 = arith.constant 0 : index
    %3 = vector.load %arg3[%c0, %c0_1] : memref<32x128xf32, #tpu.memory_space<vmem>>, vector<32x128xf32>
    %c0_2 = arith.constant 0 : index
    %c0_3 = arith.constant 0 : index
    %4 = vector.load %arg4[%c0_2, %c0_3] : memref<32x128xf32, #tpu.memory_space<vmem>>, vector<32x128xf32>
    %c0_4 = arith.constant 0 : index
    %c0_5 = arith.constant 0 : index
    %5 = vector.load %arg7[%c0_4, %c0_5] : memref<2x32xf32, #tpu.memory_space<vmem>>, vector<2x32xf32>
    %c0_6 = arith.constant 0 : index
    %c0_7 = arith.constant 0 : index
    %6 = vector.load %arg8[%c0_6, %c0_7] : memref<2x32xf32, #tpu.memory_space<vmem>>, vector<2x32xf32>
    %c0_8 = arith.constant 0 : index
    %c0_9 = arith.constant 0 : index
    %7 = vector.load %arg9[%c0_8, %c0_9] : memref<2x32xf32, #tpu.memory_space<vmem>>, vector<2x32xf32>
    %c0_10 = arith.constant 0 : index
    %c0_11 = arith.constant 0 : index
    %8 = vector.load %arg10[%c0_10, %c0_11] : memref<2x32xf32, #tpu.memory_space<vmem>>, vector<2x32xf32>
    %c0_i32_12 = arith.constant 0 : i32
    %9 = arith.index_cast %c0_i32_12 : i32 to index
    %c0_13 = arith.constant 0 : index
    %c0_14 = arith.constant 0 : index
    %10 = vector.load %arg1[%9, %c0_13, %c0_14] : memref<8x2x128xf32, #tpu.memory_space<vmem>>, vector<1x2x128xf32>
    %11 = vector.shape_cast %10 : vector<1x2x128xf32> to vector<2x128xf32>
    %cst = arith.constant dense<0.000000e+00> : vector<2x128xf32>
    %12 = tpu.matmul %5, %3, %cst {dimension_numbers = #tpu.dot_dimension_numbers<[1], [0], [0], [1], [0, 0, 1, 1], [], []>} : vector<2x32xf32>, vector<32x128xf32>, vector<2x128xf32> -> vector<2x128xf32>
    %13 = arith.addf %11, %12 : vector<2x128xf32>
    %14 = vector.extract_strided_slice %13 {offsets = [0, 0], sizes = [2, 32], strides = [1, 1]} : vector<2x128xf32> to vector<2x32xf32>
    %cst_15 = arith.constant 0.000000e+00 : f32
    %15 = vector.broadcast %cst_15 : f32 to vector<2x32xf32>
    %16 = arith.subf %15, %14 : vector<2x32xf32>
    %17 = math.exp %16 : vector<2x32xf32>
    %cst_16 = arith.constant 1.000000e+00 : f32
    %18 = vector.broadcast %cst_16 : f32 to vector<2x32xf32>
    %19 = arith.addf %18, %17 : vector<2x32xf32>
    %cst_17 = arith.constant 1.000000e+00 : f32
    %20 = vector.broadcast %cst_17 : f32 to vector<2x32xf32>
    %21 = arith.divf %20, %19 : vector<2x32xf32>
    %22 = vector.extract_strided_slice %13 {offsets = [0, 32], sizes = [2, 32], strides = [1, 1]} : vector<2x128xf32> to vector<2x32xf32>
    %cst_18 = arith.constant 0.000000e+00 : f32
    %23 = vector.broadcast %cst_18 : f32 to vector<2x32xf32>
    %24 = arith.subf %23, %22 : vector<2x32xf32>
    %25 = math.exp %24 : vector<2x32xf32>
    %cst_19 = arith.constant 1.000000e+00 : f32
    %26 = vector.broadcast %cst_19 : f32 to vector<2x32xf32>
    %27 = arith.addf %26, %25 : vector<2x32xf32>
    %cst_20 = arith.constant 1.000000e+00 : f32
    %28 = vector.broadcast %cst_20 : f32 to vector<2x32xf32>
    %29 = arith.divf %28, %27 : vector<2x32xf32>
    %30 = vector.extract_strided_slice %13 {offsets = [0, 64], sizes = [2, 32], strides = [1, 1]} : vector<2x128xf32> to vector<2x32xf32>
    %31 = math.tanh %30 : vector<2x32xf32>
    %32 = vector.extract_strided_slice %13 {offsets = [0, 96], sizes = [2, 32], strides = [1, 1]} : vector<2x128xf32> to vector<2x32xf32>
    %cst_21 = arith.constant 0.000000e+00 : f32
    %33 = vector.broadcast %cst_21 : f32 to vector<2x32xf32>
    %34 = arith.subf %33, %32 : vector<2x32xf32>
    %35 = math.exp %34 : vector<2x32xf32>
    %cst_22 = arith.constant 1.000000e+00 : f32
    %36 = vector.broadcast %cst_22 : f32 to vector<2x32xf32>
    %37 = arith.addf %36, %35 : vector<2x32xf32>
    %cst_23 = arith.constant 1.000000e+00 : f32
    %38 = vector.broadcast %cst_23 : f32 to vector<2x32xf32>
    %39 = arith.divf %38, %37 : vector<2x32xf32>
    %40 = arith.mulf %29, %6 : vector<2x32xf32>
    %41 = arith.mulf %21, %31 : vector<2x32xf32>
    %42 = arith.addf %40, %41 : vector<2x32xf32>
    %43 = math.tanh %42 : vector<2x32xf32>
    %44 = arith.mulf %39, %43 : vector<2x32xf32>
    %45 = arith.index_cast %c0_i32_12 : i32 to index
    %c0_24 = arith.constant 0 : index
    %c0_25 = arith.constant 0 : index
    %46 = vector.load %arg5[%45, %c0_24, %c0_25] : memref<8x2x32xf32, #tpu.memory_space<vmem>>, vector<1x2x32xf32>
    %47 = vector.shape_cast %46 : vector<1x2x32xf32> to vector<2x32xf32>
    %48 = vector.shape_cast %44 : vector<2x32xf32> to vector<1x2x32xf32>
    tpu.vector_store %arg5[%45, %c0_24, %c0_25], %48 {strides = array<i32>} : memref<8x2x32xf32, #tpu.memory_space<vmem>>, vector<1x2x32xf32>,
    %c7_i32 = arith.constant 7 : i32
    %49 = arith.subi %c7_i32, %c0_i32_12 : i32
    %50 = arith.index_cast %49 : i32 to index
    %c0_26 = arith.constant 0 : index
    %c0_27 = arith.constant 0 : index
    %51 = vector.load %arg2[%50, %c0_26, %c0_27] : memref<8x2x128xf32, #tpu.memory_space<vmem>>, vector<1x2x128xf32>
    %52 = vector.shape_cast %51 : vector<1x2x128xf32> to vector<2x128xf32>
    %cst_28 = arith.constant dense<0.000000e+00> : vector<2x128xf32>
    %53 = tpu.matmul %7, %4, %cst_28 {dimension_numbers = #tpu.dot_dimension_numbers<[1], [0], [0], [1], [0, 0, 1, 1], [], []>} : vector<2x32xf32>, vector<32x128xf32>, vector<2x128xf32> -> vector<2x128xf32>
    %54 = arith.addf %52, %53 : vector<2x128xf32>
    %55 = vector.extract_strided_slice %54 {offsets = [0, 0], sizes = [2, 32], strides = [1, 1]} : vector<2x128xf32> to vector<2x32xf32>
    %cst_29 = arith.constant 0.000000e+00 : f32
    %56 = vector.broadcast %cst_29 : f32 to vector<2x32xf32>
    %57 = arith.subf %56, %55 : vector<2x32xf32>
    %58 = math.exp %57 : vector<2x32xf32>
    %cst_30 = arith.constant 1.000000e+00 : f32
    %59 = vector.broadcast %cst_30 : f32 to vector<2x32xf32>
    %60 = arith.addf %59, %58 : vector<2x32xf32>
    %cst_31 = arith.constant 1.000000e+00 : f32
    %61 = vector.broadcast %cst_31 : f32 to vector<2x32xf32>
    %62 = arith.divf %61, %60 : vector<2x32xf32>
    %63 = vector.extract_strided_slice %54 {offsets = [0, 32], sizes = [2, 32], strides = [1, 1]} : vector<2x128xf32> to vector<2x32xf32>
    %cst_32 = arith.constant 0.000000e+00 : f32
    %64 = vector.broadcast %cst_32 : f32 to vector<2x32xf32>
    %65 = arith.subf %64, %63 : vector<2x32xf32>
    %66 = math.exp %65 : vector<2x32xf32>
    %cst_33 = arith.constant 1.000000e+00 : f32
    %67 = vector.broadcast %cst_33 : f32 to vector<2x32xf32>
    %68 = arith.addf %67, %66 : vector<2x32xf32>
    %cst_34 = arith.constant 1.000000e+00 : f32
    %69 = vector.broadcast %cst_34 : f32 to vector<2x32xf32>
    %70 = arith.divf %69, %68 : vector<2x32xf32>
    %71 = vector.extract_strided_slice %54 {offsets = [0, 64], sizes = [2, 32], strides = [1, 1]} : vector<2x128xf32> to vector<2x32xf32>
    %72 = math.tanh %71 : vector<2x32xf32>
    %73 = vector.extract_strided_slice %54 {offsets = [0, 96], sizes = [2, 32], strides = [1, 1]} : vector<2x128xf32> to vector<2x32xf32>
    %cst_35 = arith.constant 0.000000e+00 : f32
    %74 = vector.broadcast %cst_35 : f32 to vector<2x32xf32>
    %75 = arith.subf %74, %73 : vector<2x32xf32>
    %76 = math.exp %75 : vector<2x32xf32>
    %cst_36 = arith.constant 1.000000e+00 : f32
    %77 = vector.broadcast %cst_36 : f32 to vector<2x32xf32>
    %78 = arith.addf %77, %76 : vector<2x32xf32>
    %cst_37 = arith.constant 1.000000e+00 : f32
    %79 = vector.broadcast %cst_37 : f32 to vector<2x32xf32>
    %80 = arith.divf %79, %78 : vector<2x32xf32>
    %81 = arith.mulf %70, %8 : vector<2x32xf32>
    %82 = arith.mulf %62, %72 : vector<2x32xf32>
    %83 = arith.addf %81, %82 : vector<2x32xf32>
    %84 = math.tanh %83 : vector<2x32xf32>
    %85 = arith.mulf %80, %84 : vector<2x32xf32>
    %86 = arith.index_cast %49 : i32 to index
    %c0_38 = arith.constant 0 : index
    %c0_39 = arith.constant 0 : index
    %87 = vector.load %arg6[%86, %c0_38, %c0_39] : memref<8x2x32xf32, #tpu.memory_space<vmem>>, vector<1x2x32xf32>
    %88 = vector.shape_cast %87 : vector<1x2x32xf32> to vector<2x32xf32>
    %89 = vector.shape_cast %85 : vector<2x32xf32> to vector<1x2x32xf32>
    tpu.vector_store %arg6[%86, %c0_38, %c0_39], %89 {strides = array<i32>} : memref<8x2x32xf32, #tpu.memory_space<vmem>>, vector<1x2x32xf32>,
    %c1_i32 = arith.constant 1 : i32
    %90 = arith.index_cast %c1_i32 : i32 to index
    %c0_40 = arith.constant 0 : index
    %c0_41 = arith.constant 0 : index
    %91 = vector.load %arg1[%90, %c0_40, %c0_41] : memref<8x2x128xf32, #tpu.memory_space<vmem>>, vector<1x2x128xf32>
    %92 = vector.shape_cast %91 : vector<1x2x128xf32> to vector<2x128xf32>
    %cst_42 = arith.constant dense<0.000000e+00> : vector<2x128xf32>
    %93 = tpu.matmul %44, %3, %cst_42 {dimension_numbers = #tpu.dot_dimension_numbers<[1], [0], [0], [1], [0, 0, 1, 1], [], []>} : vector<2x32xf32>, vector<32x128xf32>, vector<2x128xf32> -> vector<2x128xf32>
    %94 = arith.addf %92, %93 : vector<2x128xf32>
    %95 = vector.extract_strided_slice %94 {offsets = [0, 0], sizes = [2, 32], strides = [1, 1]} : vector<2x128xf32> to vector<2x32xf32>
    %cst_43 = arith.constant 0.000000e+00 : f32
    %96 = vector.broadcast %cst_43 : f32 to vector<2x32xf32>
    %97 = arith.subf %96, %95 : vector<2x32xf32>
    %98 = math.exp %97 : vector<2x32xf32>
    %cst_44 = arith.constant 1.000000e+00 : f32
    %99 = vector.broadcast %cst_44 : f32 to vector<2x32xf32>
    %100 = arith.addf %99, %98 : vector<2x32xf32>
    %cst_45 = arith.constant 1.000000e+00 : f32
    %101 = vector.broadcast %cst_45 : f32 to vector<2x32xf32>
    %102 = arith.divf %101, %100 : vector<2x32xf32>
    %103 = vector.extract_strided_slice %94 {offsets = [0, 32], sizes = [2, 32], strides = [1, 1]} : vector<2x128xf32> to vector<2x32xf32>
    %cst_46 = arith.constant 0.000000e+00 : f32
    %104 = vector.broadcast %cst_46 : f32 to vector<2x32xf32>
    %105 = arith.subf %104, %103 : vector<2x32xf32>
    %106 = math.exp %105 : vector<2x32xf32>
    %cst_47 = arith.constant 1.000000e+00 : f32
    %107 = vector.broadcast %cst_47 : f32 to vector<2x32xf32>
    %108 = arith.addf %107, %106 : vector<2x32xf32>
    %cst_48 = arith.constant 1.000000e+00 : f32
    %109 = vector.broadcast %cst_48 : f32 to vector<2x32xf32>
    %110 = arith.divf %109, %108 : vector<2x32xf32>
    %111 = vector.extract_strided_slice %94 {offsets = [0, 64], sizes = [2, 32], strides = [1, 1]} : vector<2x128xf32> to vector<2x32xf32>
    %112 = math.tanh %111 : vector<2x32xf32>
    %113 = vector.extract_strided_slice %94 {offsets = [0, 96], sizes = [2, 32], strides = [1, 1]} : vector<2x128xf32> to vector<2x32xf32>
    %cst_49 = arith.constant 0.000000e+00 : f32
    %114 = vector.broadcast %cst_49 : f32 to vector<2x32xf32>
    %115 = arith.subf %114, %113 : vector<2x32xf32>
    %116 = math.exp %115 : vector<2x32xf32>
    %cst_50 = arith.constant 1.000000e+00 : f32
    %117 = vector.broadcast %cst_50 : f32 to vector<2x32xf32>
    %118 = arith.addf %117, %116 : vector<2x32xf32>
    %cst_51 = arith.constant 1.000000e+00 : f32
    %119 = vector.broadcast %cst_51 : f32 to vector<2x32xf32>
    %120 = arith.divf %119, %118 : vector<2x32xf32>
    %121 = arith.mulf %110, %42 : vector<2x32xf32>
    %122 = arith.mulf %102, %112 : vector<2x32xf32>
    %123 = arith.addf %121, %122 : vector<2x32xf32>
    %124 = math.tanh %123 : vector<2x32xf32>
    %125 = arith.mulf %120, %124 : vector<2x32xf32>
    %126 = arith.index_cast %c1_i32 : i32 to index
    %c0_52 = arith.constant 0 : index
    %c0_53 = arith.constant 0 : index
    %127 = vector.load %arg5[%126, %c0_52, %c0_53] : memref<8x2x32xf32, #tpu.memory_space<vmem>>, vector<1x2x32xf32>
    %128 = vector.shape_cast %127 : vector<1x2x32xf32> to vector<2x32xf32>
    %129 = vector.shape_cast %125 : vector<2x32xf32> to vector<1x2x32xf32>
    tpu.vector_store %arg5[%126, %c0_52, %c0_53], %129 {strides = array<i32>} : memref<8x2x32xf32, #tpu.memory_space<vmem>>, vector<1x2x32xf32>,
    %c7_i32_54 = arith.constant 7 : i32
    %130 = arith.subi %c7_i32_54, %c1_i32 : i32
    %131 = arith.index_cast %130 : i32 to index
    %c0_55 = arith.constant 0 : index
    %c0_56 = arith.constant 0 : index
    %132 = vector.load %arg2[%131, %c0_55, %c0_56] : memref<8x2x128xf32, #tpu.memory_space<vmem>>, vector<1x2x128xf32>
    %133 = vector.shape_cast %132 : vector<1x2x128xf32> to vector<2x128xf32>
    %cst_57 = arith.constant dense<0.000000e+00> : vector<2x128xf32>
    %134 = tpu.matmul %85, %4, %cst_57 {dimension_numbers = #tpu.dot_dimension_numbers<[1], [0], [0], [1], [0, 0, 1, 1], [], []>} : vector<2x32xf32>, vector<32x128xf32>, vector<2x128xf32> -> vector<2x128xf32>
    %135 = arith.addf %133, %134 : vector<2x128xf32>
    %136 = vector.extract_strided_slice %135 {offsets = [0, 0], sizes = [2, 32], strides = [1, 1]} : vector<2x128xf32> to vector<2x32xf32>
    %cst_58 = arith.constant 0.000000e+00 : f32
    %137 = vector.broadcast %cst_58 : f32 to vector<2x32xf32>
    %138 = arith.subf %137, %136 : vector<2x32xf32>
    %139 = math.exp %138 : vector<2x32xf32>
    %cst_59 = arith.constant 1.000000e+00 : f32
    %140 = vector.broadcast %cst_59 : f32 to vector<2x32xf32>
    %141 = arith.addf %140, %139 : vector<2x32xf32>
    %cst_60 = arith.constant 1.000000e+00 : f32
    %142 = vector.broadcast %cst_60 : f32 to vector<2x32xf32>
    %143 = arith.divf %142, %141 : vector<2x32xf32>
    %144 = vector.extract_strided_slice %135 {offsets = [0, 32], sizes = [2, 32], strides = [1, 1]} : vector<2x128xf32> to vector<2x32xf32>
    %cst_61 = arith.constant 0.000000e+00 : f32
    %145 = vector.broadcast %cst_61 : f32 to vector<2x32xf32>
    %146 = arith.subf %145, %144 : vector<2x32xf32>
    %147 = math.exp %146 : vector<2x32xf32>
    %cst_62 = arith.constant 1.000000e+00 : f32
    %148 = vector.broadcast %cst_62 : f32 to vector<2x32xf32>
    %149 = arith.addf %148, %147 : vector<2x32xf32>
    %cst_63 = arith.constant 1.000000e+00 : f32
    %150 = vector.broadcast %cst_63 : f32 to vector<2x32xf32>
    %151 = arith.divf %150, %149 : vector<2x32xf32>
    %152 = vector.extract_strided_slice %135 {offsets = [0, 64], sizes = [2, 32], strides = [1, 1]} : vector<2x128xf32> to vector<2x32xf32>
    %153 = math.tanh %152 : vector<2x32xf32>
    %154 = vector.extract_strided_slice %135 {offsets = [0, 96], sizes = [2, 32], strides = [1, 1]} : vector<2x128xf32> to vector<2x32xf32>
    %cst_64 = arith.constant 0.000000e+00 : f32
    %155 = vector.broadcast %cst_64 : f32 to vector<2x32xf32>
    %156 = arith.subf %155, %154 : vector<2x32xf32>
    %157 = math.exp %156 : vector<2x32xf32>
    %cst_65 = arith.constant 1.000000e+00 : f32
    %158 = vector.broadcast %cst_65 : f32 to vector<2x32xf32>
    %159 = arith.addf %158, %157 : vector<2x32xf32>
    %cst_66 = arith.constant 1.000000e+00 : f32
    %160 = vector.broadcast %cst_66 : f32 to vector<2x32xf32>
    %161 = arith.divf %160, %159 : vector<2x32xf32>
    %162 = arith.mulf %151, %83 : vector<2x32xf32>
    %163 = arith.mulf %143, %153 : vector<2x32xf32>
    %164 = arith.addf %162, %163 : vector<2x32xf32>
    %165 = math.tanh %164 : vector<2x32xf32>
    %166 = arith.mulf %161, %165 : vector<2x32xf32>
    %167 = arith.index_cast %130 : i32 to index
    %c0_67 = arith.constant 0 : index
    %c0_68 = arith.constant 0 : index
    %168 = vector.load %arg6[%167, %c0_67, %c0_68] : memref<8x2x32xf32, #tpu.memory_space<vmem>>, vector<1x2x32xf32>
    %169 = vector.shape_cast %168 : vector<1x2x32xf32> to vector<2x32xf32>
    %170 = vector.shape_cast %166 : vector<2x32xf32> to vector<1x2x32xf32>
    tpu.vector_store %arg6[%167, %c0_67, %c0_68], %170 {strides = array<i32>} : memref<8x2x32xf32, #tpu.memory_space<vmem>>, vector<1x2x32xf32>,
    %c2_i32 = arith.constant 2 : i32
    %171 = arith.index_cast %c2_i32 : i32 to index
    %c0_69 = arith.constant 0 : index
    %c0_70 = arith.constant 0 : index
    %172 = vector.load %arg1[%171, %c0_69, %c0_70] : memref<8x2x128xf32, #tpu.memory_space<vmem>>, vector<1x2x128xf32>
    %173 = vector.shape_cast %172 : vector<1x2x128xf32> to vector<2x128xf32>
    %cst_71 = arith.constant dense<0.000000e+00> : vector<2x128xf32>
    %174 = tpu.matmul %125, %3, %cst_71 {dimension_numbers = #tpu.dot_dimension_numbers<[1], [0], [0], [1], [0, 0, 1, 1], [], []>} : vector<2x32xf32>, vector<32x128xf32>, vector<2x128xf32> -> vector<2x128xf32>
    %175 = arith.addf %173, %174 : vector<2x128xf32>
    %176 = vector.extract_strided_slice %175 {offsets = [0, 0], sizes = [2, 32], strides = [1, 1]} : vector<2x128xf32> to vector<2x32xf32>
    %cst_72 = arith.constant 0.000000e+00 : f32
    %177 = vector.broadcast %cst_72 : f32 to vector<2x32xf32>
    %178 = arith.subf %177, %176 : vector<2x32xf32>
    %179 = math.exp %178 : vector<2x32xf32>
    %cst_73 = arith.constant 1.000000e+00 : f32
    %180 = vector.broadcast %cst_73 : f32 to vector<2x32xf32>
    %181 = arith.addf %180, %179 : vector<2x32xf32>
    %cst_74 = arith.constant 1.000000e+00 : f32
    %182 = vector.broadcast %cst_74 : f32 to vector<2x32xf32>
    %183 = arith.divf %182, %181 : vector<2x32xf32>
    %184 = vector.extract_strided_slice %175 {offsets = [0, 32], sizes = [2, 32], strides = [1, 1]} : vector<2x128xf32> to vector<2x32xf32>
    %cst_75 = arith.constant 0.000000e+00 : f32
    %185 = vector.broadcast %cst_75 : f32 to vector<2x32xf32>
    %186 = arith.subf %185, %184 : vector<2x32xf32>
    %187 = math.exp %186 : vector<2x32xf32>
    %cst_76 = arith.constant 1.000000e+00 : f32
    %188 = vector.broadcast %cst_76 : f32 to vector<2x32xf32>
    %189 = arith.addf %188, %187 : vector<2x32xf32>
    %cst_77 = arith.constant 1.000000e+00 : f32
    %190 = vector.broadcast %cst_77 : f32 to vector<2x32xf32>
    %191 = arith.divf %190, %189 : vector<2x32xf32>
    %192 = vector.extract_strided_slice %175 {offsets = [0, 64], sizes = [2, 32], strides = [1, 1]} : vector<2x128xf32> to vector<2x32xf32>
    %193 = math.tanh %192 : vector<2x32xf32>
    %194 = vector.extract_strided_slice %175 {offsets = [0, 96], sizes = [2, 32], strides = [1, 1]} : vector<2x128xf32> to vector<2x32xf32>
    %cst_78 = arith.constant 0.000000e+00 : f32
    %195 = vector.broadcast %cst_78 : f32 to vector<2x32xf32>
    %196 = arith.subf %195, %194 : vector<2x32xf32>
    %197 = math.exp %196 : vector<2x32xf32>
    %cst_79 = arith.constant 1.000000e+00 : f32
    %198 = vector.broadcast %cst_79 : f32 to vector<2x32xf32>
    %199 = arith.addf %198, %197 : vector<2x32xf32>
    %cst_80 = arith.constant 1.000000e+00 : f32
    %200 = vector.broadcast %cst_80 : f32 to vector<2x32xf32>
    %201 = arith.divf %200, %199 : vector<2x32xf32>
    %202 = arith.mulf %191, %123 : vector<2x32xf32>
    %203 = arith.mulf %183, %193 : vector<2x32xf32>
    %204 = arith.addf %202, %203 : vector<2x32xf32>
    %205 = math.tanh %204 : vector<2x32xf32>
    %206 = arith.mulf %201, %205 : vector<2x32xf32>
    %207 = arith.index_cast %c2_i32 : i32 to index
    %c0_81 = arith.constant 0 : index
    %c0_82 = arith.constant 0 : index
    %208 = vector.load %arg5[%207, %c0_81, %c0_82] : memref<8x2x32xf32, #tpu.memory_space<vmem>>, vector<1x2x32xf32>
    %209 = vector.shape_cast %208 : vector<1x2x32xf32> to vector<2x32xf32>
    %210 = vector.shape_cast %206 : vector<2x32xf32> to vector<1x2x32xf32>
    tpu.vector_store %arg5[%207, %c0_81, %c0_82], %210 {strides = array<i32>} : memref<8x2x32xf32, #tpu.memory_space<vmem>>, vector<1x2x32xf32>,
    %c7_i32_83 = arith.constant 7 : i32
    %211 = arith.subi %c7_i32_83, %c2_i32 : i32
    %212 = arith.index_cast %211 : i32 to index
    %c0_84 = arith.constant 0 : index
    %c0_85 = arith.constant 0 : index
    %213 = vector.load %arg2[%212, %c0_84, %c0_85] : memref<8x2x128xf32, #tpu.memory_space<vmem>>, vector<1x2x128xf32>
    %214 = vector.shape_cast %213 : vector<1x2x128xf32> to vector<2x128xf32>
    %cst_86 = arith.constant dense<0.000000e+00> : vector<2x128xf32>
    %215 = tpu.matmul %166, %4, %cst_86 {dimension_numbers = #tpu.dot_dimension_numbers<[1], [0], [0], [1], [0, 0, 1, 1], [], []>} : vector<2x32xf32>, vector<32x128xf32>, vector<2x128xf32> -> vector<2x128xf32>
    %216 = arith.addf %214, %215 : vector<2x128xf32>
    %217 = vector.extract_strided_slice %216 {offsets = [0, 0], sizes = [2, 32], strides = [1, 1]} : vector<2x128xf32> to vector<2x32xf32>
    %cst_87 = arith.constant 0.000000e+00 : f32
    %218 = vector.broadcast %cst_87 : f32 to vector<2x32xf32>
    %219 = arith.subf %218, %217 : vector<2x32xf32>
    %220 = math.exp %219 : vector<2x32xf32>
    %cst_88 = arith.constant 1.000000e+00 : f32
    %221 = vector.broadcast %cst_88 : f32 to vector<2x32xf32>
    %222 = arith.addf %221, %220 : vector<2x32xf32>
    %cst_89 = arith.constant 1.000000e+00 : f32
    %223 = vector.broadcast %cst_89 : f32 to vector<2x32xf32>
    %224 = arith.divf %223, %222 : vector<2x32xf32>
    %225 = vector.extract_strided_slice %216 {offsets = [0, 32], sizes = [2, 32], strides = [1, 1]} : vector<2x128xf32> to vector<2x32xf32>
    %cst_90 = arith.constant 0.000000e+00 : f32
    %226 = vector.broadcast %cst_90 : f32 to vector<2x32xf32>
    %227 = arith.subf %226, %225 : vector<2x32xf32>
    %228 = math.exp %227 : vector<2x32xf32>
    %cst_91 = arith.constant 1.000000e+00 : f32
    %229 = vector.broadcast %cst_91 : f32 to vector<2x32xf32>
    %230 = arith.addf %229, %228 : vector<2x32xf32>
    %cst_92 = arith.constant 1.000000e+00 : f32
    %231 = vector.broadcast %cst_92 : f32 to vector<2x32xf32>
    %232 = arith.divf %231, %230 : vector<2x32xf32>
    %233 = vector.extract_strided_slice %216 {offsets = [0, 64], sizes = [2, 32], strides = [1, 1]} : vector<2x128xf32> to vector<2x32xf32>
    %234 = math.tanh %233 : vector<2x32xf32>
    %235 = vector.extract_strided_slice %216 {offsets = [0, 96], sizes = [2, 32], strides = [1, 1]} : vector<2x128xf32> to vector<2x32xf32>
    %cst_93 = arith.constant 0.000000e+00 : f32
    %236 = vector.broadcast %cst_93 : f32 to vector<2x32xf32>
    %237 = arith.subf %236, %235 : vector<2x32xf32>
    %238 = math.exp %237 : vector<2x32xf32>
    %cst_94 = arith.constant 1.000000e+00 : f32
    %239 = vector.broadcast %cst_94 : f32 to vector<2x32xf32>
    %240 = arith.addf %239, %238 : vector<2x32xf32>
    %cst_95 = arith.constant 1.000000e+00 : f32
    %241 = vector.broadcast %cst_95 : f32 to vector<2x32xf32>
    %242 = arith.divf %241, %240 : vector<2x32xf32>
    %243 = arith.mulf %232, %164 : vector<2x32xf32>
    %244 = arith.mulf %224, %234 : vector<2x32xf32>
    %245 = arith.addf %243, %244 : vector<2x32xf32>
    %246 = math.tanh %245 : vector<2x32xf32>
    %247 = arith.mulf %242, %246 : vector<2x32xf32>
    %248 = arith.index_cast %211 : i32 to index
    %c0_96 = arith.constant 0 : index
    %c0_97 = arith.constant 0 : index
    %249 = vector.load %arg6[%248, %c0_96, %c0_97] : memref<8x2x32xf32, #tpu.memory_space<vmem>>, vector<1x2x32xf32>
    %250 = vector.shape_cast %249 : vector<1x2x32xf32> to vector<2x32xf32>
    %251 = vector.shape_cast %247 : vector<2x32xf32> to vector<1x2x32xf32>
    tpu.vector_store %arg6[%248, %c0_96, %c0_97], %251 {strides = array<i32>} : memref<8x2x32xf32, #tpu.memory_space<vmem>>, vector<1x2x32xf32>,
    %c3_i32 = arith.constant 3 : i32
    %252 = arith.index_cast %c3_i32 : i32 to index
    %c0_98 = arith.constant 0 : index
    %c0_99 = arith.constant 0 : index
    %253 = vector.load %arg1[%252, %c0_98, %c0_99] : memref<8x2x128xf32, #tpu.memory_space<vmem>>, vector<1x2x128xf32>
    %254 = vector.shape_cast %253 : vector<1x2x128xf32> to vector<2x128xf32>
    %cst_100 = arith.constant dense<0.000000e+00> : vector<2x128xf32>
    %255 = tpu.matmul %206, %3, %cst_100 {dimension_numbers = #tpu.dot_dimension_numbers<[1], [0], [0], [1], [0, 0, 1, 1], [], []>} : vector<2x32xf32>, vector<32x128xf32>, vector<2x128xf32> -> vector<2x128xf32>
    %256 = arith.addf %254, %255 : vector<2x128xf32>
    %257 = vector.extract_strided_slice %256 {offsets = [0, 0], sizes = [2, 32], strides = [1, 1]} : vector<2x128xf32> to vector<2x32xf32>
    %cst_101 = arith.constant 0.000000e+00 : f32
    %258 = vector.broadcast %cst_101 : f32 to vector<2x32xf32>
    %259 = arith.subf %258, %257 : vector<2x32xf32>
    %260 = math.exp %259 : vector<2x32xf32>
    %cst_102 = arith.constant 1.000000e+00 : f32
    %261 = vector.broadcast %cst_102 : f32 to vector<2x32xf32>
    %262 = arith.addf %261, %260 : vector<2x32xf32>
    %cst_103 = arith.constant 1.000000e+00 : f32
    %263 = vector.broadcast %cst_103 : f32 to vector<2x32xf32>
    %264 = arith.divf %263, %262 : vector<2x32xf32>
    %265 = vector.extract_strided_slice %256 {offsets = [0, 32], sizes = [2, 32], strides = [1, 1]} : vector<2x128xf32> to vector<2x32xf32>
    %cst_104 = arith.constant 0.000000e+00 : f32
    %266 = vector.broadcast %cst_104 : f32 to vector<2x32xf32>
    %267 = arith.subf %266, %265 : vector<2x32xf32>
    %268 = math.exp %267 : vector<2x32xf32>
    %cst_105 = arith.constant 1.000000e+00 : f32
    %269 = vector.broadcast %cst_105 : f32 to vector<2x32xf32>
    %270 = arith.addf %269, %268 : vector<2x32xf32>
    %cst_106 = arith.constant 1.000000e+00 : f32
    %271 = vector.broadcast %cst_106 : f32 to vector<2x32xf32>
    %272 = arith.divf %271, %270 : vector<2x32xf32>
    %273 = vector.extract_strided_slice %256 {offsets = [0, 64], sizes = [2, 32], strides = [1, 1]} : vector<2x128xf32> to vector<2x32xf32>
    %274 = math.tanh %273 : vector<2x32xf32>
    %275 = vector.extract_strided_slice %256 {offsets = [0, 96], sizes = [2, 32], strides = [1, 1]} : vector<2x128xf32> to vector<2x32xf32>
    %cst_107 = arith.constant 0.000000e+00 : f32
    %276 = vector.broadcast %cst_107 : f32 to vector<2x32xf32>
    %277 = arith.subf %276, %275 : vector<2x32xf32>
    %278 = math.exp %277 : vector<2x32xf32>
    %cst_108 = arith.constant 1.000000e+00 : f32
    %279 = vector.broadcast %cst_108 : f32 to vector<2x32xf32>
    %280 = arith.addf %279, %278 : vector<2x32xf32>
    %cst_109 = arith.constant 1.000000e+00 : f32
    %281 = vector.broadcast %cst_109 : f32 to vector<2x32xf32>
    %282 = arith.divf %281, %280 : vector<2x32xf32>
    %283 = arith.mulf %272, %204 : vector<2x32xf32>
    %284 = arith.mulf %264, %274 : vector<2x32xf32>
    %285 = arith.addf %283, %284 : vector<2x32xf32>
    %286 = math.tanh %285 : vector<2x32xf32>
    %287 = arith.mulf %282, %286 : vector<2x32xf32>
    %288 = arith.index_cast %c3_i32 : i32 to index
    %c0_110 = arith.constant 0 : index
    %c0_111 = arith.constant 0 : index
    %289 = vector.load %arg5[%288, %c0_110, %c0_111] : memref<8x2x32xf32, #tpu.memory_space<vmem>>, vector<1x2x32xf32>
    %290 = vector.shape_cast %289 : vector<1x2x32xf32> to vector<2x32xf32>
    %291 = vector.shape_cast %287 : vector<2x32xf32> to vector<1x2x32xf32>
    tpu.vector_store %arg5[%288, %c0_110, %c0_111], %291 {strides = array<i32>} : memref<8x2x32xf32, #tpu.memory_space<vmem>>, vector<1x2x32xf32>,
    %c7_i32_112 = arith.constant 7 : i32
    %292 = arith.subi %c7_i32_112, %c3_i32 : i32
    %293 = arith.index_cast %292 : i32 to index
    %c0_113 = arith.constant 0 : index
    %c0_114 = arith.constant 0 : index
    %294 = vector.load %arg2[%293, %c0_113, %c0_114] : memref<8x2x128xf32, #tpu.memory_space<vmem>>, vector<1x2x128xf32>
    %295 = vector.shape_cast %294 : vector<1x2x128xf32> to vector<2x128xf32>
    %cst_115 = arith.constant dense<0.000000e+00> : vector<2x128xf32>
    %296 = tpu.matmul %247, %4, %cst_115 {dimension_numbers = #tpu.dot_dimension_numbers<[1], [0], [0], [1], [0, 0, 1, 1], [], []>} : vector<2x32xf32>, vector<32x128xf32>, vector<2x128xf32> -> vector<2x128xf32>
    %297 = arith.addf %295, %296 : vector<2x128xf32>
    %298 = vector.extract_strided_slice %297 {offsets = [0, 0], sizes = [2, 32], strides = [1, 1]} : vector<2x128xf32> to vector<2x32xf32>
    %cst_116 = arith.constant 0.000000e+00 : f32
    %299 = vector.broadcast %cst_116 : f32 to vector<2x32xf32>
    %300 = arith.subf %299, %298 : vector<2x32xf32>
    %301 = math.exp %300 : vector<2x32xf32>
    %cst_117 = arith.constant 1.000000e+00 : f32
    %302 = vector.broadcast %cst_117 : f32 to vector<2x32xf32>
    %303 = arith.addf %302, %301 : vector<2x32xf32>
    %cst_118 = arith.constant 1.000000e+00 : f32
    %304 = vector.broadcast %cst_118 : f32 to vector<2x32xf32>
    %305 = arith.divf %304, %303 : vector<2x32xf32>
    %306 = vector.extract_strided_slice %297 {offsets = [0, 32], sizes = [2, 32], strides = [1, 1]} : vector<2x128xf32> to vector<2x32xf32>
    %cst_119 = arith.constant 0.000000e+00 : f32
    %307 = vector.broadcast %cst_119 : f32 to vector<2x32xf32>
    %308 = arith.subf %307, %306 : vector<2x32xf32>
    %309 = math.exp %308 : vector<2x32xf32>
    %cst_120 = arith.constant 1.000000e+00 : f32
    %310 = vector.broadcast %cst_120 : f32 to vector<2x32xf32>
    %311 = arith.addf %310, %309 : vector<2x32xf32>
    %cst_121 = arith.constant 1.000000e+00 : f32
    %312 = vector.broadcast %cst_121 : f32 to vector<2x32xf32>
    %313 = arith.divf %312, %311 : vector<2x32xf32>
    %314 = vector.extract_strided_slice %297 {offsets = [0, 64], sizes = [2, 32], strides = [1, 1]} : vector<2x128xf32> to vector<2x32xf32>
    %315 = math.tanh %314 : vector<2x32xf32>
    %316 = vector.extract_strided_slice %297 {offsets = [0, 96], sizes = [2, 32], strides = [1, 1]} : vector<2x128xf32> to vector<2x32xf32>
    %cst_122 = arith.constant 0.000000e+00 : f32
    %317 = vector.broadcast %cst_122 : f32 to vector<2x32xf32>
    %318 = arith.subf %317, %316 : vector<2x32xf32>
    %319 = math.exp %318 : vector<2x32xf32>
    %cst_123 = arith.constant 1.000000e+00 : f32
    %320 = vector.broadcast %cst_123 : f32 to vector<2x32xf32>
    %321 = arith.addf %320, %319 : vector<2x32xf32>
    %cst_124 = arith.constant 1.000000e+00 : f32
    %322 = vector.broadcast %cst_124 : f32 to vector<2x32xf32>
    %323 = arith.divf %322, %321 : vector<2x32xf32>
    %324 = arith.mulf %313, %245 : vector<2x32xf32>
    %325 = arith.mulf %305, %315 : vector<2x32xf32>
    %326 = arith.addf %324, %325 : vector<2x32xf32>
    %327 = math.tanh %326 : vector<2x32xf32>
    %328 = arith.mulf %323, %327 : vector<2x32xf32>
    %329 = arith.index_cast %292 : i32 to index
    %c0_125 = arith.constant 0 : index
    %c0_126 = arith.constant 0 : index
    %330 = vector.load %arg6[%329, %c0_125, %c0_126] : memref<8x2x32xf32, #tpu.memory_space<vmem>>, vector<1x2x32xf32>
    %331 = vector.shape_cast %330 : vector<1x2x32xf32> to vector<2x32xf32>
    %332 = vector.shape_cast %328 : vector<2x32xf32> to vector<1x2x32xf32>
    tpu.vector_store %arg6[%329, %c0_125, %c0_126], %332 {strides = array<i32>} : memref<8x2x32xf32, #tpu.memory_space<vmem>>, vector<1x2x32xf32>,
    %c4_i32 = arith.constant 4 : i32
    %333 = arith.index_cast %c4_i32 : i32 to index
    %c0_127 = arith.constant 0 : index
    %c0_128 = arith.constant 0 : index
    %334 = vector.load %arg1[%333, %c0_127, %c0_128] : memref<8x2x128xf32, #tpu.memory_space<vmem>>, vector<1x2x128xf32>
    %335 = vector.shape_cast %334 : vector<1x2x128xf32> to vector<2x128xf32>
    %cst_129 = arith.constant dense<0.000000e+00> : vector<2x128xf32>
    %336 = tpu.matmul %287, %3, %cst_129 {dimension_numbers = #tpu.dot_dimension_numbers<[1], [0], [0], [1], [0, 0, 1, 1], [], []>} : vector<2x32xf32>, vector<32x128xf32>, vector<2x128xf32> -> vector<2x128xf32>
    %337 = arith.addf %335, %336 : vector<2x128xf32>
    %338 = vector.extract_strided_slice %337 {offsets = [0, 0], sizes = [2, 32], strides = [1, 1]} : vector<2x128xf32> to vector<2x32xf32>
    %cst_130 = arith.constant 0.000000e+00 : f32
    %339 = vector.broadcast %cst_130 : f32 to vector<2x32xf32>
    %340 = arith.subf %339, %338 : vector<2x32xf32>
    %341 = math.exp %340 : vector<2x32xf32>
    %cst_131 = arith.constant 1.000000e+00 : f32
    %342 = vector.broadcast %cst_131 : f32 to vector<2x32xf32>
    %343 = arith.addf %342, %341 : vector<2x32xf32>
    %cst_132 = arith.constant 1.000000e+00 : f32
    %344 = vector.broadcast %cst_132 : f32 to vector<2x32xf32>
    %345 = arith.divf %344, %343 : vector<2x32xf32>
    %346 = vector.extract_strided_slice %337 {offsets = [0, 32], sizes = [2, 32], strides = [1, 1]} : vector<2x128xf32> to vector<2x32xf32>
    %cst_133 = arith.constant 0.000000e+00 : f32
    %347 = vector.broadcast %cst_133 : f32 to vector<2x32xf32>
    %348 = arith.subf %347, %346 : vector<2x32xf32>
    %349 = math.exp %348 : vector<2x32xf32>
    %cst_134 = arith.constant 1.000000e+00 : f32
    %350 = vector.broadcast %cst_134 : f32 to vector<2x32xf32>
    %351 = arith.addf %350, %349 : vector<2x32xf32>
    %cst_135 = arith.constant 1.000000e+00 : f32
    %352 = vector.broadcast %cst_135 : f32 to vector<2x32xf32>
    %353 = arith.divf %352, %351 : vector<2x32xf32>
    %354 = vector.extract_strided_slice %337 {offsets = [0, 64], sizes = [2, 32], strides = [1, 1]} : vector<2x128xf32> to vector<2x32xf32>
    %355 = math.tanh %354 : vector<2x32xf32>
    %356 = vector.extract_strided_slice %337 {offsets = [0, 96], sizes = [2, 32], strides = [1, 1]} : vector<2x128xf32> to vector<2x32xf32>
    %cst_136 = arith.constant 0.000000e+00 : f32
    %357 = vector.broadcast %cst_136 : f32 to vector<2x32xf32>
    %358 = arith.subf %357, %356 : vector<2x32xf32>
    %359 = math.exp %358 : vector<2x32xf32>
    %cst_137 = arith.constant 1.000000e+00 : f32
    %360 = vector.broadcast %cst_137 : f32 to vector<2x32xf32>
    %361 = arith.addf %360, %359 : vector<2x32xf32>
    %cst_138 = arith.constant 1.000000e+00 : f32
    %362 = vector.broadcast %cst_138 : f32 to vector<2x32xf32>
    %363 = arith.divf %362, %361 : vector<2x32xf32>
    %364 = arith.mulf %353, %285 : vector<2x32xf32>
    %365 = arith.mulf %345, %355 : vector<2x32xf32>
    %366 = arith.addf %364, %365 : vector<2x32xf32>
    %367 = math.tanh %366 : vector<2x32xf32>
    %368 = arith.mulf %363, %367 : vector<2x32xf32>
    %369 = arith.index_cast %c4_i32 : i32 to index
    %c0_139 = arith.constant 0 : index
    %c0_140 = arith.constant 0 : index
    %370 = vector.load %arg5[%369, %c0_139, %c0_140] : memref<8x2x32xf32, #tpu.memory_space<vmem>>, vector<1x2x32xf32>
    %371 = vector.shape_cast %370 : vector<1x2x32xf32> to vector<2x32xf32>
    %372 = vector.shape_cast %368 : vector<2x32xf32> to vector<1x2x32xf32>
    tpu.vector_store %arg5[%369, %c0_139, %c0_140], %372 {strides = array<i32>} : memref<8x2x32xf32, #tpu.memory_space<vmem>>, vector<1x2x32xf32>,
    %c7_i32_141 = arith.constant 7 : i32
    %373 = arith.subi %c7_i32_141, %c4_i32 : i32
    %374 = arith.index_cast %373 : i32 to index
    %c0_142 = arith.constant 0 : index
    %c0_143 = arith.constant 0 : index
    %375 = vector.load %arg2[%374, %c0_142, %c0_143] : memref<8x2x128xf32, #tpu.memory_space<vmem>>, vector<1x2x128xf32>
    %376 = vector.shape_cast %375 : vector<1x2x128xf32> to vector<2x128xf32>
    %cst_144 = arith.constant dense<0.000000e+00> : vector<2x128xf32>
    %377 = tpu.matmul %328, %4, %cst_144 {dimension_numbers = #tpu.dot_dimension_numbers<[1], [0], [0], [1], [0, 0, 1, 1], [], []>} : vector<2x32xf32>, vector<32x128xf32>, vector<2x128xf32> -> vector<2x128xf32>
    %378 = arith.addf %376, %377 : vector<2x128xf32>
    %379 = vector.extract_strided_slice %378 {offsets = [0, 0], sizes = [2, 32], strides = [1, 1]} : vector<2x128xf32> to vector<2x32xf32>
    %cst_145 = arith.constant 0.000000e+00 : f32
    %380 = vector.broadcast %cst_145 : f32 to vector<2x32xf32>
    %381 = arith.subf %380, %379 : vector<2x32xf32>
    %382 = math.exp %381 : vector<2x32xf32>
    %cst_146 = arith.constant 1.000000e+00 : f32
    %383 = vector.broadcast %cst_146 : f32 to vector<2x32xf32>
    %384 = arith.addf %383, %382 : vector<2x32xf32>
    %cst_147 = arith.constant 1.000000e+00 : f32
    %385 = vector.broadcast %cst_147 : f32 to vector<2x32xf32>
    %386 = arith.divf %385, %384 : vector<2x32xf32>
    %387 = vector.extract_strided_slice %378 {offsets = [0, 32], sizes = [2, 32], strides = [1, 1]} : vector<2x128xf32> to vector<2x32xf32>
    %cst_148 = arith.constant 0.000000e+00 : f32
    %388 = vector.broadcast %cst_148 : f32 to vector<2x32xf32>
    %389 = arith.subf %388, %387 : vector<2x32xf32>
    %390 = math.exp %389 : vector<2x32xf32>
    %cst_149 = arith.constant 1.000000e+00 : f32
    %391 = vector.broadcast %cst_149 : f32 to vector<2x32xf32>
    %392 = arith.addf %391, %390 : vector<2x32xf32>
    %cst_150 = arith.constant 1.000000e+00 : f32
    %393 = vector.broadcast %cst_150 : f32 to vector<2x32xf32>
    %394 = arith.divf %393, %392 : vector<2x32xf32>
    %395 = vector.extract_strided_slice %378 {offsets = [0, 64], sizes = [2, 32], strides = [1, 1]} : vector<2x128xf32> to vector<2x32xf32>
    %396 = math.tanh %395 : vector<2x32xf32>
    %397 = vector.extract_strided_slice %378 {offsets = [0, 96], sizes = [2, 32], strides = [1, 1]} : vector<2x128xf32> to vector<2x32xf32>
    %cst_151 = arith.constant 0.000000e+00 : f32
    %398 = vector.broadcast %cst_151 : f32 to vector<2x32xf32>
    %399 = arith.subf %398, %397 : vector<2x32xf32>
    %400 = math.exp %399 : vector<2x32xf32>
    %cst_152 = arith.constant 1.000000e+00 : f32
    %401 = vector.broadcast %cst_152 : f32 to vector<2x32xf32>
    %402 = arith.addf %401, %400 : vector<2x32xf32>
    %cst_153 = arith.constant 1.000000e+00 : f32
    %403 = vector.broadcast %cst_153 : f32 to vector<2x32xf32>
    %404 = arith.divf %403, %402 : vector<2x32xf32>
    %405 = arith.mulf %394, %326 : vector<2x32xf32>
    %406 = arith.mulf %386, %396 : vector<2x32xf32>
    %407 = arith.addf %405, %406 : vector<2x32xf32>
    %408 = math.tanh %407 : vector<2x32xf32>
    %409 = arith.mulf %404, %408 : vector<2x32xf32>
    %410 = arith.index_cast %373 : i32 to index
    %c0_154 = arith.constant 0 : index
    %c0_155 = arith.constant 0 : index
    %411 = vector.load %arg6[%410, %c0_154, %c0_155] : memref<8x2x32xf32, #tpu.memory_space<vmem>>, vector<1x2x32xf32>
    %412 = vector.shape_cast %411 : vector<1x2x32xf32> to vector<2x32xf32>
    %413 = vector.shape_cast %409 : vector<2x32xf32> to vector<1x2x32xf32>
    tpu.vector_store %arg6[%410, %c0_154, %c0_155], %413 {strides = array<i32>} : memref<8x2x32xf32, #tpu.memory_space<vmem>>, vector<1x2x32xf32>,
    %c5_i32 = arith.constant 5 : i32
    %414 = arith.index_cast %c5_i32 : i32 to index
    %c0_156 = arith.constant 0 : index
    %c0_157 = arith.constant 0 : index
    %415 = vector.load %arg1[%414, %c0_156, %c0_157] : memref<8x2x128xf32, #tpu.memory_space<vmem>>, vector<1x2x128xf32>
    %416 = vector.shape_cast %415 : vector<1x2x128xf32> to vector<2x128xf32>
    %cst_158 = arith.constant dense<0.000000e+00> : vector<2x128xf32>
    %417 = tpu.matmul %368, %3, %cst_158 {dimension_numbers = #tpu.dot_dimension_numbers<[1], [0], [0], [1], [0, 0, 1, 1], [], []>} : vector<2x32xf32>, vector<32x128xf32>, vector<2x128xf32> -> vector<2x128xf32>
    %418 = arith.addf %416, %417 : vector<2x128xf32>
    %419 = vector.extract_strided_slice %418 {offsets = [0, 0], sizes = [2, 32], strides = [1, 1]} : vector<2x128xf32> to vector<2x32xf32>
    %cst_159 = arith.constant 0.000000e+00 : f32
    %420 = vector.broadcast %cst_159 : f32 to vector<2x32xf32>
    %421 = arith.subf %420, %419 : vector<2x32xf32>
    %422 = math.exp %421 : vector<2x32xf32>
    %cst_160 = arith.constant 1.000000e+00 : f32
    %423 = vector.broadcast %cst_160 : f32 to vector<2x32xf32>
    %424 = arith.addf %423, %422 : vector<2x32xf32>
    %cst_161 = arith.constant 1.000000e+00 : f32
    %425 = vector.broadcast %cst_161 : f32 to vector<2x32xf32>
    %426 = arith.divf %425, %424 : vector<2x32xf32>
    %427 = vector.extract_strided_slice %418 {offsets = [0, 32], sizes = [2, 32], strides = [1, 1]} : vector<2x128xf32> to vector<2x32xf32>
    %cst_162 = arith.constant 0.000000e+00 : f32
    %428 = vector.broadcast %cst_162 : f32 to vector<2x32xf32>
    %429 = arith.subf %428, %427 : vector<2x32xf32>
    %430 = math.exp %429 : vector<2x32xf32>
    %cst_163 = arith.constant 1.000000e+00 : f32
    %431 = vector.broadcast %cst_163 : f32 to vector<2x32xf32>
    %432 = arith.addf %431, %430 : vector<2x32xf32>
    %cst_164 = arith.constant 1.000000e+00 : f32
    %433 = vector.broadcast %cst_164 : f32 to vector<2x32xf32>
    %434 = arith.divf %433, %432 : vector<2x32xf32>
    %435 = vector.extract_strided_slice %418 {offsets = [0, 64], sizes = [2, 32], strides = [1, 1]} : vector<2x128xf32> to vector<2x32xf32>
    %436 = math.tanh %435 : vector<2x32xf32>
    %437 = vector.extract_strided_slice %418 {offsets = [0, 96], sizes = [2, 32], strides = [1, 1]} : vector<2x128xf32> to vector<2x32xf32>
    %cst_165 = arith.constant 0.000000e+00 : f32
    %438 = vector.broadcast %cst_165 : f32 to vector<2x32xf32>
    %439 = arith.subf %438, %437 : vector<2x32xf32>
    %440 = math.exp %439 : vector<2x32xf32>
    %cst_166 = arith.constant 1.000000e+00 : f32
    %441 = vector.broadcast %cst_166 : f32 to vector<2x32xf32>
    %442 = arith.addf %441, %440 : vector<2x32xf32>
    %cst_167 = arith.constant 1.000000e+00 : f32
    %443 = vector.broadcast %cst_167 : f32 to vector<2x32xf32>
    %444 = arith.divf %443, %442 : vector<2x32xf32>
    %445 = arith.mulf %434, %366 : vector<2x32xf32>
    %446 = arith.mulf %426, %436 : vector<2x32xf32>
    %447 = arith.addf %445, %446 : vector<2x32xf32>
    %448 = math.tanh %447 : vector<2x32xf32>
    %449 = arith.mulf %444, %448 : vector<2x32xf32>
    %450 = arith.index_cast %c5_i32 : i32 to index
    %c0_168 = arith.constant 0 : index
    %c0_169 = arith.constant 0 : index
    %451 = vector.load %arg5[%450, %c0_168, %c0_169] : memref<8x2x32xf32, #tpu.memory_space<vmem>>, vector<1x2x32xf32>
    %452 = vector.shape_cast %451 : vector<1x2x32xf32> to vector<2x32xf32>
    %453 = vector.shape_cast %449 : vector<2x32xf32> to vector<1x2x32xf32>
    tpu.vector_store %arg5[%450, %c0_168, %c0_169], %453 {strides = array<i32>} : memref<8x2x32xf32, #tpu.memory_space<vmem>>, vector<1x2x32xf32>,
    %c7_i32_170 = arith.constant 7 : i32
    %454 = arith.subi %c7_i32_170, %c5_i32 : i32
    %455 = arith.index_cast %454 : i32 to index
    %c0_171 = arith.constant 0 : index
    %c0_172 = arith.constant 0 : index
    %456 = vector.load %arg2[%455, %c0_171, %c0_172] : memref<8x2x128xf32, #tpu.memory_space<vmem>>, vector<1x2x128xf32>
    %457 = vector.shape_cast %456 : vector<1x2x128xf32> to vector<2x128xf32>
    %cst_173 = arith.constant dense<0.000000e+00> : vector<2x128xf32>
    %458 = tpu.matmul %409, %4, %cst_173 {dimension_numbers = #tpu.dot_dimension_numbers<[1], [0], [0], [1], [0, 0, 1, 1], [], []>} : vector<2x32xf32>, vector<32x128xf32>, vector<2x128xf32> -> vector<2x128xf32>
    %459 = arith.addf %457, %458 : vector<2x128xf32>
    %460 = vector.extract_strided_slice %459 {offsets = [0, 0], sizes = [2, 32], strides = [1, 1]} : vector<2x128xf32> to vector<2x32xf32>
    %cst_174 = arith.constant 0.000000e+00 : f32
    %461 = vector.broadcast %cst_174 : f32 to vector<2x32xf32>
    %462 = arith.subf %461, %460 : vector<2x32xf32>
    %463 = math.exp %462 : vector<2x32xf32>
    %cst_175 = arith.constant 1.000000e+00 : f32
    %464 = vector.broadcast %cst_175 : f32 to vector<2x32xf32>
    %465 = arith.addf %464, %463 : vector<2x32xf32>
    %cst_176 = arith.constant 1.000000e+00 : f32
    %466 = vector.broadcast %cst_176 : f32 to vector<2x32xf32>
    %467 = arith.divf %466, %465 : vector<2x32xf32>
    %468 = vector.extract_strided_slice %459 {offsets = [0, 32], sizes = [2, 32], strides = [1, 1]} : vector<2x128xf32> to vector<2x32xf32>
    %cst_177 = arith.constant 0.000000e+00 : f32
    %469 = vector.broadcast %cst_177 : f32 to vector<2x32xf32>
    %470 = arith.subf %469, %468 : vector<2x32xf32>
    %471 = math.exp %470 : vector<2x32xf32>
    %cst_178 = arith.constant 1.000000e+00 : f32
    %472 = vector.broadcast %cst_178 : f32 to vector<2x32xf32>
    %473 = arith.addf %472, %471 : vector<2x32xf32>
    %cst_179 = arith.constant 1.000000e+00 : f32
    %474 = vector.broadcast %cst_179 : f32 to vector<2x32xf32>
    %475 = arith.divf %474, %473 : vector<2x32xf32>
    %476 = vector.extract_strided_slice %459 {offsets = [0, 64], sizes = [2, 32], strides = [1, 1]} : vector<2x128xf32> to vector<2x32xf32>
    %477 = math.tanh %476 : vector<2x32xf32>
    %478 = vector.extract_strided_slice %459 {offsets = [0, 96], sizes = [2, 32], strides = [1, 1]} : vector<2x128xf32> to vector<2x32xf32>
    %cst_180 = arith.constant 0.000000e+00 : f32
    %479 = vector.broadcast %cst_180 : f32 to vector<2x32xf32>
    %480 = arith.subf %479, %478 : vector<2x32xf32>
    %481 = math.exp %480 : vector<2x32xf32>
    %cst_181 = arith.constant 1.000000e+00 : f32
    %482 = vector.broadcast %cst_181 : f32 to vector<2x32xf32>
    %483 = arith.addf %482, %481 : vector<2x32xf32>
    %cst_182 = arith.constant 1.000000e+00 : f32
    %484 = vector.broadcast %cst_182 : f32 to vector<2x32xf32>
    %485 = arith.divf %484, %483 : vector<2x32xf32>
    %486 = arith.mulf %475, %407 : vector<2x32xf32>
    %487 = arith.mulf %467, %477 : vector<2x32xf32>
    %488 = arith.addf %486, %487 : vector<2x32xf32>
    %489 = math.tanh %488 : vector<2x32xf32>
    %490 = arith.mulf %485, %489 : vector<2x32xf32>
    %491 = arith.index_cast %454 : i32 to index
    %c0_183 = arith.constant 0 : index
    %c0_184 = arith.constant 0 : index
    %492 = vector.load %arg6[%491, %c0_183, %c0_184] : memref<8x2x32xf32, #tpu.memory_space<vmem>>, vector<1x2x32xf32>
    %493 = vector.shape_cast %492 : vector<1x2x32xf32> to vector<2x32xf32>
    %494 = vector.shape_cast %490 : vector<2x32xf32> to vector<1x2x32xf32>
    tpu.vector_store %arg6[%491, %c0_183, %c0_184], %494 {strides = array<i32>} : memref<8x2x32xf32, #tpu.memory_space<vmem>>, vector<1x2x32xf32>,
    %c6_i32 = arith.constant 6 : i32
    %495 = arith.index_cast %c6_i32 : i32 to index
    %c0_185 = arith.constant 0 : index
    %c0_186 = arith.constant 0 : index
    %496 = vector.load %arg1[%495, %c0_185, %c0_186] : memref<8x2x128xf32, #tpu.memory_space<vmem>>, vector<1x2x128xf32>
    %497 = vector.shape_cast %496 : vector<1x2x128xf32> to vector<2x128xf32>
    %cst_187 = arith.constant dense<0.000000e+00> : vector<2x128xf32>
    %498 = tpu.matmul %449, %3, %cst_187 {dimension_numbers = #tpu.dot_dimension_numbers<[1], [0], [0], [1], [0, 0, 1, 1], [], []>} : vector<2x32xf32>, vector<32x128xf32>, vector<2x128xf32> -> vector<2x128xf32>
    %499 = arith.addf %497, %498 : vector<2x128xf32>
    %500 = vector.extract_strided_slice %499 {offsets = [0, 0], sizes = [2, 32], strides = [1, 1]} : vector<2x128xf32> to vector<2x32xf32>
    %cst_188 = arith.constant 0.000000e+00 : f32
    %501 = vector.broadcast %cst_188 : f32 to vector<2x32xf32>
    %502 = arith.subf %501, %500 : vector<2x32xf32>
    %503 = math.exp %502 : vector<2x32xf32>
    %cst_189 = arith.constant 1.000000e+00 : f32
    %504 = vector.broadcast %cst_189 : f32 to vector<2x32xf32>
    %505 = arith.addf %504, %503 : vector<2x32xf32>
    %cst_190 = arith.constant 1.000000e+00 : f32
    %506 = vector.broadcast %cst_190 : f32 to vector<2x32xf32>
    %507 = arith.divf %506, %505 : vector<2x32xf32>
    %508 = vector.extract_strided_slice %499 {offsets = [0, 32], sizes = [2, 32], strides = [1, 1]} : vector<2x128xf32> to vector<2x32xf32>
    %cst_191 = arith.constant 0.000000e+00 : f32
    %509 = vector.broadcast %cst_191 : f32 to vector<2x32xf32>
    %510 = arith.subf %509, %508 : vector<2x32xf32>
    %511 = math.exp %510 : vector<2x32xf32>
    %cst_192 = arith.constant 1.000000e+00 : f32
    %512 = vector.broadcast %cst_192 : f32 to vector<2x32xf32>
    %513 = arith.addf %512, %511 : vector<2x32xf32>
    %cst_193 = arith.constant 1.000000e+00 : f32
    %514 = vector.broadcast %cst_193 : f32 to vector<2x32xf32>
    %515 = arith.divf %514, %513 : vector<2x32xf32>
    %516 = vector.extract_strided_slice %499 {offsets = [0, 64], sizes = [2, 32], strides = [1, 1]} : vector<2x128xf32> to vector<2x32xf32>
    %517 = math.tanh %516 : vector<2x32xf32>
    %518 = vector.extract_strided_slice %499 {offsets = [0, 96], sizes = [2, 32], strides = [1, 1]} : vector<2x128xf32> to vector<2x32xf32>
    %cst_194 = arith.constant 0.000000e+00 : f32
    %519 = vector.broadcast %cst_194 : f32 to vector<2x32xf32>
    %520 = arith.subf %519, %518 : vector<2x32xf32>
    %521 = math.exp %520 : vector<2x32xf32>
    %cst_195 = arith.constant 1.000000e+00 : f32
    %522 = vector.broadcast %cst_195 : f32 to vector<2x32xf32>
    %523 = arith.addf %522, %521 : vector<2x32xf32>
    %cst_196 = arith.constant 1.000000e+00 : f32
    %524 = vector.broadcast %cst_196 : f32 to vector<2x32xf32>
    %525 = arith.divf %524, %523 : vector<2x32xf32>
    %526 = arith.mulf %515, %447 : vector<2x32xf32>
    %527 = arith.mulf %507, %517 : vector<2x32xf32>
    %528 = arith.addf %526, %527 : vector<2x32xf32>
    %529 = math.tanh %528 : vector<2x32xf32>
    %530 = arith.mulf %525, %529 : vector<2x32xf32>
    %531 = arith.index_cast %c6_i32 : i32 to index
    %c0_197 = arith.constant 0 : index
    %c0_198 = arith.constant 0 : index
    %532 = vector.load %arg5[%531, %c0_197, %c0_198] : memref<8x2x32xf32, #tpu.memory_space<vmem>>, vector<1x2x32xf32>
    %533 = vector.shape_cast %532 : vector<1x2x32xf32> to vector<2x32xf32>
    %534 = vector.shape_cast %530 : vector<2x32xf32> to vector<1x2x32xf32>
    tpu.vector_store %arg5[%531, %c0_197, %c0_198], %534 {strides = array<i32>} : memref<8x2x32xf32, #tpu.memory_space<vmem>>, vector<1x2x32xf32>,
    %c7_i32_199 = arith.constant 7 : i32
    %535 = arith.subi %c7_i32_199, %c6_i32 : i32
    %536 = arith.index_cast %535 : i32 to index
    %c0_200 = arith.constant 0 : index
    %c0_201 = arith.constant 0 : index
    %537 = vector.load %arg2[%536, %c0_200, %c0_201] : memref<8x2x128xf32, #tpu.memory_space<vmem>>, vector<1x2x128xf32>
    %538 = vector.shape_cast %537 : vector<1x2x128xf32> to vector<2x128xf32>
    %cst_202 = arith.constant dense<0.000000e+00> : vector<2x128xf32>
    %539 = tpu.matmul %490, %4, %cst_202 {dimension_numbers = #tpu.dot_dimension_numbers<[1], [0], [0], [1], [0, 0, 1, 1], [], []>} : vector<2x32xf32>, vector<32x128xf32>, vector<2x128xf32> -> vector<2x128xf32>
    %540 = arith.addf %538, %539 : vector<2x128xf32>
    %541 = vector.extract_strided_slice %540 {offsets = [0, 0], sizes = [2, 32], strides = [1, 1]} : vector<2x128xf32> to vector<2x32xf32>
    %cst_203 = arith.constant 0.000000e+00 : f32
    %542 = vector.broadcast %cst_203 : f32 to vector<2x32xf32>
    %543 = arith.subf %542, %541 : vector<2x32xf32>
    %544 = math.exp %543 : vector<2x32xf32>
    %cst_204 = arith.constant 1.000000e+00 : f32
    %545 = vector.broadcast %cst_204 : f32 to vector<2x32xf32>
    %546 = arith.addf %545, %544 : vector<2x32xf32>
    %cst_205 = arith.constant 1.000000e+00 : f32
    %547 = vector.broadcast %cst_205 : f32 to vector<2x32xf32>
    %548 = arith.divf %547, %546 : vector<2x32xf32>
    %549 = vector.extract_strided_slice %540 {offsets = [0, 32], sizes = [2, 32], strides = [1, 1]} : vector<2x128xf32> to vector<2x32xf32>
    %cst_206 = arith.constant 0.000000e+00 : f32
    %550 = vector.broadcast %cst_206 : f32 to vector<2x32xf32>
    %551 = arith.subf %550, %549 : vector<2x32xf32>
    %552 = math.exp %551 : vector<2x32xf32>
    %cst_207 = arith.constant 1.000000e+00 : f32
    %553 = vector.broadcast %cst_207 : f32 to vector<2x32xf32>
    %554 = arith.addf %553, %552 : vector<2x32xf32>
    %cst_208 = arith.constant 1.000000e+00 : f32
    %555 = vector.broadcast %cst_208 : f32 to vector<2x32xf32>
    %556 = arith.divf %555, %554 : vector<2x32xf32>
    %557 = vector.extract_strided_slice %540 {offsets = [0, 64], sizes = [2, 32], strides = [1, 1]} : vector<2x128xf32> to vector<2x32xf32>
    %558 = math.tanh %557 : vector<2x32xf32>
    %559 = vector.extract_strided_slice %540 {offsets = [0, 96], sizes = [2, 32], strides = [1, 1]} : vector<2x128xf32> to vector<2x32xf32>
    %cst_209 = arith.constant 0.000000e+00 : f32
    %560 = vector.broadcast %cst_209 : f32 to vector<2x32xf32>
    %561 = arith.subf %560, %559 : vector<2x32xf32>
    %562 = math.exp %561 : vector<2x32xf32>
    %cst_210 = arith.constant 1.000000e+00 : f32
    %563 = vector.broadcast %cst_210 : f32 to vector<2x32xf32>
    %564 = arith.addf %563, %562 : vector<2x32xf32>
    %cst_211 = arith.constant 1.000000e+00 : f32
    %565 = vector.broadcast %cst_211 : f32 to vector<2x32xf32>
    %566 = arith.divf %565, %564 : vector<2x32xf32>
    %567 = arith.mulf %556, %488 : vector<2x32xf32>
    %568 = arith.mulf %548, %558 : vector<2x32xf32>
    %569 = arith.addf %567, %568 : vector<2x32xf32>
    %570 = math.tanh %569 : vector<2x32xf32>
    %571 = arith.mulf %566, %570 : vector<2x32xf32>
    %572 = arith.index_cast %535 : i32 to index
    %c0_212 = arith.constant 0 : index
    %c0_213 = arith.constant 0 : index
    %573 = vector.load %arg6[%572, %c0_212, %c0_213] : memref<8x2x32xf32, #tpu.memory_space<vmem>>, vector<1x2x32xf32>
    %574 = vector.shape_cast %573 : vector<1x2x32xf32> to vector<2x32xf32>
    %575 = vector.shape_cast %571 : vector<2x32xf32> to vector<1x2x32xf32>
    tpu.vector_store %arg6[%572, %c0_212, %c0_213], %575 {strides = array<i32>} : memref<8x2x32xf32, #tpu.memory_space<vmem>>, vector<1x2x32xf32>,
    %c7_i32_214 = arith.constant 7 : i32
    %576 = arith.index_cast %c7_i32_214 : i32 to index
    %c0_215 = arith.constant 0 : index
    %c0_216 = arith.constant 0 : index
    %577 = vector.load %arg1[%576, %c0_215, %c0_216] : memref<8x2x128xf32, #tpu.memory_space<vmem>>, vector<1x2x128xf32>
    %578 = vector.shape_cast %577 : vector<1x2x128xf32> to vector<2x128xf32>
    %cst_217 = arith.constant dense<0.000000e+00> : vector<2x128xf32>
    %579 = tpu.matmul %530, %3, %cst_217 {dimension_numbers = #tpu.dot_dimension_numbers<[1], [0], [0], [1], [0, 0, 1, 1], [], []>} : vector<2x32xf32>, vector<32x128xf32>, vector<2x128xf32> -> vector<2x128xf32>
    %580 = arith.addf %578, %579 : vector<2x128xf32>
    %581 = vector.extract_strided_slice %580 {offsets = [0, 0], sizes = [2, 32], strides = [1, 1]} : vector<2x128xf32> to vector<2x32xf32>
    %cst_218 = arith.constant 0.000000e+00 : f32
    %582 = vector.broadcast %cst_218 : f32 to vector<2x32xf32>
    %583 = arith.subf %582, %581 : vector<2x32xf32>
    %584 = math.exp %583 : vector<2x32xf32>
    %cst_219 = arith.constant 1.000000e+00 : f32
    %585 = vector.broadcast %cst_219 : f32 to vector<2x32xf32>
    %586 = arith.addf %585, %584 : vector<2x32xf32>
    %cst_220 = arith.constant 1.000000e+00 : f32
    %587 = vector.broadcast %cst_220 : f32 to vector<2x32xf32>
    %588 = arith.divf %587, %586 : vector<2x32xf32>
    %589 = vector.extract_strided_slice %580 {offsets = [0, 32], sizes = [2, 32], strides = [1, 1]} : vector<2x128xf32> to vector<2x32xf32>
    %cst_221 = arith.constant 0.000000e+00 : f32
    %590 = vector.broadcast %cst_221 : f32 to vector<2x32xf32>
    %591 = arith.subf %590, %589 : vector<2x32xf32>
    %592 = math.exp %591 : vector<2x32xf32>
    %cst_222 = arith.constant 1.000000e+00 : f32
    %593 = vector.broadcast %cst_222 : f32 to vector<2x32xf32>
    %594 = arith.addf %593, %592 : vector<2x32xf32>
    %cst_223 = arith.constant 1.000000e+00 : f32
    %595 = vector.broadcast %cst_223 : f32 to vector<2x32xf32>
    %596 = arith.divf %595, %594 : vector<2x32xf32>
    %597 = vector.extract_strided_slice %580 {offsets = [0, 64], sizes = [2, 32], strides = [1, 1]} : vector<2x128xf32> to vector<2x32xf32>
    %598 = math.tanh %597 : vector<2x32xf32>
    %599 = vector.extract_strided_slice %580 {offsets = [0, 96], sizes = [2, 32], strides = [1, 1]} : vector<2x128xf32> to vector<2x32xf32>
    %cst_224 = arith.constant 0.000000e+00 : f32
    %600 = vector.broadcast %cst_224 : f32 to vector<2x32xf32>
    %601 = arith.subf %600, %599 : vector<2x32xf32>
    %602 = math.exp %601 : vector<2x32xf32>
    %cst_225 = arith.constant 1.000000e+00 : f32
    %603 = vector.broadcast %cst_225 : f32 to vector<2x32xf32>
    %604 = arith.addf %603, %602 : vector<2x32xf32>
    %cst_226 = arith.constant 1.000000e+00 : f32
    %605 = vector.broadcast %cst_226 : f32 to vector<2x32xf32>
    %606 = arith.divf %605, %604 : vector<2x32xf32>
    %607 = arith.mulf %596, %528 : vector<2x32xf32>
    %608 = arith.mulf %588, %598 : vector<2x32xf32>
    %609 = arith.addf %607, %608 : vector<2x32xf32>
    %610 = math.tanh %609 : vector<2x32xf32>
    %611 = arith.mulf %606, %610 : vector<2x32xf32>
    %612 = arith.index_cast %c7_i32_214 : i32 to index
    %c0_227 = arith.constant 0 : index
    %c0_228 = arith.constant 0 : index
    %613 = vector.load %arg5[%612, %c0_227, %c0_228] : memref<8x2x32xf32, #tpu.memory_space<vmem>>, vector<1x2x32xf32>
    %614 = vector.shape_cast %613 : vector<1x2x32xf32> to vector<2x32xf32>
    %615 = vector.shape_cast %611 : vector<2x32xf32> to vector<1x2x32xf32>
    tpu.vector_store %arg5[%612, %c0_227, %c0_228], %615 {strides = array<i32>} : memref<8x2x32xf32, #tpu.memory_space<vmem>>, vector<1x2x32xf32>,
    %c7_i32_229 = arith.constant 7 : i32
    %616 = arith.subi %c7_i32_229, %c7_i32_214 : i32
    %617 = arith.index_cast %616 : i32 to index
    %c0_230 = arith.constant 0 : index
    %c0_231 = arith.constant 0 : index
    %618 = vector.load %arg2[%617, %c0_230, %c0_231] : memref<8x2x128xf32, #tpu.memory_space<vmem>>, vector<1x2x128xf32>
    %619 = vector.shape_cast %618 : vector<1x2x128xf32> to vector<2x128xf32>
    %cst_232 = arith.constant dense<0.000000e+00> : vector<2x128xf32>
    %620 = tpu.matmul %571, %4, %cst_232 {dimension_numbers = #tpu.dot_dimension_numbers<[1], [0], [0], [1], [0, 0, 1, 1], [], []>} : vector<2x32xf32>, vector<32x128xf32>, vector<2x128xf32> -> vector<2x128xf32>
    %621 = arith.addf %619, %620 : vector<2x128xf32>
    %622 = vector.extract_strided_slice %621 {offsets = [0, 0], sizes = [2, 32], strides = [1, 1]} : vector<2x128xf32> to vector<2x32xf32>
    %cst_233 = arith.constant 0.000000e+00 : f32
    %623 = vector.broadcast %cst_233 : f32 to vector<2x32xf32>
    %624 = arith.subf %623, %622 : vector<2x32xf32>
    %625 = math.exp %624 : vector<2x32xf32>
    %cst_234 = arith.constant 1.000000e+00 : f32
    %626 = vector.broadcast %cst_234 : f32 to vector<2x32xf32>
    %627 = arith.addf %626, %625 : vector<2x32xf32>
    %cst_235 = arith.constant 1.000000e+00 : f32
    %628 = vector.broadcast %cst_235 : f32 to vector<2x32xf32>
    %629 = arith.divf %628, %627 : vector<2x32xf32>
    %630 = vector.extract_strided_slice %621 {offsets = [0, 32], sizes = [2, 32], strides = [1, 1]} : vector<2x128xf32> to vector<2x32xf32>
    %cst_236 = arith.constant 0.000000e+00 : f32
    %631 = vector.broadcast %cst_236 : f32 to vector<2x32xf32>
    %632 = arith.subf %631, %630 : vector<2x32xf32>
    %633 = math.exp %632 : vector<2x32xf32>
    %cst_237 = arith.constant 1.000000e+00 : f32
    %634 = vector.broadcast %cst_237 : f32 to vector<2x32xf32>
    %635 = arith.addf %634, %633 : vector<2x32xf32>
    %cst_238 = arith.constant 1.000000e+00 : f32
    %636 = vector.broadcast %cst_238 : f32 to vector<2x32xf32>
    %637 = arith.divf %636, %635 : vector<2x32xf32>
    %638 = vector.extract_strided_slice %621 {offsets = [0, 64], sizes = [2, 32], strides = [1, 1]} : vector<2x128xf32> to vector<2x32xf32>
    %639 = math.tanh %638 : vector<2x32xf32>
    %640 = vector.extract_strided_slice %621 {offsets = [0, 96], sizes = [2, 32], strides = [1, 1]} : vector<2x128xf32> to vector<2x32xf32>
    %cst_239 = arith.constant 0.000000e+00 : f32
    %641 = vector.broadcast %cst_239 : f32 to vector<2x32xf32>
    %642 = arith.subf %641, %640 : vector<2x32xf32>
    %643 = math.exp %642 : vector<2x32xf32>
    %cst_240 = arith.constant 1.000000e+00 : f32
    %644 = vector.broadcast %cst_240 : f32 to vector<2x32xf32>
    %645 = arith.addf %644, %643 : vector<2x32xf32>
    %cst_241 = arith.constant 1.000000e+00 : f32
    %646 = vector.broadcast %cst_241 : f32 to vector<2x32xf32>
    %647 = arith.divf %646, %645 : vector<2x32xf32>
    %648 = arith.mulf %637, %569 : vector<2x32xf32>
    %649 = arith.mulf %629, %639 : vector<2x32xf32>
    %650 = arith.addf %648, %649 : vector<2x32xf32>
    %651 = math.tanh %650 : vector<2x32xf32>
    %652 = arith.mulf %647, %651 : vector<2x32xf32>
    %653 = arith.index_cast %616 : i32 to index
    %c0_242 = arith.constant 0 : index
    %c0_243 = arith.constant 0 : index
    %654 = vector.load %arg6[%653, %c0_242, %c0_243] : memref<8x2x32xf32, #tpu.memory_space<vmem>>, vector<1x2x32xf32>
    %655 = vector.shape_cast %654 : vector<1x2x32xf32> to vector<2x32xf32>
    %656 = vector.shape_cast %652 : vector<2x32xf32> to vector<1x2x32xf32>
    tpu.vector_store %arg6[%653, %c0_242, %c0_243], %656 {strides = array<i32>} : memref<8x2x32xf32, #tpu.memory_space<vmem>>, vector<1x2x32xf32>,
    %c8_i32 = arith.constant 8 : i32
    %c0_244 = arith.constant 0 : index
    %c0_245 = arith.constant 0 : index
    %657 = vector.load %arg7[%c0_244, %c0_245] : memref<2x32xf32, #tpu.memory_space<vmem>>, vector<2x32xf32>
    tpu.vector_store %arg7[%c0_244, %c0_245], %611 {strides = array<i32>} : memref<2x32xf32, #tpu.memory_space<vmem>>, vector<2x32xf32>,
    %c0_246 = arith.constant 0 : index
    %c0_247 = arith.constant 0 : index
    %658 = vector.load %arg8[%c0_246, %c0_247] : memref<2x32xf32, #tpu.memory_space<vmem>>, vector<2x32xf32>
    tpu.vector_store %arg8[%c0_246, %c0_247], %609 {strides = array<i32>} : memref<2x32xf32, #tpu.memory_space<vmem>>, vector<2x32xf32>,
    %c0_248 = arith.constant 0 : index
    %c0_249 = arith.constant 0 : index
    %659 = vector.load %arg9[%c0_248, %c0_249] : memref<2x32xf32, #tpu.memory_space<vmem>>, vector<2x32xf32>
    tpu.vector_store %arg9[%c0_248, %c0_249], %652 {strides = array<i32>} : memref<2x32xf32, #tpu.memory_space<vmem>>, vector<2x32xf32>,
    %c0_250 = arith.constant 0 : index
    %c0_251 = arith.constant 0 : index
    %660 = vector.load %arg10[%c0_250, %c0_251] : memref<2x32xf32, #tpu.memory_space<vmem>>, vector<2x32xf32>
    tpu.vector_store %arg10[%c0_250, %c0_251], %650 {strides = array<i32>} : memref<2x32xf32, #tpu.memory_space<vmem>>, vector<2x32xf32>,
    return
  }
  func.func @transform_0(%arg0: i32) -> (i32, i32, i32) {
    %c0_i32 = arith.constant 0 : i32
    %c0_i32_0 = arith.constant 0 : i32
    %c0_i32_1 = arith.constant 0 : i32
    return %arg0, %c0_i32, %c0_i32_0 : i32, i32, i32
  }
  func.func @transform_1(%arg0: i32) -> (i32, i32, i32) {
    %c0_i32 = arith.constant 0 : i32
    %0 = arith.subi %c0_i32, %arg0 : i32
    %c0_i32_0 = arith.constant 0 : i32
    %c0_i32_1 = arith.constant 0 : i32
    %c0_i32_2 = arith.constant 0 : i32
    return %0, %c0_i32_0, %c0_i32_1 : i32, i32, i32
  }
  func.func @transform_2(%arg0: i32) -> (i32, i32) {
    %c0_i32 = arith.constant 0 : i32
    %c0_i32_0 = arith.constant 0 : i32
    %c0_i32_1 = arith.constant 0 : i32
    return %c0_i32, %c0_i32_0 : i32, i32
  }
  func.func @transform_3(%arg0: i32) -> (i32, i32) {
    %c0_i32 = arith.constant 0 : i32
    %c0_i32_0 = arith.constant 0 : i32
    %c0_i32_1 = arith.constant 0 : i32
    return %c0_i32, %c0_i32_0 : i32, i32
  }
  func.func @transform_4(%arg0: i32) -> (i32, i32, i32) {
    %c0_i32 = arith.constant 0 : i32
    %c0_i32_0 = arith.constant 0 : i32
    %c0_i32_1 = arith.constant 0 : i32
    return %arg0, %c0_i32, %c0_i32_0 : i32, i32, i32
  }
  func.func @transform_5(%arg0: i32) -> (i32, i32, i32) {
    %c0_i32 = arith.constant 0 : i32
    %0 = arith.subi %c0_i32, %arg0 : i32
    %c0_i32_0 = arith.constant 0 : i32
    %c0_i32_1 = arith.constant 0 : i32
    %c0_i32_2 = arith.constant 0 : i32
    return %0, %c0_i32_0, %c0_i32_1 : i32, i32, i32
  }
}

</mosaic_0001>

<bundles_post_ra>
// kernel: bilstm_forward.6
= control target key start
LH: loop header
LB: loop body
LE: loop exit
PB: predicated region body
PF: predicated region fallthrough
CT: control target
= control target key end

     0   :  { %vm40_vm0 = vcmask 523264   ;;  %s219_s1 = inlined_call_operand.vmem [shape: f32[64,256], index: 1, kind: input, shape index: {}]   ;;  %s220_s0 = inlined_call_operand.vmem [shape: f32[16,64], index: 0, kind: input, shape index: {}]   ;;  %s221_s2 = inlined_call_operand.vmem [shape: f32[1,256], index: 2, kind: input, shape index: {}]   ;;  %s222_s3 = inlined_call_operand.vmem [shape: f32[16,128], index: 3, kind: output, shape index: {0}]   ;;  %s223_s4 = inlined_call_operand.vmem [shape: f32[16,128], index: 4, kind: output, shape index: {1}]  }
   0x1   :  { %v32_v0 = vld [vmem:[%s219_s1 + $0x70] sm:$0xff]  ;;  %v33_v1 = vld [vmem:[%s219_s1 + $0x78] sm:$0xff]  ;;  %v30_v2 = vld [vmem:[%s219_s1 + $0x60] sm:$0xff] }
   0x2   :  { %109 = vmatpush.msra.mxu2 %v32_v0  ;;  %117 = vmatpush.msra.mxu3 %v33_v1  ;;  %v31_v3 = vld [vmem:[%s219_s1 + $0x68] sm:$0xff]  ;;  %v28_v4 = vld [vmem:[%s219_s1 + $0x50] sm:$0xff]  ;;  %v29_v5 = vld [vmem:[%s219_s1 + $0x58] sm:$0xff] }
   0x3   :  { %55 = vmatpush.msra.mxu0 %v32_v0  ;;  %78 = vmatpush.msra.mxu1 %v33_v1  ;;  %v26_v6 = vld [vmem:[%s219_s1 + $0x40] sm:$0xff]  ;;  %v27_v7 = vld [vmem:[%s219_s1 + $0x48] sm:$0xff]  ;;  %v24_v8 = vld [vmem:[%s219_s1 + $0x30] sm:$0xff] }
   0x4   :  { %110 = vmatpush.msra.mxu2 %v30_v2  ;;  %118 = vmatpush.msra.mxu3 %v31_v3  ;;  %v25_v9 = vld [vmem:[%s219_s1 + $0x38] sm:$0xff]  ;;  %v22_v10 = vld [vmem:[%s219_s1 + $0x20] sm:$0xff]  ;;  %v23_v11 = vld [vmem:[%s219_s1 + $0x28] sm:$0xff] }
   0x5   :  { %56 = vmatpush.msra.mxu0 %v30_v2  ;;  %79 = vmatpush.msra.mxu1 %v31_v3  ;;  %v20_v12 = vld [vmem:[%s219_s1 + $0x10] sm:$0xff]  ;;  %v21_v13 = vld [vmem:[%s219_s1 + $0x18] sm:$0xff]  ;;  %v18_v14 = vld [vmem:[%s219_s1] sm:$0xff] }
   0x6   :  { %111 = vmatpush.msra.mxu2 %v28_v4  ;;  %119 = vmatpush.msra.mxu3 %v29_v5  ;;  %v19_v15 = vld [vmem:[%s219_s1 + $0x8] sm:$0xff]  ;;  %v16_v17 = vld [vmem:[%s220_s0] sm:$0xff] }
   0x7   :  { %57 = vmatpush.msra.mxu0 %v28_v4  ;;  %80 = vmatpush.msra.mxu1 %v29_v5  ;;  %v17_v16 = vld [vmem:[%s220_s0 + $0x8] sm:$0xff]  ;;  %v34_v18 = vld [vmem:[%s221_s2] sm:$0x3] }
   0x8   :  { %112 = vmatpush.msra.mxu2 %v26_v6  ;;  %120 = vmatpush.msra.mxu3 %v27_v7  ;;  %v36_v19 = vperm.slane %v34_v18, 0  ;;  %v37_v20 = vperm.slane %v34_v18, 1 }
   0x9   :  { %58 = vmatpush.msra.mxu0 %v26_v6  ;;  %81 = vmatpush.msra.mxu1 %v27_v7 }
   0xa   :  { %113 = vmatpush.msra.mxu2 %v24_v8  ;;  %121 = vmatpush.msra.mxu3 %v25_v9 }
   0xb   :  { %59 = vmatpush.msra.mxu0 %v24_v8  ;;  %82 = vmatpush.msra.mxu1 %v25_v9 }
   0xc   :  { %114 = vmatpush.msra.mxu2 %v22_v10  ;;  %122 = vmatpush.msra.mxu3 %v23_v11 }
   0xd   :  { %60 = vmatpush.msra.mxu0 %v22_v10  ;;  %83 = vmatpush.msra.mxu1 %v23_v11 }
   0xe   :  { %115 = vmatpush.msra.mxu2 %v20_v12  ;;  %123 = vmatpush.msra.mxu3 %v21_v13 }
   0xf   :  { %61 = vmatpush.msra.mxu0 %v20_v12  ;;  %84 = vmatpush.msra.mxu1 %v21_v13 }
  0x10   :  { %116 = vmatpush.msra.mxu2 %v18_v14  ;;  %124 = vmatpush.msra.mxu3 %v19_v15 }
  0x11   :  { %106 = vmatmul.msk.f32.vlgmr.msra.gmra.mxu2 %vm40_vm0, %v17_v16  ;;  %108 = vmatmul.msk.f32.vlgmr.msra.gmra.mxu3 %vm40_vm0, %v17_v16 }
  0x12   :  { %62 = vmatpush.msra.mxu0 %v18_v14  ;;  %85 = vmatpush.msra.mxu1 %v19_v15 }
  0x13   :  { %105 = vmatmul.msk.f32.vlgmr.msra.gmra.mxu0 %vm40_vm0, %v16_v17  ;;  %107 = vmatmul.msk.f32.vlgmr.msra.gmra.mxu1 %vm40_vm0, %v16_v17 }
  0x90   :  { %v64_v21 = vpop.f32.mrf.mxu0  ;;  %v87_v22 = vpop.f32.mrf.mxu1 }
  0x91   :  { %v65_v23 = vadd.f32 %v64_v21, %v36_v19  ;;  %v88_v24 = vadd.f32 %v87_v22, %v37_v20 }
  0x93   :  { %93 = vst [vmem:[%s222_s3] sm:$0xff] %v65_v23 }
  0x94   :  { %v67_v25 = vpop.f32.mrf.mxu2  ;;  %95 = vst [vmem:[%s223_s4] sm:$0xff] %v88_v24  ;;  %v90_v26 = vpop.f32.mrf.mxu3 }
  0x95   :  { %v68_v27 = vadd.f32 %v67_v25, %v36_v19  ;;  %v91_v28 = vadd.f32 %v90_v26, %v37_v20 }
  0x97   :  { %94 = vst [vmem:[%s222_s3 + $0x8] sm:$0xff] %v68_v27 }
  0x98   :  { %96 = vst [vmem:[%s223_s4 + $0x8] sm:$0xff] %v91_v28 }

// kernel: bilstm_forward.4
= control target key start
LH: loop header
LB: loop body
LE: loop exit
PB: predicated region body
PF: predicated region fallthrough
CT: control target
= control target key end

     0   :  { %vm28_vm0 = vcmask 130048   ;;  %s159_s1 = inlined_call_operand.vmem [shape: f32[16,256], index: 1, kind: input, shape index: {}]   ;;  %s160_s0 = inlined_call_operand.vmem [shape: f32[16,16], index: 0, kind: input, shape index: {}]   ;;  %s161_s2 = inlined_call_operand.vmem [shape: f32[1,256], index: 2, kind: input, shape index: {}]   ;;  %s162_s3 = inlined_call_operand.vmem [shape: f32[16,128], index: 3, kind: output, shape index: {0}]   ;;  %s163_s4 = inlined_call_operand.vmem [shape: f32[16,128], index: 4, kind: output, shape index: {1}]  }
   0x1   :  { %v20_v0 = vld [vmem:[%s159_s1 + $0x10] sm:$0xff]  ;;  %v21_v1 = vld [vmem:[%s159_s1 + $0x18] sm:$0xff]  ;;  %v18_v2 = vld [vmem:[%s159_s1] sm:$0xff] }
   0x2   :  { %97 = vmatpush.msra.mxu2 %v20_v0  ;;  %99 = vmatpush.msra.mxu3 %v21_v1  ;;  %v19_v3 = vld [vmem:[%s159_s1 + $0x8] sm:$0xff]  ;;  %v16_v5 = vld [vmem:[%s160_s0] sm:$0xff] }
   0x3   :  { %v17_v4 = vld [vmem:[%s160_s0 + $0x8] sm:$0xff]  ;;  %49 = vmatpush.msra.mxu0 %v20_v0  ;;  %72 = vmatpush.msra.mxu1 %v21_v1  ;;  %v22_v6 = vld [vmem:[%s161_s2] sm:$0x3] }
   0x4   :  { %98 = vmatpush.msra.mxu2 %v18_v2  ;;  %100 = vmatpush.msra.mxu3 %v19_v3  ;;  %v24_v7 = vperm.slane %v22_v6, 0  ;;  %v25_v8 = vperm.slane %v22_v6, 1 }
   0x5   :  { %94 = vmatmul.msk.f32.vlgmr.msra.gmra.mxu2 %vm28_vm0, %v17_v4  ;;  %96 = vmatmul.msk.f32.vlgmr.msra.gmra.mxu3 %vm28_vm0, %v17_v4 }
   0x6   :  { %50 = vmatpush.msra.mxu0 %v18_v2  ;;  %73 = vmatpush.msra.mxu1 %v19_v3 }
   0x7   :  { %93 = vmatmul.msk.f32.vlgmr.msra.gmra.mxu0 %vm28_vm0, %v16_v5  ;;  %95 = vmatmul.msk.f32.vlgmr.msra.gmra.mxu1 %vm28_vm0, %v16_v5 }
  0x84   :  { %v52_v9 = vpop.f32.mrf.mxu0  ;;  %v75_v10 = vpop.f32.mrf.mxu1 }
  0x85   :  { %v53_v11 = vadd.f32 %v52_v9, %v24_v7  ;;  %v76_v12 = vadd.f32 %v75_v10, %v25_v8 }
  0x87   :  { %81 = vst [vmem:[%s162_s3] sm:$0xff] %v53_v11 }
  0x88   :  { %v55_v13 = vpop.f32.mrf.mxu2  ;;  %83 = vst [vmem:[%s163_s4] sm:$0xff] %v76_v12  ;;  %v78_v14 = vpop.f32.mrf.mxu3 }
  0x89   :  { %v56_v15 = vadd.f32 %v55_v13, %v24_v7  ;;  %v79_v16 = vadd.f32 %v78_v14, %v25_v8 }
  0x8b   :  { %82 = vst [vmem:[%s162_s3 + $0x8] sm:$0xff] %v56_v15 }
  0x8c   :  { %84 = vst [vmem:[%s163_s4 + $0x8] sm:$0xff] %v79_v16 }

// kernel: bilstm_forward.5
= control target key start
LH: loop header
LB: loop body
LE: loop exit
PB: predicated region body
PF: predicated region fallthrough
CT: control target
= control target key end

     0   :  { %11 = vsyncpa [#allocation7], 0  ;;  %s1868_s0 = inlined_call_operand.vmem [shape: f32[8,2,128], index: 0, kind: input, shape index: {}]   ;;  %s1869_s1 = inlined_call_operand.vmem [shape: f32[8,2,128], index: 1, kind: input, shape index: {}]   ;;  %s1870_s2 = inlined_call_operand.hbm [shape: f32[32,128], index: 2, kind: input, shape index: {}]   ;;  %s1871_s3 = inlined_call_operand.hbm [shape: f32[32,128], index: 3, kind: input, shape index: {}]   ;;  %s1872_s4 = inlined_call_operand.vmem [shape: f32[8,2,32], index: 4, kind: output, shape index: {0}]   ;;  %s1873_s5 = inlined_call_operand.vmem [shape: f32[8,2,32], index: 5, kind: output, shape index: {1}]  }
   0x1   :  { %s29_s20 = sshll.u32 %s1870_s2, 4  ;;  %s30_s20 = int_to_ptr.hbm [resolvable:$true] %s29_s20 }
   0x2   :  { %12 = vsyncpa [#allocation9], 0  ;;  %s1486_s21 = smov [#allocation6]   ;;  %s42_s25 = sshll.u32 %s1871_s3, 4  ;;  %s43_s25 = int_to_ptr.hbm [resolvable:$true] %s42_s25 }
   0x3   :  { %s31_s22 = sshll.u32 %s1486_s21, 4  ;;  %s1487_s26 = smov 128   ;;  %s32_s22 = int_to_ptr.vmem [resolvable:$true] %s31_s22 }
   0x4   :  { %s1488_s27 = smov 8   ;;  %s1489_s28 = smov [#allocation8]  }
   0x5   :  { %37 = dma.hbm_to_vmem [thread:$0]  %s30_s20, 512, %s32_s22, [#allocation7], %s1487_s26, %s1487_s26, %s1488_s27  }
   0x6   :  { %s44_s29 = sshll.u32 %s1489_s28, 4  ;;  %s45_s29 = int_to_ptr.vmem [resolvable:$true] %s44_s29 }
   0x7   :  { %50 = dma.hbm_to_vmem [thread:$0]  %s43_s25, 512, %s45_s29, [#allocation9], %s1487_s26, %s1487_s26, %s1488_s27  }
   0x8   :  { %1482 = dma.done.wait [#allocation7], 512  }
   0x9   :  { %1483 = vsyncadd [#allocation7], 4294966784 }
   0xa   :  { %1484 = dma.done.wait [#allocation9], 512  }
   0xb   :  { %1485 = vsyncadd [#allocation9], 4294966784  ;;  %vm91_vm0 = vcmask 254976   ;;  %v1490_v0 = vmov 0.0   ;;  %v1534_v1 = vld [vmem:[#allocation6 + $0x18] sm:$0xff]  ;;  %v1538_v3 = vld [vmem:[#allocation6 + $0x10] sm:$0xff] }
   0xc   :  { %92 = vst.msk [vmem:[#allocation2] sm:$0x3] %vm91_vm0, %v1490_v0  ;;  %v1536_v2 = vld [vmem:[#allocation8 + $0x18] sm:$0xff]  ;;  %125 = vmatpush.msra.mxu0 %v1534_v1  ;;  %v1542_v4 = vld [vmem:[#allocation8 + $0x10] sm:$0xff]  ;;  %v1544_v5 = vld [vmem:[#allocation6 + $0x8] sm:$0xff]  ;;  %270 = vmatpush.msra.mxu2 %v1534_v1  ;;  %s1491_s2 = smov 32  }
   0xd   :  { %93 = vst.msk [vmem:[#allocation3] sm:$0x3] %vm91_vm0, %v1490_v0  ;;  %198 = vmatpush.msra.mxu1 %v1536_v2  ;;  %v1546_v6 = vld [vmem:[#allocation8 + $0x8] sm:$0xff]  ;;  %338 = vmatpush.msra.mxu3 %v1536_v2  ;;  %v1552_v8 = vld [vmem:[#allocation6] sm:$0xff]  ;;  %vm109_vm1 = vcmask 261120   ;;  %s1492_s8 = smov 64  }
   0xe   :  { %94 = vst.msk [vmem:[#allocation4] sm:$0x3] %vm91_vm0, %v1490_v0  ;;  %126 = vmatpush.msra.mxu0 %v1538_v3  ;;  %v1554_v9 = vld [vmem:[#allocation8] sm:$0xff]  ;;  %271 = vmatpush.msra.mxu2 %v1538_v3  ;;  %v108_v13 = vld [vmem:[%s1868_s0] sm:$0x3] }
   0xf   :  { %95 = vst.msk [vmem:[#allocation5] sm:$0x3] %vm91_vm0, %v1490_v0  ;;  %199 = vmatpush.msra.mxu1 %v1542_v4  ;;  %339 = vmatpush.msra.mxu3 %v1542_v4  ;;  %v1255_v16 = vld [vmem:[%s1869_s1 + $0xe] sm:$0x3] }
  0x10   :  { %127 = vmatpush.msra.mxu0 %v1544_v5  ;;  %272 = vmatpush.msra.mxu2 %v1544_v5 }
  0x11   :  { %200 = vmatpush.msra.mxu1 %v1546_v6  ;;  %340 = vmatpush.msra.mxu3 %v1546_v6 }
  0x12   :  { %128 = vmatpush.msra.mxu0 %v1552_v8  ;;  %273 = vmatpush.msra.mxu2 %v1552_v8 }
  0x13   :  { %v104_v10 = vld [vmem:[#allocation2] sm:$0x3]  ;;  %201 = vmatpush.msra.mxu1 %v1554_v9  ;;  %341 = vmatpush.msra.mxu3 %v1554_v9 }
  0x14   :  { %v105_v7 = vld [vmem:[#allocation3] sm:$0x3]  ;;  %1254 = vmatmul.msk.f32.vlgmr.msra.gmra.mxu0 %vm109_vm1, %v104_v10  ;;  %542 = vmatpush.msrb.mxu2 %v1534_v1 }
  0x15   :  { %155 = vrot.lane.b32.xlu1 %v105_v7, %s1491_s2  ;;  %v106_v11 = vld [vmem:[#allocation4] sm:$0x3]  ;;  %406 = vmatpush.msrb.mxu0 %v1534_v1 }
  0x16   :  { %1256 = vmatmul.msk.f32.vlgmr.msra.gmra.mxu1 %vm109_vm1, %v106_v11  ;;  %v107_v12 = vld [vmem:[#allocation5] sm:$0x3]  ;;  %543 = vmatpush.msrb.mxu2 %v1538_v3 }
  0x17   :  { %474 = vmatpush.msrb.mxu1 %v1536_v2  ;;  %407 = vmatpush.msrb.mxu0 %v1538_v3 }
  0x18   :  { %610 = vmatpush.msrb.mxu3 %v1536_v2  ;;  %544 = vmatpush.msrb.mxu2 %v1544_v5 }
  0x19   :  { %475 = vmatpush.msrb.mxu1 %v1542_v4  ;;  %408 = vmatpush.msrb.mxu0 %v1544_v5 }
  0x1a   :  { %611 = vmatpush.msrb.mxu3 %v1542_v4  ;;  %545 = vmatpush.msrb.mxu2 %v1552_v8 }
  0x1b   :  { %476 = vmatpush.msrb.mxu1 %v1546_v6  ;;  %409 = vmatpush.msrb.mxu0 %v1552_v8 }
  0x1c   :  { %612 = vmatpush.msrb.mxu3 %v1546_v6 }
  0x1d   :  { %228 = vrot.lane.b32.xlu1 %v107_v12, %s1491_s2  ;;  %477 = vmatpush.msrb.mxu1 %v1554_v9 }
  0x1e   :  { %678 = vmatpush.msra.mxu0 %v1534_v1  ;;  %613 = vmatpush.msrb.mxu3 %v1554_v9 }
  0x1f   :  { %746 = vmatpush.msra.mxu1 %v1536_v2 }
  0x20   :  { %679 = vmatpush.msra.mxu0 %v1538_v3 }
  0x21   :  { %747 = vmatpush.msra.mxu1 %v1542_v4 }
  0x22   :  { %680 = vmatpush.msra.mxu0 %v1544_v5 }
  0x23   :  { %748 = vmatpush.msra.mxu1 %v1546_v6 }
  0x24   :  { %681 = vmatpush.msra.mxu0 %v1552_v8 }
  0x25   :  { %749 = vmatpush.msra.mxu1 %v1554_v9 }
  0x87   :  { %v156_v53 = vpop.permute.xlu1 %155 }
  0x8f   :  { %v229_v57 = vpop.permute.xlu1 %228 }
  0x91   :  { %v130_v14 = vpop.f32.mrf.mxu0 }
  0x92   :  { %v133_v15 = vadd.f32 %v130_v14, %v108_v13  ;;  %v1258_v13 = vld [vmem:[%s1868_s0 + $0x2] sm:$0x3] }
  0x93   :  { %v203_v17 = vpop.f32.mrf.mxu1 }
  0x94   :  { %1306 = vtanh.f32 %v133_v15  ;;  %v206_v18 = vadd.f32 %v1255_v16, %v203_v17  ;;  %v134_v21 = vsub.f32 0.0, %v133_v15  ;;  %v1261_v17 = vld [vmem:[%s1869_s1 + $0xc] sm:$0x3] }
  0x96   :  { %1308 = vtanh.f32 %v206_v18  ;;  %v135_v22 = vmul.f32 1.442695, %v134_v21  ;;  %v207_v23 = vsub.f32 0.0, %v206_v18 }
  0x98   :  { %1310 = vpow2.f32 %v135_v22  ;;  %v208_v24 = vmul.f32 1.442695, %v207_v23 }
  0x9a   :  { %v1307_v19 = vpop.eup %1306  ;;  %1312 = vpow2.f32 %v208_v24 }
  0x9b   :  { %160 = vrot.lane.b32.xlu0 %v1307_v19, %s1492_s8 }
  0x9c   :  { %v1309_v20 = vpop.eup %1308 }
  0x9e   :  { %v1311_v25 = vpop.eup %1310 }
  0x9f   :  { %v137_v26 = vadd.f32 1.0, %v1311_v25 }
  0xa0   :  { %v1313_v27 = vpop.eup %1312 }
  0xa1   :  { %1314 = vrcp.f32 %v137_v26  ;;  %v210_v28 = vadd.f32 1.0, %v1313_v27  ;;  %v149_v37 = vand.u32 2147483648, %v137_v26  ;;  %vm143_vm3 = vweird.f32 %v137_v26 }
  0xa2   :  { %v147_v38 = vand.u32 2147483647, %v137_v26 }
  0xa3   :  { %233 = vrot.lane.b32.xlu0 %v1309_v20, %s1492_s8  ;;  %1316 = vrcp.f32 %v210_v28  ;;  %v150_v41 = vor.u32 1.1754944e-38, %v149_v37  ;;  %vm216_vm6 = vweird.f32 %v210_v28  ;;  %v222_v46 = vand.u32 2147483648, %v210_v28 }
  0xa4   :  { %vm148_vm5 = vcmp.eq.f32.partialorder %v147_v38, 8.507059e+37  ;;  %v220_v47 = vand.u32 2147483647, %v210_v28 }
  0xa5   :  { %v223_v49 = vor.u32 1.1754944e-38, %v222_v46 }
  0xa6   :  { %vm221_vm9 = vcmp.eq.f32.partialorder %v220_v47, 8.507059e+37 }
  0xa7   :  { %v1315_v29 = vpop.eup %1314 }
  0xa8   :  { %v139_v30 = vmul.f32 %v1315_v29, %v137_v26  ;;  %vm144_vm2 = vweird.f32 %v1315_v29 }
  0xa9   :  { %v1317_v32 = vpop.eup %1316  ;;  %vm145_vm4 = vmor %vm143_vm3, %vm144_vm2 }
  0xaa   :  { %v140_v31 = vsub.f32 1.0, %v139_v30  ;;  %v212_v34 = vmul.f32 %v1317_v32, %v210_v28  ;;  %vm217_vm7 = vweird.f32 %v1317_v32 }
  0xab   :  { %vm218_vm8 = vmor %vm216_vm6, %vm217_vm7 }
  0xac   :  { %v141_v33 = vmul.f32 %v1315_v29, %v140_v31  ;;  %v213_v36 = vsub.f32 1.0, %v212_v34 }
  0xae   :  { %v142_v35 = vadd.f32 %v1315_v29, %v141_v33  ;;  %v214_v40 = vmul.f32 %v1317_v32, %v213_v36 }
  0xb0   :  { %v146_v39 = vsel %vm145_vm4, %v1315_v29, %v142_v35  ;;  %v215_v44 = vadd.f32 %v1317_v32, %v214_v40 }
  0xb1   :  { %v151_v42 = vsel %vm148_vm5, %v150_v41, %v146_v39 }
  0xb2   :  { %v219_v48 = vsel %vm218_vm8, %v1317_v32, %v215_v44  ;;  %v158_v54 = vmul.f32 %v156_v53, %v151_v42 }
  0xb3   :  { %v224_v50 = vsel %vm221_vm9, %v223_v49, %v219_v48 }
  0xb4   :  { %v231_v58 = vmul.f32 %v229_v57, %v224_v50 }
 0x10d   :  { %v161_v43 = vpop.permute.xlu0 %160 }
 0x10e   :  { %v163_v45 = vmul.f32 %v161_v43, %v151_v42 }
 0x110   :  { %165 = vrot.lane.b32.xlu2 %v163_v45, %s1491_s2 }
 0x115   :  { %v234_v51 = vpop.permute.xlu0 %233 }
 0x116   :  { %v236_v52 = vmul.f32 %v234_v51, %v224_v50 }
 0x118   :  { %238 = vrot.lane.b32.xlu2 %v236_v52, %s1491_s2 }
 0x16a   :  { %v166_v55 = vpop.permute.xlu2 %165 }
 0x16b   :  { %v1604_v56 = vadd.f32 %v166_v55, %v158_v54 }
 0x16d   :  { %1318 = vtanh.f32 %v1604_v56 }
 0x172   :  { %v239_v59 = vpop.permute.xlu2 %238 }
 0x173   :  { %v1319_v60 = vpop.eup %1318  ;;  %v1607_v61 = vadd.f32 %v239_v59, %v231_v58 }
 0x174   :  { %171 = vrot.lane.b32.xlu0 %v1319_v60, %s1492_s8 }
 0x175   :  { %1320 = vtanh.f32 %v1607_v61 }
 0x17b   :  { %v1321_v62 = vpop.eup %1320 }
 0x17c   :  { %244 = vrot.lane.b32.xlu1 %v1321_v62, %s1492_s8 }
 0x1e6   :  { %v172_v63 = vpop.permute.xlu0 %171 }
 0x1e7   :  { %v174_v0 = vmul.f32 %v172_v63, %v151_v42 }
 0x1e9   :  { %176 = vrot.lane.b32.xlu2 %v174_v0, %s1491_s2 }
 0x1ee   :  { %v245_v7 = vpop.permute.xlu1 %244 }
 0x1ef   :  { %v247_v10 = vmul.f32 %v245_v7, %v224_v50 }
 0x1f1   :  { %249 = vrot.lane.b32.xlu0 %v247_v10, %s1491_s2 }
 0x243   :  { %v177_v11 = vpop.permute.xlu2 %176 }
 0x244   :  { %180 = vst.msk [vmem:[%s1872_s4] sm:$0x3] %vm91_vm0, %v177_v11  ;;  %1259 = vmatmul.msk.f32.vlgmr.msra.gmra.mxu2 %vm109_vm1, %v177_v11  ;;  %v1264_v11 = vld [vmem:[%s1868_s0 + $0x4] sm:$0x3] }
 0x245   :  { %814 = vmatpush.msra.mxu2 %v1534_v1 }
 0x247   :  { %815 = vmatpush.msra.mxu2 %v1538_v3 }
 0x249   :  { %816 = vmatpush.msra.mxu2 %v1544_v5 }
 0x24b   :  { %817 = vmatpush.msra.mxu2 %v1552_v8 }
 0x263   :  { %v250_v12 = vpop.permute.xlu0 %249 }
 0x264   :  { %1257 = vst.msk [vmem:[%s1873_s5 + $0xe] sm:$0x3] %vm91_vm0, %v250_v12  ;;  %1262 = vmatmul.msk.f32.vlgmr.msra.gmra.mxu3 %vm109_vm1, %v250_v12 }
 0x265   :  { %882 = vmatpush.msra.mxu3 %v1536_v2 }
 0x267   :  { %883 = vmatpush.msra.mxu3 %v1542_v4 }
 0x269   :  { %884 = vmatpush.msra.mxu3 %v1546_v6 }
 0x26b   :  { %885 = vmatpush.msra.mxu3 %v1554_v9 }
 0x2c7   :  { %v275_v14 = vpop.f32.mrf.mxu2 }
 0x2c8   :  { %v278_v15 = vadd.f32 %v1258_v13, %v275_v14  ;;  %v1267_v14 = vld [vmem:[%s1869_s1 + $0xa] sm:$0x3] }
 0x2ca   :  { %1322 = vtanh.f32 %v278_v15  ;;  %v279_v21 = vsub.f32 0.0, %v278_v15 }
 0x2cc   :  { %v280_v22 = vmul.f32 1.442695, %v279_v21 }
 0x2d0   :  { %v1323_v16 = vpop.eup %1322 }
 0x2d1   :  { %301 = vrot.lane.b32.xlu1 %v1323_v16, %s1492_s8 }
 0x2e7   :  { %v343_v18 = vpop.f32.mrf.mxu3 }
 0x2e8   :  { %v346_v19 = vadd.f32 %v1261_v17, %v343_v18 }
 0x2ea   :  { %1324 = vtanh.f32 %v346_v19  ;;  %v347_v23 = vsub.f32 0.0, %v346_v19 }
 0x2eb   :  { %1326 = vpow2.f32 %v280_v22 }
 0x2ec   :  { %v348_v24 = vmul.f32 1.442695, %v347_v23 }
 0x2ee   :  { %1328 = vpow2.f32 %v348_v24 }
 0x2f0   :  { %v1325_v20 = vpop.eup %1324 }
 0x2f1   :  { %369 = vrot.lane.b32.xlu2 %v1325_v20, %s1492_s8  ;;  %v1327_v25 = vpop.eup %1326 }
 0x2f2   :  { %v282_v26 = vadd.f32 1.0, %v1327_v25 }
 0x2f4   :  { %1330 = vrcp.f32 %v282_v26  ;;  %v1329_v27 = vpop.eup %1328  ;;  %v294_v37 = vand.u32 2147483648, %v282_v26  ;;  %vm288_vm11 = vweird.f32 %v282_v26  ;;  %v292_v38 = vand.u32 2147483647, %v282_v26 }
 0x2f5   :  { %v350_v28 = vadd.f32 1.0, %v1329_v27 }
 0x2f6   :  { %v295_v41 = vor.u32 1.1754944e-38, %v294_v37  ;;  %vm293_vm13 = vcmp.eq.f32.partialorder %v292_v38, 8.507059e+37 }
 0x2f7   :  { %1332 = vrcp.f32 %v350_v28  ;;  %v362_v46 = vand.u32 2147483648, %v350_v28  ;;  %vm356_vm15 = vweird.f32 %v350_v28  ;;  %v360_v47 = vand.u32 2147483647, %v350_v28 }
 0x2f9   :  { %v363_v49 = vor.u32 1.1754944e-38, %v362_v46  ;;  %vm361_vm3 = vcmp.eq.f32.partialorder %v360_v47, 8.507059e+37 }
 0x2fa   :  { %v1331_v29 = vpop.eup %1330 }
 0x2fb   :  { %v284_v30 = vmul.f32 %v1331_v29, %v282_v26  ;;  %vm289_vm10 = vweird.f32 %v1331_v29 }
 0x2fc   :  { %vm290_vm12 = vmor %vm288_vm11, %vm289_vm10 }
 0x2fd   :  { %v285_v31 = vsub.f32 1.0, %v284_v30  ;;  %v1333_v32 = vpop.eup %1332 }
 0x2fe   :  { %v352_v34 = vmul.f32 %v1333_v32, %v350_v28  ;;  %vm357_vm14 = vweird.f32 %v1333_v32 }
 0x2ff   :  { %v286_v33 = vmul.f32 %v1331_v29, %v285_v31  ;;  %vm358_vm2 = vmor %vm356_vm15, %vm357_vm14 }
 0x300   :  { %v353_v36 = vsub.f32 1.0, %v352_v34 }
 0x301   :  { %v287_v35 = vadd.f32 %v1331_v29, %v286_v33 }
 0x302   :  { %v354_v40 = vmul.f32 %v1333_v32, %v353_v36 }
 0x303   :  { %v291_v39 = vsel %vm290_vm12, %v1331_v29, %v287_v35 }
 0x304   :  { %v296_v43 = vsel %vm293_vm13, %v295_v41, %v291_v39  ;;  %v355_v45 = vadd.f32 %v1333_v32, %v354_v40 }
 0x305   :  { %v299_v53 = vmul.f32 %v296_v43, %v1604_v56 }
 0x306   :  { %v359_v48 = vsel %vm358_vm2, %v1333_v32, %v355_v45 }
 0x307   :  { %v364_v51 = vsel %vm361_vm3, %v363_v49, %v359_v48 }
 0x308   :  { %v367_v57 = vmul.f32 %v364_v51, %v1607_v61 }
 0x343   :  { %v302_v42 = vpop.permute.xlu1 %301 }
 0x344   :  { %v304_v44 = vmul.f32 %v302_v42, %v296_v43 }
 0x346   :  { %306 = vrot.lane.b32.xlu0 %v304_v44, %s1491_s2 }
 0x34b   :  { %v370_v50 = vpop.permute.xlu2 %369 }
 0x34c   :  { %v372_v52 = vmul.f32 %v370_v50, %v364_v51 }
 0x34e   :  { %374 = vrot.lane.b32.xlu1 %v372_v52, %s1491_s2 }
 0x3b8   :  { %v307_v54 = vpop.permute.xlu0 %306 }
 0x3b9   :  { %v1643_v55 = vadd.f32 %v307_v54, %v299_v53 }
 0x3bb   :  { %1334 = vtanh.f32 %v1643_v55 }
 0x3c0   :  { %v375_v58 = vpop.permute.xlu1 %374 }
 0x3c1   :  { %v1335_v59 = vpop.eup %1334  ;;  %v1647_v60 = vadd.f32 %v375_v58, %v367_v57 }
 0x3c2   :  { %312 = vrot.lane.b32.xlu2 %v1335_v59, %s1492_s8 }
 0x3c3   :  { %1336 = vtanh.f32 %v1647_v60 }
 0x3c9   :  { %v1337_v62 = vpop.eup %1336 }
 0x3ca   :  { %380 = vrot.lane.b32.xlu0 %v1337_v62, %s1492_s8 }
 0x41c   :  { %v313_v63 = vpop.permute.xlu2 %312 }
 0x41d   :  { %v315_v56 = vmul.f32 %v313_v63, %v296_v43 }
 0x41f   :  { %317 = vrot.lane.b32.xlu1 %v315_v56, %s1491_s2 }
 0x43c   :  { %v381_v0 = vpop.permute.xlu0 %380 }
 0x43d   :  { %v383_v7 = vmul.f32 %v381_v0, %v364_v51 }
 0x43f   :  { %385 = vrot.lane.b32.xlu2 %v383_v7, %s1491_s2 }
 0x491   :  { %v318_v61 = vpop.permute.xlu1 %317 }
 0x492   :  { %1260 = vst.msk [vmem:[%s1872_s4 + $0x2] sm:$0x3] %vm91_vm0, %v318_v61  ;;  %1265 = vmatmul.msk.f32.vlgmr.msrb.gmra.mxu0 %vm109_vm1, %v318_v61 }
 0x493   :  { %950 = vmatpush.msrb.mxu0 %v1534_v1 }
 0x495   :  { %951 = vmatpush.msrb.mxu0 %v1538_v3 }
 0x497   :  { %952 = vmatpush.msrb.mxu0 %v1544_v5 }
 0x499   :  { %v386_v10 = vpop.permute.xlu2 %385  ;;  %953 = vmatpush.msrb.mxu0 %v1552_v8 }
 0x49a   :  { %1263 = vst.msk [vmem:[%s1873_s5 + $0xc] sm:$0x3] %vm91_vm0, %v386_v10  ;;  %1268 = vmatmul.msk.f32.vlgmr.msrb.gmra.mxu1 %vm109_vm1, %v386_v10 }
 0x49b   :  { %1018 = vmatpush.msrb.mxu1 %v1536_v2 }
 0x49d   :  { %1019 = vmatpush.msrb.mxu1 %v1542_v4 }
 0x49f   :  { %1020 = vmatpush.msrb.mxu1 %v1546_v6 }
 0x4a1   :  { %1021 = vmatpush.msrb.mxu1 %v1554_v9 }
 0x50f   :  { %v411_v12 = vpop.f32.mrf.mxu0 }
 0x510   :  { %v414_v13 = vadd.f32 %v1264_v11, %v411_v12 }
 0x512   :  { %1338 = vtanh.f32 %v414_v13  ;;  %v415_v19 = vsub.f32 0.0, %v414_v13 }
 0x514   :  { %v416_v20 = vmul.f32 1.442695, %v415_v19 }
 0x517   :  { %v479_v15 = vpop.f32.mrf.mxu1 }
 0x518   :  { %v1339_v16 = vpop.eup %1338  ;;  %v482_v17 = vadd.f32 %v1267_v14, %v479_v15 }
 0x519   :  { %437 = vrot.lane.b32.xlu0 %v1339_v16, %s1492_s8 }
 0x51a   :  { %1340 = vtanh.f32 %v482_v17  ;;  %v483_v21 = vsub.f32 0.0, %v482_v17 }
 0x51b   :  { %1342 = vpow2.f32 %v416_v20 }
 0x51c   :  { %v484_v22 = vmul.f32 1.442695, %v483_v21 }
 0x51e   :  { %1344 = vpow2.f32 %v484_v22 }
 0x520   :  { %v1341_v18 = vpop.eup %1340 }
 0x521   :  { %505 = vrot.lane.b32.xlu1 %v1341_v18, %s1492_s8  ;;  %v1343_v23 = vpop.eup %1342 }
 0x522   :  { %v418_v24 = vadd.f32 1.0, %v1343_v23 }
 0x524   :  { %1346 = vrcp.f32 %v418_v24  ;;  %v1345_v25 = vpop.eup %1344  ;;  %v430_v35 = vand.u32 2147483648, %v418_v24  ;;  %vm424_vm5 = vweird.f32 %v418_v24  ;;  %v428_v36 = vand.u32 2147483647, %v418_v24 }
 0x525   :  { %v486_v26 = vadd.f32 1.0, %v1345_v25 }
 0x526   :  { %v431_v39 = vor.u32 1.1754944e-38, %v430_v35  ;;  %vm429_vm7 = vcmp.eq.f32.partialorder %v428_v36, 8.507059e+37 }
 0x527   :  { %1348 = vrcp.f32 %v486_v26  ;;  %v498_v44 = vand.u32 2147483648, %v486_v26  ;;  %vm492_vm9 = vweird.f32 %v486_v26  ;;  %v496_v45 = vand.u32 2147483647, %v486_v26 }
 0x529   :  { %v499_v47 = vor.u32 1.1754944e-38, %v498_v44  ;;  %vm497_vm11 = vcmp.eq.f32.partialorder %v496_v45, 8.507059e+37 }
 0x52a   :  { %v1347_v27 = vpop.eup %1346 }
 0x52b   :  { %v420_v28 = vmul.f32 %v1347_v27, %v418_v24  ;;  %vm425_vm4 = vweird.f32 %v1347_v27 }
 0x52c   :  { %vm426_vm6 = vmor %vm424_vm5, %vm425_vm4 }
 0x52d   :  { %v421_v29 = vsub.f32 1.0, %v420_v28  ;;  %v1349_v30 = vpop.eup %1348 }
 0x52e   :  { %v488_v32 = vmul.f32 %v1349_v30, %v486_v26  ;;  %vm493_vm8 = vweird.f32 %v1349_v30 }
 0x52f   :  { %v422_v31 = vmul.f32 %v1347_v27, %v421_v29  ;;  %vm494_vm10 = vmor %vm492_vm9, %vm493_vm8 }
 0x530   :  { %v489_v34 = vsub.f32 1.0, %v488_v32 }
 0x531   :  { %v423_v33 = vadd.f32 %v1347_v27, %v422_v31 }
 0x532   :  { %v490_v38 = vmul.f32 %v1349_v30, %v489_v34 }
 0x533   :  { %v427_v37 = vsel %vm426_vm6, %v1347_v27, %v423_v33 }
 0x534   :  { %v432_v40 = vsel %vm429_vm7, %v431_v39, %v427_v37  ;;  %v491_v43 = vadd.f32 %v1349_v30, %v490_v38 }
 0x535   :  { %v435_v51 = vmul.f32 %v432_v40, %v1643_v55 }
 0x536   :  { %v495_v46 = vsel %vm494_vm10, %v1349_v30, %v491_v43 }
 0x537   :  { %v500_v49 = vsel %vm497_vm11, %v499_v47, %v495_v46 }
 0x538   :  { %v503_v57 = vmul.f32 %v500_v49, %v1647_v60 }
 0x58b   :  { %v438_v41 = vpop.permute.xlu0 %437 }
 0x58c   :  { %v440_v42 = vmul.f32 %v438_v41, %v432_v40 }
 0x58e   :  { %442 = vrot.lane.b32.xlu2 %v440_v42, %s1491_s2 }
 0x593   :  { %v506_v48 = vpop.permute.xlu1 %505 }
 0x594   :  { %v508_v50 = vmul.f32 %v506_v48, %v500_v49 }
 0x596   :  { %510 = vrot.lane.b32.xlu0 %v508_v50, %s1491_s2 }
 0x5e8   :  { %v443_v52 = vpop.permute.xlu2 %442 }
 0x5e9   :  { %v1683_v53 = vadd.f32 %v443_v52, %v435_v51 }
 0x5eb   :  { %1350 = vtanh.f32 %v1683_v53 }
 0x5f1   :  { %v1351_v54 = vpop.eup %1350 }
 0x5f2   :  { %448 = vrot.lane.b32.xlu1 %v1351_v54, %s1492_s8 }
 0x608   :  { %v511_v58 = vpop.permute.xlu0 %510 }
 0x609   :  { %v1688_v59 = vadd.f32 %v511_v58, %v503_v57  ;;  %v1276_v57 = vld [vmem:[%s1868_s0 + $0x8] sm:$0x3] }
 0x60b   :  { %1352 = vtanh.f32 %v1688_v59 }
 0x611   :  { %v1353_v62 = vpop.eup %1352 }
 0x612   :  { %516 = vrot.lane.b32.xlu2 %v1353_v62, %s1492_s8 }
 0x664   :  { %v449_v63 = vpop.permute.xlu1 %448 }
 0x665   :  { %v451_v55 = vmul.f32 %v449_v63, %v432_v40  ;;  %v1279_v63 = vld [vmem:[%s1869_s1 + $0x6] sm:$0x3] }
 0x667   :  { %453 = vrot.lane.b32.xlu0 %v451_v55, %s1491_s2 }
 0x66c   :  { %v517_v56 = vpop.permute.xlu2 %516 }
 0x66d   :  { %v519_v0 = vmul.f32 %v517_v56, %v500_v49 }
 0x66f   :  { %521 = vrot.lane.b32.xlu1 %v519_v0, %s1491_s2 }
 0x6d9   :  { %v454_v7 = vpop.permute.xlu0 %453 }
 0x6da   :  { %1266 = vst.msk [vmem:[%s1872_s4 + $0x4] sm:$0x3] %vm91_vm0, %v454_v7  ;;  %1271 = vmatmul.msk.f32.vlgmr.msrb.gmra.mxu2 %vm109_vm1, %v454_v7 }
 0x6db   :  { %1086 = vmatpush.msrb.mxu2 %v1534_v1  ;;  %v1270_v1 = vld [vmem:[%s1868_s0 + $0x6] sm:$0x3] }
 0x6dd   :  { %1087 = vmatpush.msrb.mxu2 %v1538_v3 }
 0x6df   :  { %1088 = vmatpush.msrb.mxu2 %v1544_v5 }
 0x6e1   :  { %v522_v60 = vpop.permute.xlu1 %521  ;;  %1089 = vmatpush.msrb.mxu2 %v1552_v8  ;;  %v1273_v8 = vld [vmem:[%s1869_s1 + $0x8] sm:$0x3] }
 0x6e2   :  { %1269 = vst.msk [vmem:[%s1873_s5 + $0xa] sm:$0x3] %vm91_vm0, %v522_v60  ;;  %1274 = vmatmul.msk.f32.vlgmr.msrb.gmra.mxu3 %vm109_vm1, %v522_v60 }
 0x6e3   :  { %1153 = vmatpush.msrb.mxu3 %v1536_v2 }
 0x6e5   :  { %1154 = vmatpush.msrb.mxu3 %v1542_v4 }
 0x6e7   :  { %1155 = vmatpush.msrb.mxu3 %v1546_v6 }
 0x6e9   :  { %1156 = vmatpush.msrb.mxu3 %v1554_v9 }
 0x75d   :  { %v547_v3 = vpop.f32.mrf.mxu2 }
 0x75e   :  { %v550_v5 = vadd.f32 %v1270_v1, %v547_v3 }
 0x760   :  { %1354 = vtanh.f32 %v550_v5  ;;  %v551_v6 = vsub.f32 0.0, %v550_v5 }
 0x762   :  { %v552_v9 = vmul.f32 1.442695, %v551_v6 }
 0x765   :  { %v615_v61 = vpop.f32.mrf.mxu3 }
 0x766   :  { %v1355_v10 = vpop.eup %1354  ;;  %v618_v2 = vadd.f32 %v1273_v8, %v615_v61 }
 0x767   :  { %573 = vrot.lane.b32.xlu2 %v1355_v10, %s1492_s8 }
 0x768   :  { %1356 = vtanh.f32 %v618_v2  ;;  %v619_v15 = vsub.f32 0.0, %v618_v2 }
 0x769   :  { %1358 = vpow2.f32 %v552_v9 }
 0x76a   :  { %v620_v17 = vmul.f32 1.442695, %v619_v15 }
 0x76e   :  { %v1357_v4 = vpop.eup %1356 }
 0x76f   :  { %641 = vrot.lane.b32.xlu0 %v1357_v4, %s1492_s8  ;;  %v1359_v11 = vpop.eup %1358 }
 0x770   :  { %v554_v12 = vadd.f32 1.0, %v1359_v11 }
 0x772   :  { %1360 = vrcp.f32 %v554_v12  ;;  %v566_v20 = vand.u32 2147483648, %v554_v12  ;;  %vm560_vm13 = vweird.f32 %v554_v12  ;;  %v564_v21 = vand.u32 2147483647, %v554_v12 }
 0x773   :  { %1362 = vpow2.f32 %v620_v17 }
 0x774   :  { %v567_v24 = vor.u32 1.1754944e-38, %v566_v20  ;;  %vm565_vm15 = vcmp.eq.f32.partialorder %v564_v21, 8.507059e+37 }
 0x778   :  { %v1361_v13 = vpop.eup %1360 }
 0x779   :  { %v556_v14 = vmul.f32 %v1361_v13, %v554_v12  ;;  %vm561_vm12 = vweird.f32 %v1361_v13  ;;  %v1363_v22 = vpop.eup %1362 }
 0x77a   :  { %vm562_vm14 = vmor %vm560_vm13, %vm561_vm12  ;;  %v622_v25 = vadd.f32 1.0, %v1363_v22 }
 0x77b   :  { %v557_v16 = vsub.f32 1.0, %v556_v14 }
 0x77c   :  { %1364 = vrcp.f32 %v622_v25  ;;  %v634_v34 = vand.u32 2147483648, %v622_v25  ;;  %vm628_vm3 = vweird.f32 %v622_v25  ;;  %v632_v35 = vand.u32 2147483647, %v622_v25 }
 0x77d   :  { %v558_v18 = vmul.f32 %v1361_v13, %v557_v16 }
 0x77e   :  { %v635_v37 = vor.u32 1.1754944e-38, %v634_v34  ;;  %vm633_vm5 = vcmp.eq.f32.partialorder %v632_v35, 8.507059e+37 }
 0x77f   :  { %v559_v19 = vadd.f32 %v1361_v13, %v558_v18 }
 0x781   :  { %v563_v23 = vsel %vm562_vm14, %v1361_v13, %v559_v19 }
 0x782   :  { %v568_v27 = vsel %vm565_vm15, %v567_v24, %v563_v23  ;;  %v1365_v29 = vpop.eup %1364 }
 0x783   :  { %v624_v30 = vmul.f32 %v1365_v29, %v622_v25  ;;  %vm629_vm2 = vweird.f32 %v1365_v29  ;;  %v571_v41 = vmul.f32 %v568_v27, %v1683_v53 }
 0x784   :  { %vm630_vm4 = vmor %vm628_vm3, %vm629_vm2 }
 0x785   :  { %v625_v31 = vsub.f32 1.0, %v624_v30 }
 0x787   :  { %v626_v32 = vmul.f32 %v1365_v29, %v625_v31 }
 0x789   :  { %v627_v33 = vadd.f32 %v1365_v29, %v626_v32 }
 0x78b   :  { %v631_v36 = vsel %vm630_vm4, %v1365_v29, %v627_v33 }
 0x78c   :  { %v636_v38 = vsel %vm633_vm5, %v635_v37, %v631_v36 }
 0x78d   :  { %v639_v44 = vmul.f32 %v636_v38, %v1688_v59 }
 0x7c1   :  { %v574_v26 = vpop.permute.xlu2 %573 }
 0x7c2   :  { %v576_v28 = vmul.f32 %v574_v26, %v568_v27 }
 0x7c4   :  { %578 = vrot.lane.b32.xlu1 %v576_v28, %s1491_s2 }
 0x7e1   :  { %v642_v39 = vpop.permute.xlu0 %641 }
 0x7e2   :  { %v644_v40 = vmul.f32 %v642_v39, %v636_v38 }
 0x7e4   :  { %646 = vrot.lane.b32.xlu2 %v644_v40, %s1491_s2 }
 0x836   :  { %v579_v42 = vpop.permute.xlu1 %578 }
 0x837   :  { %v1723_v43 = vadd.f32 %v579_v42, %v571_v41 }
 0x839   :  { %1366 = vtanh.f32 %v1723_v43 }
 0x83e   :  { %v647_v45 = vpop.permute.xlu2 %646 }
 0x83f   :  { %v1367_v46 = vpop.eup %1366  ;;  %v1727_v47 = vadd.f32 %v647_v45, %v639_v44  ;;  %v1282_v45 = vld [vmem:[%s1868_s0 + $0xa] sm:$0x3] }
 0x840   :  { %584 = vrot.lane.b32.xlu0 %v1367_v46, %s1492_s8 }
 0x841   :  { %1368 = vtanh.f32 %v1727_v47 }
 0x847   :  { %v1369_v48 = vpop.eup %1368 }
 0x848   :  { %652 = vrot.lane.b32.xlu1 %v1369_v48, %s1492_s8  ;;  %v1285_v48 = vld [vmem:[%s1869_s1 + $0x4] sm:$0x3] }
 0x8b2   :  { %v585_v49 = vpop.permute.xlu0 %584 }
 0x8b3   :  { %v587_v50 = vmul.f32 %v585_v49, %v568_v27 }
 0x8b5   :  { %589 = vrot.lane.b32.xlu2 %v587_v50, %s1491_s2 }
 0x8ba   :  { %v653_v51 = vpop.permute.xlu1 %652 }
 0x8bb   :  { %v655_v52 = vmul.f32 %v653_v51, %v636_v38 }
 0x8bd   :  { %657 = vrot.lane.b32.xlu0 %v655_v52, %s1491_s2 }
 0x90f   :  { %v590_v53 = vpop.permute.xlu2 %589 }
 0x910   :  { %1272 = vst.msk [vmem:[%s1872_s4 + $0x6] sm:$0x3] %vm91_vm0, %v590_v53  ;;  %1277 = vmatmul.msk.f32.vlgmr.msra.gmra.mxu0 %vm109_vm1, %v590_v53 }
 0x92f   :  { %v658_v54 = vpop.permute.xlu0 %657 }
 0x930   :  { %1275 = vst.msk [vmem:[%s1873_s5 + $0x8] sm:$0x3] %vm91_vm0, %v658_v54  ;;  %1280 = vmatmul.msk.f32.vlgmr.msra.gmra.mxu1 %vm109_vm1, %v658_v54 }
 0x98d   :  { %v683_v58 = vpop.f32.mrf.mxu0 }
 0x98e   :  { %v686_v59 = vadd.f32 %v1276_v57, %v683_v58 }
 0x990   :  { %1370 = vtanh.f32 %v686_v59  ;;  %v687_v7 = vsub.f32 0.0, %v686_v59 }
 0x992   :  { %v688_v60 = vmul.f32 1.442695, %v687_v7 }
 0x996   :  { %v1371_v62 = vpop.eup %1370 }
 0x997   :  { %709 = vrot.lane.b32.xlu1 %v1371_v62, %s1492_s8 }
 0x9ad   :  { %v751_v55 = vpop.f32.mrf.mxu1 }
 0x9ae   :  { %v754_v56 = vadd.f32 %v1279_v63, %v751_v55 }
 0x9b0   :  { %1372 = vtanh.f32 %v754_v56  ;;  %v755_v1 = vsub.f32 0.0, %v754_v56 }
 0x9b1   :  { %1374 = vpow2.f32 %v688_v60 }
 0x9b2   :  { %v756_v3 = vmul.f32 1.442695, %v755_v1 }
 0x9b4   :  { %1376 = vpow2.f32 %v756_v3 }
 0x9b6   :  { %v1373_v0 = vpop.eup %1372 }
 0x9b7   :  { %777 = vrot.lane.b32.xlu2 %v1373_v0, %s1492_s8  ;;  %v1375_v5 = vpop.eup %1374 }
 0x9b8   :  { %v690_v8 = vadd.f32 1.0, %v1375_v5 }
 0x9ba   :  { %1378 = vrcp.f32 %v690_v8  ;;  %v1377_v61 = vpop.eup %1376  ;;  %v702_v15 = vand.u32 2147483648, %v690_v8  ;;  %vm696_vm7 = vweird.f32 %v690_v8  ;;  %v700_v16 = vand.u32 2147483647, %v690_v8 }
 0x9bb   :  { %v758_v10 = vadd.f32 1.0, %v1377_v61 }
 0x9bc   :  { %v703_v19 = vor.u32 1.1754944e-38, %v702_v15  ;;  %vm701_vm9 = vcmp.eq.f32.partialorder %v700_v16, 8.507059e+37 }
 0x9bd   :  { %1380 = vrcp.f32 %v758_v10  ;;  %v770_v24 = vand.u32 2147483648, %v758_v10  ;;  %vm764_vm11 = vweird.f32 %v758_v10  ;;  %v768_v25 = vand.u32 2147483647, %v758_v10 }
 0x9bf   :  { %v771_v27 = vor.u32 1.1754944e-38, %v770_v24  ;;  %vm769_vm13 = vcmp.eq.f32.partialorder %v768_v25, 8.507059e+37 }
 0x9c0   :  { %v1379_v2 = vpop.eup %1378 }
 0x9c1   :  { %v692_v4 = vmul.f32 %v1379_v2, %v690_v8  ;;  %vm697_vm6 = vweird.f32 %v1379_v2 }
 0x9c2   :  { %vm698_vm8 = vmor %vm696_vm7, %vm697_vm6 }
 0x9c3   :  { %v693_v6 = vsub.f32 1.0, %v692_v4  ;;  %v1381_v9 = vpop.eup %1380 }
 0x9c4   :  { %v760_v12 = vmul.f32 %v1381_v9, %v758_v10  ;;  %vm765_vm10 = vweird.f32 %v1381_v9 }
 0x9c5   :  { %v694_v11 = vmul.f32 %v1379_v2, %v693_v6  ;;  %vm766_vm12 = vmor %vm764_vm11, %vm765_vm10 }
 0x9c6   :  { %v761_v14 = vsub.f32 1.0, %v760_v12 }
 0x9c7   :  { %v695_v13 = vadd.f32 %v1379_v2, %v694_v11 }
 0x9c8   :  { %v762_v18 = vmul.f32 %v1381_v9, %v761_v14 }
 0x9c9   :  { %v699_v17 = vsel %vm698_vm8, %v1379_v2, %v695_v13 }
 0x9ca   :  { %v704_v21 = vsel %vm701_vm9, %v703_v19, %v699_v17  ;;  %v763_v23 = vadd.f32 %v1381_v9, %v762_v18 }
 0x9cb   :  { %v707_v31 = vmul.f32 %v704_v21, %v1723_v43 }
 0x9cc   :  { %v767_v26 = vsel %vm766_vm12, %v1381_v9, %v763_v23 }
 0x9cd   :  { %v772_v29 = vsel %vm769_vm13, %v771_v27, %v767_v26 }
 0x9ce   :  { %v775_v34 = vmul.f32 %v772_v29, %v1727_v47 }
 0xa09   :  { %v710_v20 = vpop.permute.xlu1 %709 }
 0xa0a   :  { %v712_v22 = vmul.f32 %v710_v20, %v704_v21 }
 0xa0c   :  { %714 = vrot.lane.b32.xlu0 %v712_v22, %s1491_s2 }
 0xa11   :  { %v778_v28 = vpop.permute.xlu2 %777 }
 0xa12   :  { %v780_v30 = vmul.f32 %v778_v28, %v772_v29 }
 0xa14   :  { %782 = vrot.lane.b32.xlu1 %v780_v30, %s1491_s2 }
 0xa7e   :  { %v715_v32 = vpop.permute.xlu0 %714 }
 0xa7f   :  { %v1755_v33 = vadd.f32 %v715_v32, %v707_v31 }
 0xa81   :  { %1382 = vtanh.f32 %v1755_v33 }
 0xa86   :  { %v783_v35 = vpop.permute.xlu1 %782 }
 0xa87   :  { %v1383_v36 = vpop.eup %1382  ;;  %v1759_v37 = vadd.f32 %v783_v35, %v775_v34  ;;  %v1288_v35 = vld [vmem:[%s1868_s0 + $0xc] sm:$0x3] }
 0xa88   :  { %720 = vrot.lane.b32.xlu2 %v1383_v36, %s1492_s8 }
 0xa89   :  { %1384 = vtanh.f32 %v1759_v37 }
 0xa8f   :  { %v1385_v38 = vpop.eup %1384 }
 0xa90   :  { %788 = vrot.lane.b32.xlu0 %v1385_v38, %s1492_s8  ;;  %v1291_v38 = vld [vmem:[%s1869_s1 + $0x2] sm:$0x3] }
 0xae2   :  { %v721_v39 = vpop.permute.xlu2 %720 }
 0xae3   :  { %v723_v40 = vmul.f32 %v721_v39, %v704_v21 }
 0xae5   :  { %725 = vrot.lane.b32.xlu1 %v723_v40, %s1491_s2 }
 0xb02   :  { %v789_v41 = vpop.permute.xlu0 %788 }
 0xb03   :  { %v791_v42 = vmul.f32 %v789_v41, %v772_v29 }
 0xb05   :  { %793 = vrot.lane.b32.xlu2 %v791_v42, %s1491_s2 }
 0xb57   :  { %v726_v43 = vpop.permute.xlu1 %725 }
 0xb58   :  { %1278 = vst.msk [vmem:[%s1872_s4 + $0x8] sm:$0x3] %vm91_vm0, %v726_v43  ;;  %1283 = vmatmul.msk.f32.vlgmr.msra.gmra.mxu2 %vm109_vm1, %v726_v43 }
 0xb5f   :  { %v794_v44 = vpop.permute.xlu2 %793 }
 0xb60   :  { %1281 = vst.msk [vmem:[%s1873_s5 + $0x6] sm:$0x3] %vm91_vm0, %v794_v44  ;;  %1286 = vmatmul.msk.f32.vlgmr.msra.gmra.mxu3 %vm109_vm1, %v794_v44 }
 0xbdb   :  { %v819_v46 = vpop.f32.mrf.mxu2 }
 0xbdc   :  { %v822_v47 = vadd.f32 %v1282_v45, %v819_v46 }
 0xbde   :  { %1386 = vtanh.f32 %v822_v47  ;;  %v823_v53 = vsub.f32 0.0, %v822_v47 }
 0xbe0   :  { %v824_v54 = vmul.f32 1.442695, %v823_v53 }
 0xbe3   :  { %v887_v49 = vpop.f32.mrf.mxu3 }
 0xbe4   :  { %v1387_v50 = vpop.eup %1386  ;;  %v890_v51 = vadd.f32 %v1285_v48, %v887_v49 }
 0xbe5   :  { %845 = vrot.lane.b32.xlu0 %v1387_v50, %s1492_s8 }
 0xbe6   :  { %1388 = vtanh.f32 %v890_v51  ;;  %v891_v57 = vsub.f32 0.0, %v890_v51 }
 0xbe7   :  { %1390 = vpow2.f32 %v824_v54 }
 0xbe8   :  { %v892_v58 = vmul.f32 1.442695, %v891_v57 }
 0xbea   :  { %1392 = vpow2.f32 %v892_v58 }
 0xbec   :  { %v1389_v52 = vpop.eup %1388 }
 0xbed   :  { %913 = vrot.lane.b32.xlu1 %v1389_v52, %s1492_s8  ;;  %v1391_v59 = vpop.eup %1390 }
 0xbee   :  { %v826_v62 = vadd.f32 1.0, %v1391_v59 }
 0xbf0   :  { %1394 = vrcp.f32 %v826_v62  ;;  %v1393_v63 = vpop.eup %1392  ;;  %v838_v61 = vand.u32 2147483648, %v826_v62  ;;  %vm832_vm15 = vweird.f32 %v826_v62  ;;  %v836_v10 = vand.u32 2147483647, %v826_v62 }
 0xbf1   :  { %v894_v55 = vadd.f32 1.0, %v1393_v63 }
 0xbf2   :  { %v839_v6 = vor.u32 1.1754944e-38, %v838_v61  ;;  %vm837_vm3 = vcmp.eq.f32.partialorder %v836_v10, 8.507059e+37 }
 0xbf3   :  { %1396 = vrcp.f32 %v894_v55  ;;  %v906_v14 = vand.u32 2147483648, %v894_v55  ;;  %vm900_vm5 = vweird.f32 %v894_v55  ;;  %v904_v15 = vand.u32 2147483647, %v894_v55 }
 0xbf5   :  { %v907_v17 = vor.u32 1.1754944e-38, %v906_v14  ;;  %vm905_vm7 = vcmp.eq.f32.partialorder %v904_v15, 8.507059e+37 }
 0xbf6   :  { %v1395_v56 = vpop.eup %1394 }
 0xbf7   :  { %v828_v0 = vmul.f32 %v1395_v56, %v826_v62  ;;  %vm833_vm14 = vweird.f32 %v1395_v56 }
 0xbf8   :  { %vm834_vm2 = vmor %vm832_vm15, %vm833_vm14 }
 0xbf9   :  { %v829_v7 = vsub.f32 1.0, %v828_v0  ;;  %v1397_v60 = vpop.eup %1396 }
 0xbfa   :  { %v896_v3 = vmul.f32 %v1397_v60, %v894_v55  ;;  %vm901_vm4 = vweird.f32 %v1397_v60 }
 0xbfb   :  { %v830_v1 = vmul.f32 %v1395_v56, %v829_v7  ;;  %vm902_vm6 = vmor %vm900_vm5, %vm901_vm4 }
 0xbfc   :  { %v897_v8 = vsub.f32 1.0, %v896_v3 }
 0xbfd   :  { %v831_v5 = vadd.f32 %v1395_v56, %v830_v1 }
 0xbfe   :  { %v898_v4 = vmul.f32 %v1397_v60, %v897_v8 }
 0xbff   :  { %v835_v2 = vsel %vm834_vm2, %v1395_v56, %v831_v5 }
 0xc00   :  { %v840_v9 = vsel %vm837_vm3, %v839_v6, %v835_v2  ;;  %v899_v13 = vadd.f32 %v1397_v60, %v898_v4 }
 0xc01   :  { %v843_v21 = vmul.f32 %v840_v9, %v1755_v33 }
 0xc02   :  { %v903_v16 = vsel %vm902_vm6, %v1397_v60, %v899_v13 }
 0xc03   :  { %v908_v19 = vsel %vm905_vm7, %v907_v17, %v903_v16 }
 0xc04   :  { %v911_v25 = vmul.f32 %v908_v19, %v1759_v37 }
 0xc57   :  { %v846_v11 = vpop.permute.xlu0 %845 }
 0xc58   :  { %v848_v12 = vmul.f32 %v846_v11, %v840_v9 }
 0xc5a   :  { %850 = vrot.lane.b32.xlu2 %v848_v12, %s1491_s2 }
 0xc5f   :  { %v914_v18 = vpop.permute.xlu1 %913 }
 0xc60   :  { %v916_v20 = vmul.f32 %v914_v18, %v908_v19 }
 0xc62   :  { %918 = vrot.lane.b32.xlu0 %v916_v20, %s1491_s2 }
 0xcb4   :  { %v851_v22 = vpop.permute.xlu2 %850 }
 0xcb5   :  { %v1787_v23 = vadd.f32 %v851_v22, %v843_v21 }
 0xcb7   :  { %1398 = vtanh.f32 %v1787_v23 }
 0xcbd   :  { %v1399_v24 = vpop.eup %1398 }
 0xcbe   :  { %856 = vrot.lane.b32.xlu1 %v1399_v24, %s1492_s8 }
 0xcd4   :  { %v919_v26 = vpop.permute.xlu0 %918 }
 0xcd5   :  { %v1792_v27 = vadd.f32 %v919_v26, %v911_v25  ;;  %v1294_v25 = vld [vmem:[%s1868_s0 + $0xe] sm:$0x3]  ;;  %s1493_s0 = smov 96  }
 0xcd7   :  { %1400 = vtanh.f32 %v1792_v27 }
 0xcdd   :  { %v1401_v28 = vpop.eup %1400 }
 0xcde   :  { %924 = vrot.lane.b32.xlu2 %v1401_v28, %s1492_s8 }
 0xd30   :  { %v857_v29 = vpop.permute.xlu1 %856 }
 0xd31   :  { %v859_v30 = vmul.f32 %v857_v29, %v840_v9  ;;  %v1138_v29 = vld [vmem:[%s1869_s1] sm:$0x3] }
 0xd33   :  { %861 = vrot.lane.b32.xlu0 %v859_v30, %s1491_s2 }
 0xd38   :  { %v925_v31 = vpop.permute.xlu2 %924 }
 0xd39   :  { %v927_v32 = vmul.f32 %v925_v31, %v908_v19 }
 0xd3b   :  { %929 = vrot.lane.b32.xlu1 %v927_v32, %s1491_s2 }
 0xda5   :  { %v862_v33 = vpop.permute.xlu0 %861 }
 0xda6   :  { %1284 = vst.msk [vmem:[%s1872_s4 + $0xa] sm:$0x3] %vm91_vm0, %v862_v33  ;;  %1289 = vmatmul.msk.f32.vlgmr.msrb.gmra.mxu0 %vm109_vm1, %v862_v33 }
 0xdad   :  { %v930_v34 = vpop.permute.xlu1 %929 }
 0xdae   :  { %1287 = vst.msk [vmem:[%s1873_s5 + $0x4] sm:$0x3] %vm91_vm0, %v930_v34  ;;  %1292 = vmatmul.msk.f32.vlgmr.msrb.gmra.mxu1 %vm109_vm1, %v930_v34 }
 0xe23   :  { %v955_v36 = vpop.f32.mrf.mxu0 }
 0xe24   :  { %v958_v37 = vadd.f32 %v1288_v35, %v955_v36 }
 0xe26   :  { %1402 = vtanh.f32 %v958_v37  ;;  %v959_v43 = vsub.f32 0.0, %v958_v37 }
 0xe28   :  { %v960_v44 = vmul.f32 1.442695, %v959_v43 }
 0xe2b   :  { %v1023_v39 = vpop.f32.mrf.mxu1 }
 0xe2c   :  { %v1403_v40 = vpop.eup %1402  ;;  %v1026_v41 = vadd.f32 %v1291_v38, %v1023_v39 }
 0xe2d   :  { %981 = vrot.lane.b32.xlu2 %v1403_v40, %s1492_s8 }
 0xe2e   :  { %1404 = vtanh.f32 %v1026_v41  ;;  %v1027_v49 = vsub.f32 0.0, %v1026_v41 }
 0xe2f   :  { %1406 = vpow2.f32 %v960_v44 }
 0xe30   :  { %v1028_v51 = vmul.f32 1.442695, %v1027_v49 }
 0xe34   :  { %v1405_v42 = vpop.eup %1404 }
 0xe35   :  { %1049 = vrot.lane.b32.xlu0 %v1405_v42, %s1492_s8  ;;  %v1407_v45 = vpop.eup %1406 }
 0xe36   :  { %v962_v46 = vadd.f32 1.0, %v1407_v45 }
 0xe38   :  { %1408 = vrcp.f32 %v962_v46  ;;  %v974_v54 = vand.u32 2147483648, %v962_v46  ;;  %vm968_vm9 = vweird.f32 %v962_v46  ;;  %v972_v57 = vand.u32 2147483647, %v962_v46 }
 0xe39   :  { %1410 = vpow2.f32 %v1028_v51 }
 0xe3a   :  { %v975_v62 = vor.u32 1.1754944e-38, %v974_v54  ;;  %vm973_vm11 = vcmp.eq.f32.partialorder %v972_v57, 8.507059e+37 }
 0xe3e   :  { %v1409_v47 = vpop.eup %1408 }
 0xe3f   :  { %v964_v48 = vmul.f32 %v1409_v47, %v962_v46  ;;  %vm969_vm8 = vweird.f32 %v1409_v47  ;;  %v1411_v58 = vpop.eup %1410 }
 0xe40   :  { %vm970_vm10 = vmor %vm968_vm9, %vm969_vm8  ;;  %v1030_v63 = vadd.f32 1.0, %v1411_v58 }
 0xe41   :  { %v965_v50 = vsub.f32 1.0, %v964_v48 }
 0xe42   :  { %1412 = vrcp.f32 %v1030_v63  ;;  %v1042_v8 = vand.u32 2147483648, %v1030_v63  ;;  %vm1036_vm13 = vweird.f32 %v1030_v63  ;;  %v1040_v61 = vand.u32 2147483647, %v1030_v63 }
 0xe43   :  { %v966_v52 = vmul.f32 %v1409_v47, %v965_v50 }
 0xe44   :  { %v1043_v2 = vor.u32 1.1754944e-38, %v1042_v8  ;;  %vm1041_vm15 = vcmp.eq.f32.partialorder %v1040_v61, 8.507059e+37 }
 0xe45   :  { %v967_v53 = vadd.f32 %v1409_v47, %v966_v52 }
 0xe47   :  { %v971_v59 = vsel %vm970_vm10, %v1409_v47, %v967_v53 }
 0xe48   :  { %v976_v56 = vsel %vm973_vm11, %v975_v62, %v971_v59  ;;  %v1413_v7 = vpop.eup %1412 }
 0xe49   :  { %v1032_v60 = vmul.f32 %v1413_v7, %v1030_v63  ;;  %vm1037_vm12 = vweird.f32 %v1413_v7  ;;  %v979_v11 = vmul.f32 %v976_v56, %v1787_v23 }
 0xe4a   :  { %vm1038_vm14 = vmor %vm1036_vm13, %vm1037_vm12 }
 0xe4b   :  { %v1033_v1 = vsub.f32 1.0, %v1032_v60 }
 0xe4d   :  { %v1034_v3 = vmul.f32 %v1413_v7, %v1033_v1 }
 0xe4f   :  { %v1035_v5 = vadd.f32 %v1413_v7, %v1034_v3 }
 0xe51   :  { %v1039_v10 = vsel %vm1038_vm14, %v1413_v7, %v1035_v5 }
 0xe52   :  { %v1044_v4 = vsel %vm1041_vm15, %v1043_v2, %v1039_v10 }
 0xe53   :  { %v1047_v14 = vmul.f32 %v1044_v4, %v1792_v27 }
 0xe87   :  { %v982_v55 = vpop.permute.xlu2 %981 }
 0xe88   :  { %v984_v0 = vmul.f32 %v982_v55, %v976_v56 }
 0xe8a   :  { %986 = vrot.lane.b32.xlu1 %v984_v0, %s1491_s2 }
 0xea7   :  { %v1050_v6 = vpop.permute.xlu0 %1049 }
 0xea8   :  { %v1052_v9 = vmul.f32 %v1050_v6, %v1044_v4 }
 0xeaa   :  { %1054 = vrot.lane.b32.xlu2 %v1052_v9, %s1491_s2 }
 0xefc   :  { %v987_v12 = vpop.permute.xlu1 %986 }
 0xefd   :  { %v1819_v13 = vadd.f32 %v987_v12, %v979_v11 }
 0xeff   :  { %1414 = vtanh.f32 %v1819_v13 }
 0xf04   :  { %v1055_v15 = vpop.permute.xlu2 %1054 }
 0xf05   :  { %v1415_v16 = vpop.eup %1414  ;;  %v1823_v17 = vadd.f32 %v1055_v15, %v1047_v14 }
 0xf06   :  { %992 = vrot.lane.b32.xlu0 %v1415_v16, %s1492_s8 }
 0xf07   :  { %1416 = vtanh.f32 %v1823_v17 }
 0xf0d   :  { %v1417_v18 = vpop.eup %1416 }
 0xf0e   :  { %1060 = vrot.lane.b32.xlu1 %v1417_v18, %s1492_s8 }
 0xf78   :  { %v993_v19 = vpop.permute.xlu0 %992 }
 0xf79   :  { %v995_v20 = vmul.f32 %v993_v19, %v976_v56 }
 0xf7b   :  { %997 = vrot.lane.b32.xlu2 %v995_v20, %s1491_s2 }
 0xf80   :  { %v1061_v21 = vpop.permute.xlu1 %1060 }
 0xf81   :  { %v1063_v22 = vmul.f32 %v1061_v21, %v1044_v4 }
 0xf83   :  { %1065 = vrot.lane.b32.xlu0 %v1063_v22, %s1491_s2 }
 0xfd5   :  { %v998_v23 = vpop.permute.xlu2 %997 }
 0xfd6   :  { %1290 = vst.msk [vmem:[%s1872_s4 + $0xc] sm:$0x3] %vm91_vm0, %v998_v23  ;;  %1295 = vmatmul.msk.f32.vlgmr.msrb.gmra.mxu2 %vm109_vm1, %v998_v23 }
 0xff5   :  { %v1066_v24 = vpop.permute.xlu0 %1065 }
 0xff6   :  { %1293 = vst.msk [vmem:[%s1873_s5 + $0x2] sm:$0x3] %vm91_vm0, %v1066_v24  ;;  %1297 = vmatmul.msk.f32.vlgmr.msrb.gmra.mxu3 %vm109_vm1, %v1066_v24 }
0x1059   :  { %v1091_v26 = vpop.f32.mrf.mxu2 }
0x105a   :  { %v1094_v27 = vadd.f32 %v1294_v25, %v1091_v26 }
0x105c   :  { %1418 = vtanh.f32 %v1094_v27  ;;  %v1095_v33 = vsub.f32 0.0, %v1094_v27 }
0x105e   :  { %v1096_v34 = vmul.f32 1.442695, %v1095_v33 }
0x1062   :  { %v1419_v28 = vpop.eup %1418 }
0x1063   :  { %1117 = vrot.lane.b32.xlu1 %v1419_v28, %s1492_s8 }
0x1079   :  { %v1158_v30 = vpop.f32.mrf.mxu3 }
0x107a   :  { %v1161_v31 = vadd.f32 %v1158_v30, %v1138_v29 }
0x107c   :  { %1420 = vtanh.f32 %v1161_v31  ;;  %v1162_v35 = vsub.f32 0.0, %v1161_v31 }
0x107d   :  { %1422 = vpow2.f32 %v1096_v34 }
0x107e   :  { %v1163_v36 = vmul.f32 1.442695, %v1162_v35 }
0x1080   :  { %1424 = vpow2.f32 %v1163_v36 }
0x1082   :  { %v1421_v32 = vpop.eup %1420 }
0x1083   :  { %1184 = vrot.lane.b32.xlu2 %v1421_v32, %s1492_s8  ;;  %v1423_v37 = vpop.eup %1422 }
0x1084   :  { %v1098_v38 = vadd.f32 1.0, %v1423_v37 }
0x1086   :  { %1426 = vrcp.f32 %v1098_v38  ;;  %v1425_v39 = vpop.eup %1424  ;;  %v1110_v49 = vand.u32 2147483648, %v1098_v38  ;;  %vm1104_vm2 = vweird.f32 %v1098_v38  ;;  %v1108_v50 = vand.u32 2147483647, %v1098_v38 }
0x1087   :  { %v1165_v40 = vadd.f32 1.0, %v1425_v39 }
0x1088   :  { %v1111_v53 = vor.u32 1.1754944e-38, %v1110_v49  ;;  %vm1109_vm4 = vcmp.eq.f32.partialorder %v1108_v50, 8.507059e+37 }
0x1089   :  { %1428 = vrcp.f32 %v1165_v40  ;;  %v1177_v62 = vand.u32 2147483648, %v1165_v40  ;;  %vm1171_vm6 = vweird.f32 %v1165_v40  ;;  %v1175_v63 = vand.u32 2147483647, %v1165_v40 }
0x108b   :  { %v1178_v56 = vor.u32 1.1754944e-38, %v1177_v62  ;;  %vm1176_vm8 = vcmp.eq.f32.partialorder %v1175_v63, 8.507059e+37 }
0x108c   :  { %v1427_v41 = vpop.eup %1426 }
0x108d   :  { %v1100_v42 = vmul.f32 %v1427_v41, %v1098_v38  ;;  %vm1105_vm1 = vweird.f32 %v1427_v41 }
0x108e   :  { %vm1106_vm3 = vmor %vm1104_vm2, %vm1105_vm1 }
0x108f   :  { %v1101_v43 = vsub.f32 1.0, %v1100_v42  ;;  %v1429_v44 = vpop.eup %1428 }
0x1090   :  { %v1167_v46 = vmul.f32 %v1429_v44, %v1165_v40  ;;  %vm1172_vm5 = vweird.f32 %v1429_v44 }
0x1091   :  { %v1102_v45 = vmul.f32 %v1427_v41, %v1101_v43  ;;  %vm1173_vm7 = vmor %vm1171_vm6, %vm1172_vm5 }
0x1092   :  { %v1168_v48 = vsub.f32 1.0, %v1167_v46 }
0x1093   :  { %v1103_v47 = vadd.f32 %v1427_v41, %v1102_v45 }
0x1094   :  { %v1169_v52 = vmul.f32 %v1429_v44, %v1168_v48 }
0x1095   :  { %v1107_v51 = vsel %vm1106_vm3, %v1427_v41, %v1103_v47 }
0x1096   :  { %v1112_v57 = vsel %vm1109_vm4, %v1111_v53, %v1107_v51  ;;  %v1170_v59 = vadd.f32 %v1429_v44, %v1169_v52 }
0x1097   :  { %v1115_v1 = vmul.f32 %v1112_v57, %v1819_v13 }
0x1098   :  { %v1174_v55 = vsel %vm1173_vm7, %v1429_v44, %v1170_v59 }
0x1099   :  { %v1179_v7 = vsel %vm1176_vm8, %v1178_v56, %v1174_v55 }
0x109a   :  { %v1182_v8 = vmul.f32 %v1179_v7, %v1823_v17 }
0x10d5   :  { %v1118_v54 = vpop.permute.xlu1 %1117 }
0x10d6   :  { %v1120_v58 = vmul.f32 %v1118_v54, %v1112_v57 }
0x10d8   :  { %1122 = vrot.lane.b32.xlu0 %v1120_v58, %s1491_s2 }
0x10dd   :  { %v1185_v0 = vpop.permute.xlu2 %1184 }
0x10de   :  { %v1187_v60 = vmul.f32 %v1185_v0, %v1179_v7 }
0x10e0   :  { %1189 = vrot.lane.b32.xlu1 %v1187_v60, %s1491_s2 }
0x114a   :  { %v1123_v3 = vpop.permute.xlu0 %1122 }
0x114b   :  { %v1125_v5 = vadd.f32 %v1123_v3, %v1115_v1 }
0x114d   :  { %1430 = vtanh.f32 %v1125_v5 }
0x1152   :  { %v1190_v61 = vpop.permute.xlu1 %1189 }
0x1153   :  { %v1431_v10 = vpop.eup %1430  ;;  %v1192_v2 = vadd.f32 %v1190_v61, %v1182_v8 }
0x1154   :  { %1128 = vrot.lane.b32.xlu2 %v1431_v10, %s1492_s8 }
0x1155   :  { %1432 = vtanh.f32 %v1192_v2 }
0x115b   :  { %v1433_v4 = vpop.eup %1432 }
0x115c   :  { %1195 = vrot.lane.b32.xlu0 %v1433_v4, %s1492_s8 }
0x1164   :  { %1206 = vrot.lane.b32.xlu0 %v1125_v5, %s1493_s0 }
0x11ae   :  { %v1129_v6 = vpop.permute.xlu2 %1128 }
0x11af   :  { %v1131_v9 = vmul.f32 %v1129_v6, %v1112_v57 }
0x11b1   :  { %1133 = vrot.lane.b32.xlu1 %v1131_v9, %s1491_s2 }
0x11b9   :  { %1212 = vrot.lane.b32.xlu1 %v1192_v2, %s1493_s0 }
0x11ce   :  { %v1196_v11 = vpop.permute.xlu0 %1195 }
0x11cf   :  { %v1198_v12 = vmul.f32 %v1196_v11, %v1179_v7 }
0x11d1   :  { %1200 = vrot.lane.b32.xlu2 %v1198_v12, %s1491_s2 }
0x11d6   :  { %v1207_v13 = vpop.permute.xlu0 %1206 }
0x11d7   :  { %1209 = vst.msk [vmem:[#allocation3] sm:$0x3] %vm91_vm0, %v1207_v13 }
0x1223   :  { %v1134_v14 = vpop.permute.xlu1 %1133 }
0x1224   :  { %1296 = vst.msk [vmem:[%s1872_s4 + $0xe] sm:$0x3] %vm91_vm0, %v1134_v14 }
0x1225   :  { %1204 = vst.msk [vmem:[#allocation2] sm:$0x3] %vm91_vm0, %v1134_v14 }
0x122b   :  { %v1213_v15 = vpop.permute.xlu1 %1212  ;;  %v1201_v16 = vpop.permute.xlu2 %1200 }
0x122c   :  { %1215 = vst.msk [vmem:[#allocation5] sm:$0x3] %vm91_vm0, %v1213_v15 }
0x122d   :  { %1203 = vst.msk [vmem:[%s1873_s5] sm:$0x3] %vm91_vm0, %v1201_v16 }
0x122e   :  { %1210 = vst.msk [vmem:[#allocation4] sm:$0x3] %vm91_vm0, %v1201_v16 }
0x122f   :  { %1238 = vsyncpa [#allocation7], 1 }
0x1230   :  { %1239 = vsyncpa [#allocation9], 1 }

// kernel: bilstm_forward.7
= control target key start
LH: loop header
LB: loop body
LE: loop exit
PB: predicated region body
PF: predicated region fallthrough
CT: control target
= control target key end

     0   :  { %vm59_vm0 = vcmask 254976   ;;  %v1396_v3 = vmov 0.0   ;;  %vm77_vm1 = vcmask 261120   ;;  %s1398_s12 = smov 64   ;;  %s1792_s2 = inlined_call_operand.vmem [shape: f32[32,128], index: 2, kind: input, shape index: {}]   ;;  %s1793_s3 = inlined_call_operand.vmem [shape: f32[32,128], index: 3, kind: input, shape index: {}]   ;;  %s1794_s0 = inlined_call_operand.vmem [shape: f32[8,2,128], index: 0, kind: input, shape index: {}]   ;;  %s1795_s1 = inlined_call_operand.vmem [shape: f32[8,2,128], index: 1, kind: input, shape index: {}]   ;;  %s1796_s4 = inlined_call_operand.vmem [shape: f32[8,2,32], index: 4, kind: output, shape index: {0}]   ;;  %s1797_s5 = inlined_call_operand.vmem [shape: f32[8,2,32], index: 5, kind: output, shape index: {1}]  }
   0x1   :  { %v1433_v0 = vld [vmem:[%s1792_s2 + $0x18] sm:$0xff]  ;;  %v1443_v2 = vld [vmem:[%s1792_s2 + $0x10] sm:$0xff]  ;;  %60 = vst.msk [vmem:[#allocation2] sm:$0x3] %vm59_vm0, %v1396_v3  ;;  %v1457_v5 = vld [vmem:[%s1792_s2 + $0x8] sm:$0xff] }
   0x2   :  { %v1438_v1 = vld [vmem:[%s1793_s3 + $0x18] sm:$0xff]  ;;  %93 = vmatpush.msra.mxu0 %v1433_v0  ;;  %v1451_v4 = vld [vmem:[%s1793_s3 + $0x10] sm:$0xff]  ;;  %61 = vst.msk [vmem:[#allocation3] sm:$0x3] %vm59_vm0, %v1396_v3  ;;  %v1462_v6 = vld [vmem:[%s1793_s3 + $0x8] sm:$0xff]  ;;  %238 = vmatpush.msra.mxu2 %v1433_v0 }
   0x3   :  { %166 = vmatpush.msra.mxu1 %v1438_v1  ;;  %62 = vst.msk [vmem:[#allocation4] sm:$0x3] %vm59_vm0, %v1396_v3  ;;  %306 = vmatpush.msra.mxu3 %v1438_v1  ;;  %v1473_v7 = vld [vmem:[%s1792_s2] sm:$0xff]  ;;  %s1397_s2 = smov 32   ;;  %v1221_v16 = vld [vmem:[%s1795_s1 + $0xe] sm:$0x3] }
   0x4   :  { %94 = vmatpush.msra.mxu0 %v1443_v2  ;;  %63 = vst.msk [vmem:[#allocation5] sm:$0x3] %vm59_vm0, %v1396_v3  ;;  %v1478_v8 = vld [vmem:[%s1793_s3] sm:$0xff]  ;;  %239 = vmatpush.msra.mxu2 %v1443_v2 }
   0x5   :  { %167 = vmatpush.msra.mxu1 %v1451_v4  ;;  %307 = vmatpush.msra.mxu3 %v1451_v4  ;;  %v76_v13 = vld [vmem:[%s1794_s0] sm:$0x3] }
   0x6   :  { %95 = vmatpush.msra.mxu0 %v1457_v5  ;;  %240 = vmatpush.msra.mxu2 %v1457_v5 }
   0x7   :  { %168 = vmatpush.msra.mxu1 %v1462_v6  ;;  %308 = vmatpush.msra.mxu3 %v1462_v6 }
   0x8   :  { %96 = vmatpush.msra.mxu0 %v1473_v7  ;;  %v72_v9 = vld [vmem:[#allocation2] sm:$0x3]  ;;  %241 = vmatpush.msra.mxu2 %v1473_v7 }
   0x9   :  { %169 = vmatpush.msra.mxu1 %v1478_v8  ;;  %1220 = vmatmul.msk.f32.vlgmr.msra.gmra.mxu0 %vm77_vm1, %v72_v9  ;;  %v73_v10 = vld [vmem:[#allocation3] sm:$0x3] }
   0xa   :  { %v74_v11 = vld [vmem:[#allocation4] sm:$0x3]  ;;  %123 = vrot.lane.b32.xlu1 %v73_v10, %s1397_s2  ;;  %309 = vmatpush.msra.mxu3 %v1478_v8 }
   0xb   :  { %1222 = vmatmul.msk.f32.vlgmr.msra.gmra.mxu1 %vm77_vm1, %v74_v11  ;;  %374 = vmatpush.msrb.mxu0 %v1433_v0  ;;  %v75_v12 = vld [vmem:[#allocation5] sm:$0x3] }
   0xc   :  { %442 = vmatpush.msrb.mxu1 %v1438_v1  ;;  %510 = vmatpush.msrb.mxu2 %v1433_v0 }
   0xd   :  { %375 = vmatpush.msrb.mxu0 %v1443_v2  ;;  %578 = vmatpush.msrb.mxu3 %v1438_v1 }
   0xe   :  { %443 = vmatpush.msrb.mxu1 %v1451_v4  ;;  %511 = vmatpush.msrb.mxu2 %v1443_v2 }
   0xf   :  { %376 = vmatpush.msrb.mxu0 %v1457_v5  ;;  %579 = vmatpush.msrb.mxu3 %v1451_v4 }
  0x10   :  { %444 = vmatpush.msrb.mxu1 %v1462_v6  ;;  %512 = vmatpush.msrb.mxu2 %v1457_v5 }
  0x11   :  { %377 = vmatpush.msrb.mxu0 %v1473_v7  ;;  %580 = vmatpush.msrb.mxu3 %v1462_v6 }
  0x12   :  { %196 = vrot.lane.b32.xlu1 %v75_v12, %s1397_s2  ;;  %445 = vmatpush.msrb.mxu1 %v1478_v8 }
  0x13   :  { %513 = vmatpush.msrb.mxu2 %v1473_v7  ;;  %581 = vmatpush.msrb.mxu3 %v1478_v8 }
  0x14   :  { %646 = vmatpush.msra.mxu0 %v1433_v0  ;;  %714 = vmatpush.msra.mxu1 %v1438_v1 }
  0x16   :  { %647 = vmatpush.msra.mxu0 %v1443_v2  ;;  %715 = vmatpush.msra.mxu1 %v1451_v4 }
  0x18   :  { %648 = vmatpush.msra.mxu0 %v1457_v5  ;;  %716 = vmatpush.msra.mxu1 %v1462_v6 }
  0x1a   :  { %649 = vmatpush.msra.mxu0 %v1473_v7  ;;  %717 = vmatpush.msra.mxu1 %v1478_v8 }
  0x7c   :  { %v124_v53 = vpop.permute.xlu1 %123 }
  0x84   :  { %v197_v57 = vpop.permute.xlu1 %196 }
  0x86   :  { %v98_v14 = vpop.f32.mrf.mxu0 }
  0x87   :  { %v101_v15 = vadd.f32 %v98_v14, %v76_v13  ;;  %v1224_v13 = vld [vmem:[%s1794_s0 + $0x2] sm:$0x3] }
  0x88   :  { %v171_v17 = vpop.f32.mrf.mxu1 }
  0x89   :  { %1268 = vtanh.f32 %v101_v15  ;;  %v174_v18 = vadd.f32 %v1221_v16, %v171_v17  ;;  %v102_v21 = vsub.f32 0.0, %v101_v15  ;;  %v1227_v17 = vld [vmem:[%s1795_s1 + $0xc] sm:$0x3] }
  0x8b   :  { %1270 = vtanh.f32 %v174_v18  ;;  %v103_v22 = vmul.f32 1.442695, %v102_v21  ;;  %v175_v23 = vsub.f32 0.0, %v174_v18 }
  0x8d   :  { %1272 = vpow2.f32 %v103_v22  ;;  %v176_v24 = vmul.f32 1.442695, %v175_v23 }
  0x8f   :  { %v1269_v19 = vpop.eup %1268  ;;  %1274 = vpow2.f32 %v176_v24 }
  0x90   :  { %128 = vrot.lane.b32.xlu0 %v1269_v19, %s1398_s12 }
  0x91   :  { %v1271_v20 = vpop.eup %1270 }
  0x93   :  { %v1273_v25 = vpop.eup %1272 }
  0x94   :  { %v105_v26 = vadd.f32 1.0, %v1273_v25 }
  0x95   :  { %v1275_v27 = vpop.eup %1274 }
  0x96   :  { %1276 = vrcp.f32 %v105_v26  ;;  %v178_v28 = vadd.f32 1.0, %v1275_v27  ;;  %v117_v37 = vand.u32 2147483648, %v105_v26  ;;  %vm111_vm3 = vweird.f32 %v105_v26 }
  0x97   :  { %v115_v38 = vand.u32 2147483647, %v105_v26 }
  0x98   :  { %201 = vrot.lane.b32.xlu0 %v1271_v20, %s1398_s12  ;;  %1278 = vrcp.f32 %v178_v28  ;;  %v118_v41 = vor.u32 1.1754944e-38, %v117_v37  ;;  %vm184_vm6 = vweird.f32 %v178_v28  ;;  %v190_v46 = vand.u32 2147483648, %v178_v28 }
  0x99   :  { %vm116_vm5 = vcmp.eq.f32.partialorder %v115_v38, 8.507059e+37  ;;  %v188_v47 = vand.u32 2147483647, %v178_v28 }
  0x9a   :  { %v191_v49 = vor.u32 1.1754944e-38, %v190_v46 }
  0x9b   :  { %vm189_vm9 = vcmp.eq.f32.partialorder %v188_v47, 8.507059e+37 }
  0x9c   :  { %v1277_v29 = vpop.eup %1276 }
  0x9d   :  { %v107_v30 = vmul.f32 %v1277_v29, %v105_v26  ;;  %vm112_vm2 = vweird.f32 %v1277_v29 }
  0x9e   :  { %v1279_v32 = vpop.eup %1278  ;;  %vm113_vm4 = vmor %vm111_vm3, %vm112_vm2 }
  0x9f   :  { %v108_v31 = vsub.f32 1.0, %v107_v30  ;;  %v180_v34 = vmul.f32 %v1279_v32, %v178_v28  ;;  %vm185_vm7 = vweird.f32 %v1279_v32 }
  0xa0   :  { %vm186_vm8 = vmor %vm184_vm6, %vm185_vm7 }
  0xa1   :  { %v109_v33 = vmul.f32 %v1277_v29, %v108_v31  ;;  %v181_v36 = vsub.f32 1.0, %v180_v34 }
  0xa3   :  { %v110_v35 = vadd.f32 %v1277_v29, %v109_v33  ;;  %v182_v40 = vmul.f32 %v1279_v32, %v181_v36 }
  0xa5   :  { %v114_v39 = vsel %vm113_vm4, %v1277_v29, %v110_v35  ;;  %v183_v44 = vadd.f32 %v1279_v32, %v182_v40 }
  0xa6   :  { %v119_v42 = vsel %vm116_vm5, %v118_v41, %v114_v39 }
  0xa7   :  { %v187_v48 = vsel %vm186_vm8, %v1279_v32, %v183_v44  ;;  %v126_v54 = vmul.f32 %v124_v53, %v119_v42 }
  0xa8   :  { %v192_v50 = vsel %vm189_vm9, %v191_v49, %v187_v48 }
  0xa9   :  { %v199_v58 = vmul.f32 %v197_v57, %v192_v50 }
 0x102   :  { %v129_v43 = vpop.permute.xlu0 %128 }
 0x103   :  { %v131_v45 = vmul.f32 %v129_v43, %v119_v42 }
 0x105   :  { %133 = vrot.lane.b32.xlu2 %v131_v45, %s1397_s2 }
 0x10a   :  { %v202_v51 = vpop.permute.xlu0 %201 }
 0x10b   :  { %v204_v52 = vmul.f32 %v202_v51, %v192_v50 }
 0x10d   :  { %206 = vrot.lane.b32.xlu2 %v204_v52, %s1397_s2 }
 0x15f   :  { %v134_v55 = vpop.permute.xlu2 %133 }
 0x160   :  { %v1528_v56 = vadd.f32 %v134_v55, %v126_v54 }
 0x162   :  { %1280 = vtanh.f32 %v1528_v56 }
 0x167   :  { %v207_v59 = vpop.permute.xlu2 %206 }
 0x168   :  { %v1281_v60 = vpop.eup %1280  ;;  %v1531_v61 = vadd.f32 %v207_v59, %v199_v58 }
 0x169   :  { %139 = vrot.lane.b32.xlu0 %v1281_v60, %s1398_s12 }
 0x16a   :  { %1282 = vtanh.f32 %v1531_v61 }
 0x170   :  { %v1283_v62 = vpop.eup %1282 }
 0x171   :  { %212 = vrot.lane.b32.xlu1 %v1283_v62, %s1398_s12 }
 0x1db   :  { %v140_v63 = vpop.permute.xlu0 %139 }
 0x1dc   :  { %v142_v3 = vmul.f32 %v140_v63, %v119_v42 }
 0x1de   :  { %144 = vrot.lane.b32.xlu2 %v142_v3, %s1397_s2 }
 0x1e3   :  { %v213_v9 = vpop.permute.xlu1 %212 }
 0x1e4   :  { %v215_v10 = vmul.f32 %v213_v9, %v192_v50 }
 0x1e6   :  { %217 = vrot.lane.b32.xlu0 %v215_v10, %s1397_s2 }
 0x238   :  { %v145_v11 = vpop.permute.xlu2 %144 }
 0x239   :  { %148 = vst.msk [vmem:[%s1796_s4] sm:$0x3] %vm59_vm0, %v145_v11  ;;  %1225 = vmatmul.msk.f32.vlgmr.msra.gmra.mxu2 %vm77_vm1, %v145_v11  ;;  %v1230_v11 = vld [vmem:[%s1794_s0 + $0x4] sm:$0x3] }
 0x23a   :  { %782 = vmatpush.msra.mxu2 %v1433_v0 }
 0x23c   :  { %783 = vmatpush.msra.mxu2 %v1443_v2 }
 0x23e   :  { %784 = vmatpush.msra.mxu2 %v1457_v5 }
 0x240   :  { %785 = vmatpush.msra.mxu2 %v1473_v7 }
 0x258   :  { %v218_v12 = vpop.permute.xlu0 %217 }
 0x259   :  { %1223 = vst.msk [vmem:[%s1797_s5 + $0xe] sm:$0x3] %vm59_vm0, %v218_v12  ;;  %1228 = vmatmul.msk.f32.vlgmr.msra.gmra.mxu3 %vm77_vm1, %v218_v12 }
 0x25a   :  { %850 = vmatpush.msra.mxu3 %v1438_v1 }
 0x25c   :  { %851 = vmatpush.msra.mxu3 %v1451_v4 }
 0x25e   :  { %852 = vmatpush.msra.mxu3 %v1462_v6 }
 0x260   :  { %853 = vmatpush.msra.mxu3 %v1478_v8 }
 0x2bc   :  { %v243_v14 = vpop.f32.mrf.mxu2 }
 0x2bd   :  { %v246_v15 = vadd.f32 %v1224_v13, %v243_v14  ;;  %v1233_v14 = vld [vmem:[%s1795_s1 + $0xa] sm:$0x3] }
 0x2bf   :  { %1284 = vtanh.f32 %v246_v15  ;;  %v247_v21 = vsub.f32 0.0, %v246_v15 }
 0x2c1   :  { %v248_v22 = vmul.f32 1.442695, %v247_v21 }
 0x2c5   :  { %v1285_v16 = vpop.eup %1284 }
 0x2c6   :  { %269 = vrot.lane.b32.xlu1 %v1285_v16, %s1398_s12 }
 0x2dc   :  { %v311_v18 = vpop.f32.mrf.mxu3 }
 0x2dd   :  { %v314_v19 = vadd.f32 %v1227_v17, %v311_v18 }
 0x2df   :  { %1286 = vtanh.f32 %v314_v19  ;;  %v315_v23 = vsub.f32 0.0, %v314_v19 }
 0x2e0   :  { %1288 = vpow2.f32 %v248_v22 }
 0x2e1   :  { %v316_v24 = vmul.f32 1.442695, %v315_v23 }
 0x2e3   :  { %1290 = vpow2.f32 %v316_v24 }
 0x2e5   :  { %v1287_v20 = vpop.eup %1286 }
 0x2e6   :  { %337 = vrot.lane.b32.xlu2 %v1287_v20, %s1398_s12  ;;  %v1289_v25 = vpop.eup %1288 }
 0x2e7   :  { %v250_v26 = vadd.f32 1.0, %v1289_v25 }
 0x2e9   :  { %1292 = vrcp.f32 %v250_v26  ;;  %v1291_v27 = vpop.eup %1290  ;;  %v262_v37 = vand.u32 2147483648, %v250_v26  ;;  %vm256_vm11 = vweird.f32 %v250_v26  ;;  %v260_v38 = vand.u32 2147483647, %v250_v26 }
 0x2ea   :  { %v318_v28 = vadd.f32 1.0, %v1291_v27 }
 0x2eb   :  { %v263_v41 = vor.u32 1.1754944e-38, %v262_v37  ;;  %vm261_vm13 = vcmp.eq.f32.partialorder %v260_v38, 8.507059e+37 }
 0x2ec   :  { %1294 = vrcp.f32 %v318_v28  ;;  %v330_v46 = vand.u32 2147483648, %v318_v28  ;;  %vm324_vm15 = vweird.f32 %v318_v28  ;;  %v328_v47 = vand.u32 2147483647, %v318_v28 }
 0x2ee   :  { %v331_v49 = vor.u32 1.1754944e-38, %v330_v46  ;;  %vm329_vm3 = vcmp.eq.f32.partialorder %v328_v47, 8.507059e+37 }
 0x2ef   :  { %v1293_v29 = vpop.eup %1292 }
 0x2f0   :  { %v252_v30 = vmul.f32 %v1293_v29, %v250_v26  ;;  %vm257_vm10 = vweird.f32 %v1293_v29 }
 0x2f1   :  { %vm258_vm12 = vmor %vm256_vm11, %vm257_vm10 }
 0x2f2   :  { %v253_v31 = vsub.f32 1.0, %v252_v30  ;;  %v1295_v32 = vpop.eup %1294 }
 0x2f3   :  { %v320_v34 = vmul.f32 %v1295_v32, %v318_v28  ;;  %vm325_vm14 = vweird.f32 %v1295_v32 }
 0x2f4   :  { %v254_v33 = vmul.f32 %v1293_v29, %v253_v31  ;;  %vm326_vm2 = vmor %vm324_vm15, %vm325_vm14 }
 0x2f5   :  { %v321_v36 = vsub.f32 1.0, %v320_v34 }
 0x2f6   :  { %v255_v35 = vadd.f32 %v1293_v29, %v254_v33 }
 0x2f7   :  { %v322_v40 = vmul.f32 %v1295_v32, %v321_v36 }
 0x2f8   :  { %v259_v39 = vsel %vm258_vm12, %v1293_v29, %v255_v35 }
 0x2f9   :  { %v264_v43 = vsel %vm261_vm13, %v263_v41, %v259_v39  ;;  %v323_v45 = vadd.f32 %v1295_v32, %v322_v40 }
 0x2fa   :  { %v267_v53 = vmul.f32 %v264_v43, %v1528_v56 }
 0x2fb   :  { %v327_v48 = vsel %vm326_vm2, %v1295_v32, %v323_v45 }
 0x2fc   :  { %v332_v51 = vsel %vm329_vm3, %v331_v49, %v327_v48 }
 0x2fd   :  { %v335_v57 = vmul.f32 %v332_v51, %v1531_v61 }
 0x338   :  { %v270_v42 = vpop.permute.xlu1 %269 }
 0x339   :  { %v272_v44 = vmul.f32 %v270_v42, %v264_v43 }
 0x33b   :  { %274 = vrot.lane.b32.xlu0 %v272_v44, %s1397_s2 }
 0x340   :  { %v338_v50 = vpop.permute.xlu2 %337 }
 0x341   :  { %v340_v52 = vmul.f32 %v338_v50, %v332_v51 }
 0x343   :  { %342 = vrot.lane.b32.xlu1 %v340_v52, %s1397_s2 }
 0x3ad   :  { %v275_v54 = vpop.permute.xlu0 %274 }
 0x3ae   :  { %v1567_v55 = vadd.f32 %v275_v54, %v267_v53 }
 0x3b0   :  { %1296 = vtanh.f32 %v1567_v55 }
 0x3b5   :  { %v343_v58 = vpop.permute.xlu1 %342 }
 0x3b6   :  { %v1297_v59 = vpop.eup %1296  ;;  %v1571_v60 = vadd.f32 %v343_v58, %v335_v57 }
 0x3b7   :  { %280 = vrot.lane.b32.xlu2 %v1297_v59, %s1398_s12 }
 0x3b8   :  { %1298 = vtanh.f32 %v1571_v60 }
 0x3be   :  { %v1299_v62 = vpop.eup %1298 }
 0x3bf   :  { %348 = vrot.lane.b32.xlu0 %v1299_v62, %s1398_s12 }
 0x411   :  { %v281_v63 = vpop.permute.xlu2 %280 }
 0x412   :  { %v283_v56 = vmul.f32 %v281_v63, %v264_v43 }
 0x414   :  { %285 = vrot.lane.b32.xlu1 %v283_v56, %s1397_s2 }
 0x431   :  { %v349_v3 = vpop.permute.xlu0 %348 }
 0x432   :  { %v351_v9 = vmul.f32 %v349_v3, %v332_v51 }
 0x434   :  { %353 = vrot.lane.b32.xlu2 %v351_v9, %s1397_s2 }
 0x486   :  { %v286_v61 = vpop.permute.xlu1 %285 }
 0x487   :  { %1226 = vst.msk [vmem:[%s1796_s4 + $0x2] sm:$0x3] %vm59_vm0, %v286_v61  ;;  %1231 = vmatmul.msk.f32.vlgmr.msrb.gmra.mxu0 %vm77_vm1, %v286_v61 }
 0x488   :  { %918 = vmatpush.msrb.mxu0 %v1433_v0 }
 0x48a   :  { %919 = vmatpush.msrb.mxu0 %v1443_v2 }
 0x48c   :  { %920 = vmatpush.msrb.mxu0 %v1457_v5 }
 0x48e   :  { %v354_v10 = vpop.permute.xlu2 %353  ;;  %921 = vmatpush.msrb.mxu0 %v1473_v7 }
 0x48f   :  { %1229 = vst.msk [vmem:[%s1797_s5 + $0xc] sm:$0x3] %vm59_vm0, %v354_v10  ;;  %1234 = vmatmul.msk.f32.vlgmr.msrb.gmra.mxu1 %vm77_vm1, %v354_v10 }
 0x490   :  { %986 = vmatpush.msrb.mxu1 %v1438_v1 }
 0x492   :  { %987 = vmatpush.msrb.mxu1 %v1451_v4 }
 0x494   :  { %988 = vmatpush.msrb.mxu1 %v1462_v6 }
 0x496   :  { %989 = vmatpush.msrb.mxu1 %v1478_v8 }
 0x504   :  { %v379_v12 = vpop.f32.mrf.mxu0 }
 0x505   :  { %v382_v13 = vadd.f32 %v1230_v11, %v379_v12 }
 0x507   :  { %1300 = vtanh.f32 %v382_v13  ;;  %v383_v19 = vsub.f32 0.0, %v382_v13 }
 0x509   :  { %v384_v20 = vmul.f32 1.442695, %v383_v19 }
 0x50c   :  { %v447_v15 = vpop.f32.mrf.mxu1 }
 0x50d   :  { %v1301_v16 = vpop.eup %1300  ;;  %v450_v17 = vadd.f32 %v1233_v14, %v447_v15 }
 0x50e   :  { %405 = vrot.lane.b32.xlu0 %v1301_v16, %s1398_s12 }
 0x50f   :  { %1302 = vtanh.f32 %v450_v17  ;;  %v451_v21 = vsub.f32 0.0, %v450_v17 }
 0x510   :  { %1304 = vpow2.f32 %v384_v20 }
 0x511   :  { %v452_v22 = vmul.f32 1.442695, %v451_v21 }
 0x513   :  { %1306 = vpow2.f32 %v452_v22 }
 0x515   :  { %v1303_v18 = vpop.eup %1302 }
 0x516   :  { %473 = vrot.lane.b32.xlu1 %v1303_v18, %s1398_s12  ;;  %v1305_v23 = vpop.eup %1304 }
 0x517   :  { %v386_v24 = vadd.f32 1.0, %v1305_v23 }
 0x519   :  { %1308 = vrcp.f32 %v386_v24  ;;  %v1307_v25 = vpop.eup %1306  ;;  %v398_v35 = vand.u32 2147483648, %v386_v24  ;;  %vm392_vm5 = vweird.f32 %v386_v24  ;;  %v396_v36 = vand.u32 2147483647, %v386_v24 }
 0x51a   :  { %v454_v26 = vadd.f32 1.0, %v1307_v25 }
 0x51b   :  { %v399_v39 = vor.u32 1.1754944e-38, %v398_v35  ;;  %vm397_vm7 = vcmp.eq.f32.partialorder %v396_v36, 8.507059e+37 }
 0x51c   :  { %1310 = vrcp.f32 %v454_v26  ;;  %v466_v44 = vand.u32 2147483648, %v454_v26  ;;  %vm460_vm9 = vweird.f32 %v454_v26  ;;  %v464_v45 = vand.u32 2147483647, %v454_v26 }
 0x51e   :  { %v467_v47 = vor.u32 1.1754944e-38, %v466_v44  ;;  %vm465_vm11 = vcmp.eq.f32.partialorder %v464_v45, 8.507059e+37 }
 0x51f   :  { %v1309_v27 = vpop.eup %1308 }
 0x520   :  { %v388_v28 = vmul.f32 %v1309_v27, %v386_v24  ;;  %vm393_vm4 = vweird.f32 %v1309_v27 }
 0x521   :  { %vm394_vm6 = vmor %vm392_vm5, %vm393_vm4 }
 0x522   :  { %v389_v29 = vsub.f32 1.0, %v388_v28  ;;  %v1311_v30 = vpop.eup %1310 }
 0x523   :  { %v456_v32 = vmul.f32 %v1311_v30, %v454_v26  ;;  %vm461_vm8 = vweird.f32 %v1311_v30 }
 0x524   :  { %v390_v31 = vmul.f32 %v1309_v27, %v389_v29  ;;  %vm462_vm10 = vmor %vm460_vm9, %vm461_vm8 }
 0x525   :  { %v457_v34 = vsub.f32 1.0, %v456_v32 }
 0x526   :  { %v391_v33 = vadd.f32 %v1309_v27, %v390_v31 }
 0x527   :  { %v458_v38 = vmul.f32 %v1311_v30, %v457_v34 }
 0x528   :  { %v395_v37 = vsel %vm394_vm6, %v1309_v27, %v391_v33 }
 0x529   :  { %v400_v40 = vsel %vm397_vm7, %v399_v39, %v395_v37  ;;  %v459_v43 = vadd.f32 %v1311_v30, %v458_v38 }
 0x52a   :  { %v403_v51 = vmul.f32 %v400_v40, %v1567_v55 }
 0x52b   :  { %v463_v46 = vsel %vm462_vm10, %v1311_v30, %v459_v43 }
 0x52c   :  { %v468_v49 = vsel %vm465_vm11, %v467_v47, %v463_v46 }
 0x52d   :  { %v471_v57 = vmul.f32 %v468_v49, %v1571_v60 }
 0x580   :  { %v406_v41 = vpop.permute.xlu0 %405 }
 0x581   :  { %v408_v42 = vmul.f32 %v406_v41, %v400_v40 }
 0x583   :  { %410 = vrot.lane.b32.xlu2 %v408_v42, %s1397_s2 }
 0x588   :  { %v474_v48 = vpop.permute.xlu1 %473 }
 0x589   :  { %v476_v50 = vmul.f32 %v474_v48, %v468_v49 }
 0x58b   :  { %478 = vrot.lane.b32.xlu0 %v476_v50, %s1397_s2 }
 0x5dd   :  { %v411_v52 = vpop.permute.xlu2 %410 }
 0x5de   :  { %v1607_v53 = vadd.f32 %v411_v52, %v403_v51 }
 0x5e0   :  { %1312 = vtanh.f32 %v1607_v53 }
 0x5e6   :  { %v1313_v54 = vpop.eup %1312 }
 0x5e7   :  { %416 = vrot.lane.b32.xlu1 %v1313_v54, %s1398_s12 }
 0x5fd   :  { %v479_v58 = vpop.permute.xlu0 %478 }
 0x5fe   :  { %v1612_v59 = vadd.f32 %v479_v58, %v471_v57  ;;  %v1242_v57 = vld [vmem:[%s1794_s0 + $0x8] sm:$0x3] }
 0x600   :  { %1314 = vtanh.f32 %v1612_v59 }
 0x606   :  { %v1315_v62 = vpop.eup %1314 }
 0x607   :  { %484 = vrot.lane.b32.xlu2 %v1315_v62, %s1398_s12 }
 0x659   :  { %v417_v63 = vpop.permute.xlu1 %416 }
 0x65a   :  { %v419_v55 = vmul.f32 %v417_v63, %v400_v40  ;;  %v1245_v63 = vld [vmem:[%s1795_s1 + $0x6] sm:$0x3] }
 0x65c   :  { %421 = vrot.lane.b32.xlu0 %v419_v55, %s1397_s2 }
 0x661   :  { %v485_v56 = vpop.permute.xlu2 %484 }
 0x662   :  { %v487_v3 = vmul.f32 %v485_v56, %v468_v49 }
 0x664   :  { %489 = vrot.lane.b32.xlu1 %v487_v3, %s1397_s2 }
 0x6ce   :  { %v422_v9 = vpop.permute.xlu0 %421 }
 0x6cf   :  { %1232 = vst.msk [vmem:[%s1796_s4 + $0x4] sm:$0x3] %vm59_vm0, %v422_v9  ;;  %1237 = vmatmul.msk.f32.vlgmr.msrb.gmra.mxu2 %vm77_vm1, %v422_v9 }
 0x6d0   :  { %1054 = vmatpush.msrb.mxu2 %v1433_v0  ;;  %v1236_v0 = vld [vmem:[%s1794_s0 + $0x6] sm:$0x3] }
 0x6d2   :  { %1055 = vmatpush.msrb.mxu2 %v1443_v2 }
 0x6d4   :  { %1056 = vmatpush.msrb.mxu2 %v1457_v5 }
 0x6d6   :  { %v490_v60 = vpop.permute.xlu1 %489  ;;  %1057 = vmatpush.msrb.mxu2 %v1473_v7  ;;  %v1239_v7 = vld [vmem:[%s1795_s1 + $0x8] sm:$0x3] }
 0x6d7   :  { %1235 = vst.msk [vmem:[%s1797_s5 + $0xa] sm:$0x3] %vm59_vm0, %v490_v60  ;;  %1240 = vmatmul.msk.f32.vlgmr.msrb.gmra.mxu3 %vm77_vm1, %v490_v60 }
 0x6d8   :  { %1121 = vmatpush.msrb.mxu3 %v1438_v1 }
 0x6da   :  { %1122 = vmatpush.msrb.mxu3 %v1451_v4 }
 0x6dc   :  { %1123 = vmatpush.msrb.mxu3 %v1462_v6 }
 0x6de   :  { %1124 = vmatpush.msrb.mxu3 %v1478_v8 }
 0x752   :  { %v515_v2 = vpop.f32.mrf.mxu2 }
 0x753   :  { %v518_v5 = vadd.f32 %v1236_v0, %v515_v2 }
 0x755   :  { %1316 = vtanh.f32 %v518_v5  ;;  %v519_v6 = vsub.f32 0.0, %v518_v5 }
 0x757   :  { %v520_v8 = vmul.f32 1.442695, %v519_v6 }
 0x75a   :  { %v583_v61 = vpop.f32.mrf.mxu3 }
 0x75b   :  { %v1317_v10 = vpop.eup %1316  ;;  %v586_v1 = vadd.f32 %v1239_v7, %v583_v61 }
 0x75c   :  { %541 = vrot.lane.b32.xlu2 %v1317_v10, %s1398_s12 }
 0x75d   :  { %1318 = vtanh.f32 %v586_v1  ;;  %v587_v15 = vsub.f32 0.0, %v586_v1 }
 0x75e   :  { %1320 = vpow2.f32 %v520_v8 }
 0x75f   :  { %v588_v17 = vmul.f32 1.442695, %v587_v15 }
 0x763   :  { %v1319_v4 = vpop.eup %1318 }
 0x764   :  { %609 = vrot.lane.b32.xlu0 %v1319_v4, %s1398_s12  ;;  %v1321_v11 = vpop.eup %1320 }
 0x765   :  { %v522_v12 = vadd.f32 1.0, %v1321_v11 }
 0x767   :  { %1322 = vrcp.f32 %v522_v12  ;;  %v534_v20 = vand.u32 2147483648, %v522_v12  ;;  %vm528_vm13 = vweird.f32 %v522_v12  ;;  %v532_v21 = vand.u32 2147483647, %v522_v12 }
 0x768   :  { %1324 = vpow2.f32 %v588_v17 }
 0x769   :  { %v535_v24 = vor.u32 1.1754944e-38, %v534_v20  ;;  %vm533_vm15 = vcmp.eq.f32.partialorder %v532_v21, 8.507059e+37 }
 0x76d   :  { %v1323_v13 = vpop.eup %1322 }
 0x76e   :  { %v524_v14 = vmul.f32 %v1323_v13, %v522_v12  ;;  %vm529_vm12 = vweird.f32 %v1323_v13  ;;  %v1325_v22 = vpop.eup %1324 }
 0x76f   :  { %vm530_vm14 = vmor %vm528_vm13, %vm529_vm12  ;;  %v590_v25 = vadd.f32 1.0, %v1325_v22 }
 0x770   :  { %v525_v16 = vsub.f32 1.0, %v524_v14 }
 0x771   :  { %1326 = vrcp.f32 %v590_v25  ;;  %v602_v34 = vand.u32 2147483648, %v590_v25  ;;  %vm596_vm3 = vweird.f32 %v590_v25  ;;  %v600_v35 = vand.u32 2147483647, %v590_v25 }
 0x772   :  { %v526_v18 = vmul.f32 %v1323_v13, %v525_v16 }
 0x773   :  { %v603_v37 = vor.u32 1.1754944e-38, %v602_v34  ;;  %vm601_vm5 = vcmp.eq.f32.partialorder %v600_v35, 8.507059e+37 }
 0x774   :  { %v527_v19 = vadd.f32 %v1323_v13, %v526_v18 }
 0x776   :  { %v531_v23 = vsel %vm530_vm14, %v1323_v13, %v527_v19 }
 0x777   :  { %v536_v27 = vsel %vm533_vm15, %v535_v24, %v531_v23  ;;  %v1327_v29 = vpop.eup %1326 }
 0x778   :  { %v592_v30 = vmul.f32 %v1327_v29, %v590_v25  ;;  %vm597_vm2 = vweird.f32 %v1327_v29  ;;  %v539_v41 = vmul.f32 %v536_v27, %v1607_v53 }
 0x779   :  { %vm598_vm4 = vmor %vm596_vm3, %vm597_vm2 }
 0x77a   :  { %v593_v31 = vsub.f32 1.0, %v592_v30 }
 0x77c   :  { %v594_v32 = vmul.f32 %v1327_v29, %v593_v31 }
 0x77e   :  { %v595_v33 = vadd.f32 %v1327_v29, %v594_v32 }
 0x780   :  { %v599_v36 = vsel %vm598_vm4, %v1327_v29, %v595_v33 }
 0x781   :  { %v604_v38 = vsel %vm601_vm5, %v603_v37, %v599_v36 }
 0x782   :  { %v607_v44 = vmul.f32 %v604_v38, %v1612_v59 }
 0x7b6   :  { %v542_v26 = vpop.permute.xlu2 %541 }
 0x7b7   :  { %v544_v28 = vmul.f32 %v542_v26, %v536_v27 }
 0x7b9   :  { %546 = vrot.lane.b32.xlu1 %v544_v28, %s1397_s2 }
 0x7d6   :  { %v610_v39 = vpop.permute.xlu0 %609 }
 0x7d7   :  { %v612_v40 = vmul.f32 %v610_v39, %v604_v38 }
 0x7d9   :  { %614 = vrot.lane.b32.xlu2 %v612_v40, %s1397_s2 }
 0x82b   :  { %v547_v42 = vpop.permute.xlu1 %546 }
 0x82c   :  { %v1647_v43 = vadd.f32 %v547_v42, %v539_v41 }
 0x82e   :  { %1328 = vtanh.f32 %v1647_v43 }
 0x833   :  { %v615_v45 = vpop.permute.xlu2 %614 }
 0x834   :  { %v1329_v46 = vpop.eup %1328  ;;  %v1651_v47 = vadd.f32 %v615_v45, %v607_v44  ;;  %v1248_v45 = vld [vmem:[%s1794_s0 + $0xa] sm:$0x3] }
 0x835   :  { %552 = vrot.lane.b32.xlu0 %v1329_v46, %s1398_s12 }
 0x836   :  { %1330 = vtanh.f32 %v1651_v47 }
 0x83c   :  { %v1331_v48 = vpop.eup %1330 }
 0x83d   :  { %620 = vrot.lane.b32.xlu1 %v1331_v48, %s1398_s12  ;;  %v1251_v48 = vld [vmem:[%s1795_s1 + $0x4] sm:$0x3] }
 0x8a7   :  { %v553_v49 = vpop.permute.xlu0 %552 }
 0x8a8   :  { %v555_v50 = vmul.f32 %v553_v49, %v536_v27 }
 0x8aa   :  { %557 = vrot.lane.b32.xlu2 %v555_v50, %s1397_s2 }
 0x8af   :  { %v621_v51 = vpop.permute.xlu1 %620 }
 0x8b0   :  { %v623_v52 = vmul.f32 %v621_v51, %v604_v38 }
 0x8b2   :  { %625 = vrot.lane.b32.xlu0 %v623_v52, %s1397_s2 }
 0x904   :  { %v558_v53 = vpop.permute.xlu2 %557 }
 0x905   :  { %1238 = vst.msk [vmem:[%s1796_s4 + $0x6] sm:$0x3] %vm59_vm0, %v558_v53  ;;  %1243 = vmatmul.msk.f32.vlgmr.msra.gmra.mxu0 %vm77_vm1, %v558_v53 }
 0x924   :  { %v626_v54 = vpop.permute.xlu0 %625 }
 0x925   :  { %1241 = vst.msk [vmem:[%s1797_s5 + $0x8] sm:$0x3] %vm59_vm0, %v626_v54  ;;  %1246 = vmatmul.msk.f32.vlgmr.msra.gmra.mxu1 %vm77_vm1, %v626_v54 }
 0x982   :  { %v651_v58 = vpop.f32.mrf.mxu0 }
 0x983   :  { %v654_v59 = vadd.f32 %v1242_v57, %v651_v58 }
 0x985   :  { %1332 = vtanh.f32 %v654_v59  ;;  %v655_v9 = vsub.f32 0.0, %v654_v59 }
 0x987   :  { %v656_v60 = vmul.f32 1.442695, %v655_v9 }
 0x98b   :  { %v1333_v62 = vpop.eup %1332 }
 0x98c   :  { %677 = vrot.lane.b32.xlu1 %v1333_v62, %s1398_s12 }
 0x9a2   :  { %v719_v55 = vpop.f32.mrf.mxu1 }
 0x9a3   :  { %v722_v56 = vadd.f32 %v1245_v63, %v719_v55 }
 0x9a5   :  { %1334 = vtanh.f32 %v722_v56  ;;  %v723_v0 = vsub.f32 0.0, %v722_v56 }
 0x9a6   :  { %1336 = vpow2.f32 %v656_v60 }
 0x9a7   :  { %v724_v2 = vmul.f32 1.442695, %v723_v0 }
 0x9a9   :  { %1338 = vpow2.f32 %v724_v2 }
 0x9ab   :  { %v1335_v3 = vpop.eup %1334 }
 0x9ac   :  { %745 = vrot.lane.b32.xlu2 %v1335_v3, %s1398_s12  ;;  %v1337_v5 = vpop.eup %1336 }
 0x9ad   :  { %v658_v7 = vadd.f32 1.0, %v1337_v5 }
 0x9af   :  { %1340 = vrcp.f32 %v658_v7  ;;  %v1339_v61 = vpop.eup %1338  ;;  %v670_v15 = vand.u32 2147483648, %v658_v7  ;;  %vm664_vm7 = vweird.f32 %v658_v7  ;;  %v668_v16 = vand.u32 2147483647, %v658_v7 }
 0x9b0   :  { %v726_v10 = vadd.f32 1.0, %v1339_v61 }
 0x9b1   :  { %v671_v19 = vor.u32 1.1754944e-38, %v670_v15  ;;  %vm669_vm9 = vcmp.eq.f32.partialorder %v668_v16, 8.507059e+37 }
 0x9b2   :  { %1342 = vrcp.f32 %v726_v10  ;;  %v738_v24 = vand.u32 2147483648, %v726_v10  ;;  %vm732_vm11 = vweird.f32 %v726_v10  ;;  %v736_v25 = vand.u32 2147483647, %v726_v10 }
 0x9b4   :  { %v739_v27 = vor.u32 1.1754944e-38, %v738_v24  ;;  %vm737_vm13 = vcmp.eq.f32.partialorder %v736_v25, 8.507059e+37 }
 0x9b5   :  { %v1341_v1 = vpop.eup %1340 }
 0x9b6   :  { %v660_v4 = vmul.f32 %v1341_v1, %v658_v7  ;;  %vm665_vm6 = vweird.f32 %v1341_v1 }
 0x9b7   :  { %vm666_vm8 = vmor %vm664_vm7, %vm665_vm6 }
 0x9b8   :  { %v661_v6 = vsub.f32 1.0, %v660_v4  ;;  %v1343_v8 = vpop.eup %1342 }
 0x9b9   :  { %v728_v12 = vmul.f32 %v1343_v8, %v726_v10  ;;  %vm733_vm10 = vweird.f32 %v1343_v8 }
 0x9ba   :  { %v662_v11 = vmul.f32 %v1341_v1, %v661_v6  ;;  %vm734_vm12 = vmor %vm732_vm11, %vm733_vm10 }
 0x9bb   :  { %v729_v14 = vsub.f32 1.0, %v728_v12 }
 0x9bc   :  { %v663_v13 = vadd.f32 %v1341_v1, %v662_v11 }
 0x9bd   :  { %v730_v18 = vmul.f32 %v1343_v8, %v729_v14 }
 0x9be   :  { %v667_v17 = vsel %vm666_vm8, %v1341_v1, %v663_v13 }
 0x9bf   :  { %v672_v21 = vsel %vm669_vm9, %v671_v19, %v667_v17  ;;  %v731_v23 = vadd.f32 %v1343_v8, %v730_v18 }
 0x9c0   :  { %v675_v31 = vmul.f32 %v672_v21, %v1647_v43 }
 0x9c1   :  { %v735_v26 = vsel %vm734_vm12, %v1343_v8, %v731_v23 }
 0x9c2   :  { %v740_v29 = vsel %vm737_vm13, %v739_v27, %v735_v26 }
 0x9c3   :  { %v743_v34 = vmul.f32 %v740_v29, %v1651_v47 }
 0x9fe   :  { %v678_v20 = vpop.permute.xlu1 %677 }
 0x9ff   :  { %v680_v22 = vmul.f32 %v678_v20, %v672_v21 }
 0xa01   :  { %682 = vrot.lane.b32.xlu0 %v680_v22, %s1397_s2 }
 0xa06   :  { %v746_v28 = vpop.permute.xlu2 %745 }
 0xa07   :  { %v748_v30 = vmul.f32 %v746_v28, %v740_v29 }
 0xa09   :  { %750 = vrot.lane.b32.xlu1 %v748_v30, %s1397_s2 }
 0xa73   :  { %v683_v32 = vpop.permute.xlu0 %682 }
 0xa74   :  { %v1679_v33 = vadd.f32 %v683_v32, %v675_v31 }
 0xa76   :  { %1344 = vtanh.f32 %v1679_v33 }
 0xa7b   :  { %v751_v35 = vpop.permute.xlu1 %750 }
 0xa7c   :  { %v1345_v36 = vpop.eup %1344  ;;  %v1683_v37 = vadd.f32 %v751_v35, %v743_v34  ;;  %v1254_v35 = vld [vmem:[%s1794_s0 + $0xc] sm:$0x3] }
 0xa7d   :  { %688 = vrot.lane.b32.xlu2 %v1345_v36, %s1398_s12 }
 0xa7e   :  { %1346 = vtanh.f32 %v1683_v37 }
 0xa84   :  { %v1347_v38 = vpop.eup %1346 }
 0xa85   :  { %756 = vrot.lane.b32.xlu0 %v1347_v38, %s1398_s12  ;;  %v1257_v38 = vld [vmem:[%s1795_s1 + $0x2] sm:$0x3] }
 0xad7   :  { %v689_v39 = vpop.permute.xlu2 %688 }
 0xad8   :  { %v691_v40 = vmul.f32 %v689_v39, %v672_v21 }
 0xada   :  { %693 = vrot.lane.b32.xlu1 %v691_v40, %s1397_s2 }
 0xaf7   :  { %v757_v41 = vpop.permute.xlu0 %756 }
 0xaf8   :  { %v759_v42 = vmul.f32 %v757_v41, %v740_v29 }
 0xafa   :  { %761 = vrot.lane.b32.xlu2 %v759_v42, %s1397_s2 }
 0xb4c   :  { %v694_v43 = vpop.permute.xlu1 %693 }
 0xb4d   :  { %1244 = vst.msk [vmem:[%s1796_s4 + $0x8] sm:$0x3] %vm59_vm0, %v694_v43  ;;  %1249 = vmatmul.msk.f32.vlgmr.msra.gmra.mxu2 %vm77_vm1, %v694_v43 }
 0xb54   :  { %v762_v44 = vpop.permute.xlu2 %761 }
 0xb55   :  { %1247 = vst.msk [vmem:[%s1797_s5 + $0x6] sm:$0x3] %vm59_vm0, %v762_v44  ;;  %1252 = vmatmul.msk.f32.vlgmr.msra.gmra.mxu3 %vm77_vm1, %v762_v44 }
 0xbd0   :  { %v787_v46 = vpop.f32.mrf.mxu2 }
 0xbd1   :  { %v790_v47 = vadd.f32 %v1248_v45, %v787_v46 }
 0xbd3   :  { %1348 = vtanh.f32 %v790_v47  ;;  %v791_v53 = vsub.f32 0.0, %v790_v47 }
 0xbd5   :  { %v792_v54 = vmul.f32 1.442695, %v791_v53 }
 0xbd8   :  { %v855_v49 = vpop.f32.mrf.mxu3 }
 0xbd9   :  { %v1349_v50 = vpop.eup %1348  ;;  %v858_v51 = vadd.f32 %v1251_v48, %v855_v49 }
 0xbda   :  { %813 = vrot.lane.b32.xlu0 %v1349_v50, %s1398_s12 }
 0xbdb   :  { %1350 = vtanh.f32 %v858_v51  ;;  %v859_v57 = vsub.f32 0.0, %v858_v51 }
 0xbdc   :  { %1352 = vpow2.f32 %v792_v54 }
 0xbdd   :  { %v860_v58 = vmul.f32 1.442695, %v859_v57 }
 0xbdf   :  { %1354 = vpow2.f32 %v860_v58 }
 0xbe1   :  { %v1351_v52 = vpop.eup %1350 }
 0xbe2   :  { %881 = vrot.lane.b32.xlu1 %v1351_v52, %s1398_s12  ;;  %v1353_v59 = vpop.eup %1352 }
 0xbe3   :  { %v794_v62 = vadd.f32 1.0, %v1353_v59 }
 0xbe5   :  { %1356 = vrcp.f32 %v794_v62  ;;  %v1355_v63 = vpop.eup %1354  ;;  %v806_v61 = vand.u32 2147483648, %v794_v62  ;;  %vm800_vm15 = vweird.f32 %v794_v62  ;;  %v804_v10 = vand.u32 2147483647, %v794_v62 }
 0xbe6   :  { %v862_v55 = vadd.f32 1.0, %v1355_v63 }
 0xbe7   :  { %v807_v6 = vor.u32 1.1754944e-38, %v806_v61  ;;  %vm805_vm3 = vcmp.eq.f32.partialorder %v804_v10, 8.507059e+37 }
 0xbe8   :  { %1358 = vrcp.f32 %v862_v55  ;;  %v874_v14 = vand.u32 2147483648, %v862_v55  ;;  %vm868_vm5 = vweird.f32 %v862_v55  ;;  %v872_v15 = vand.u32 2147483647, %v862_v55 }
 0xbea   :  { %v875_v17 = vor.u32 1.1754944e-38, %v874_v14  ;;  %vm873_vm7 = vcmp.eq.f32.partialorder %v872_v15, 8.507059e+37 }
 0xbeb   :  { %v1357_v56 = vpop.eup %1356 }
 0xbec   :  { %v796_v3 = vmul.f32 %v1357_v56, %v794_v62  ;;  %vm801_vm14 = vweird.f32 %v1357_v56 }
 0xbed   :  { %vm802_vm2 = vmor %vm800_vm15, %vm801_vm14 }
 0xbee   :  { %v797_v9 = vsub.f32 1.0, %v796_v3  ;;  %v1359_v60 = vpop.eup %1358 }
 0xbef   :  { %v864_v2 = vmul.f32 %v1359_v60, %v862_v55  ;;  %vm869_vm4 = vweird.f32 %v1359_v60 }
 0xbf0   :  { %v798_v0 = vmul.f32 %v1357_v56, %v797_v9  ;;  %vm870_vm6 = vmor %vm868_vm5, %vm869_vm4 }
 0xbf1   :  { %v865_v7 = vsub.f32 1.0, %v864_v2 }
 0xbf2   :  { %v799_v5 = vadd.f32 %v1357_v56, %v798_v0 }
 0xbf3   :  { %v866_v4 = vmul.f32 %v1359_v60, %v865_v7 }
 0xbf4   :  { %v803_v1 = vsel %vm802_vm2, %v1357_v56, %v799_v5 }
 0xbf5   :  { %v808_v8 = vsel %vm805_vm3, %v807_v6, %v803_v1  ;;  %v867_v13 = vadd.f32 %v1359_v60, %v866_v4 }
 0xbf6   :  { %v811_v21 = vmul.f32 %v808_v8, %v1679_v33 }
 0xbf7   :  { %v871_v16 = vsel %vm870_vm6, %v1359_v60, %v867_v13 }
 0xbf8   :  { %v876_v19 = vsel %vm873_vm7, %v875_v17, %v871_v16 }
 0xbf9   :  { %v879_v25 = vmul.f32 %v876_v19, %v1683_v37 }
 0xc4c   :  { %v814_v11 = vpop.permute.xlu0 %813 }
 0xc4d   :  { %v816_v12 = vmul.f32 %v814_v11, %v808_v8 }
 0xc4f   :  { %818 = vrot.lane.b32.xlu2 %v816_v12, %s1397_s2 }
 0xc54   :  { %v882_v18 = vpop.permute.xlu1 %881 }
 0xc55   :  { %v884_v20 = vmul.f32 %v882_v18, %v876_v19 }
 0xc57   :  { %886 = vrot.lane.b32.xlu0 %v884_v20, %s1397_s2 }
 0xca9   :  { %v819_v22 = vpop.permute.xlu2 %818 }
 0xcaa   :  { %v1711_v23 = vadd.f32 %v819_v22, %v811_v21 }
 0xcac   :  { %1360 = vtanh.f32 %v1711_v23 }
 0xcb2   :  { %v1361_v24 = vpop.eup %1360 }
 0xcb3   :  { %824 = vrot.lane.b32.xlu1 %v1361_v24, %s1398_s12 }
 0xcc9   :  { %v887_v26 = vpop.permute.xlu0 %886 }
 0xcca   :  { %v1716_v27 = vadd.f32 %v887_v26, %v879_v25  ;;  %v1260_v25 = vld [vmem:[%s1794_s0 + $0xe] sm:$0x3]  ;;  %s1399_s0 = smov 96  }
 0xccc   :  { %1362 = vtanh.f32 %v1716_v27 }
 0xcd2   :  { %v1363_v28 = vpop.eup %1362 }
 0xcd3   :  { %892 = vrot.lane.b32.xlu2 %v1363_v28, %s1398_s12 }
 0xd25   :  { %v825_v29 = vpop.permute.xlu1 %824 }
 0xd26   :  { %v827_v30 = vmul.f32 %v825_v29, %v808_v8  ;;  %v1106_v29 = vld [vmem:[%s1795_s1] sm:$0x3] }
 0xd28   :  { %829 = vrot.lane.b32.xlu0 %v827_v30, %s1397_s2 }
 0xd2d   :  { %v893_v31 = vpop.permute.xlu2 %892 }
 0xd2e   :  { %v895_v32 = vmul.f32 %v893_v31, %v876_v19 }
 0xd30   :  { %897 = vrot.lane.b32.xlu1 %v895_v32, %s1397_s2 }
 0xd9a   :  { %v830_v33 = vpop.permute.xlu0 %829 }
 0xd9b   :  { %1250 = vst.msk [vmem:[%s1796_s4 + $0xa] sm:$0x3] %vm59_vm0, %v830_v33  ;;  %1255 = vmatmul.msk.f32.vlgmr.msrb.gmra.mxu0 %vm77_vm1, %v830_v33 }
 0xda2   :  { %v898_v34 = vpop.permute.xlu1 %897 }
 0xda3   :  { %1253 = vst.msk [vmem:[%s1797_s5 + $0x4] sm:$0x3] %vm59_vm0, %v898_v34  ;;  %1258 = vmatmul.msk.f32.vlgmr.msrb.gmra.mxu1 %vm77_vm1, %v898_v34 }
 0xe18   :  { %v923_v36 = vpop.f32.mrf.mxu0 }
 0xe19   :  { %v926_v37 = vadd.f32 %v1254_v35, %v923_v36 }
 0xe1b   :  { %1364 = vtanh.f32 %v926_v37  ;;  %v927_v43 = vsub.f32 0.0, %v926_v37 }
 0xe1d   :  { %v928_v44 = vmul.f32 1.442695, %v927_v43 }
 0xe20   :  { %v991_v39 = vpop.f32.mrf.mxu1 }
 0xe21   :  { %v1365_v40 = vpop.eup %1364  ;;  %v994_v41 = vadd.f32 %v1257_v38, %v991_v39 }
 0xe22   :  { %949 = vrot.lane.b32.xlu2 %v1365_v40, %s1398_s12 }
 0xe23   :  { %1366 = vtanh.f32 %v994_v41  ;;  %v995_v49 = vsub.f32 0.0, %v994_v41 }
 0xe24   :  { %1368 = vpow2.f32 %v928_v44 }
 0xe25   :  { %v996_v51 = vmul.f32 1.442695, %v995_v49 }
 0xe29   :  { %v1367_v42 = vpop.eup %1366 }
 0xe2a   :  { %1017 = vrot.lane.b32.xlu0 %v1367_v42, %s1398_s12  ;;  %v1369_v45 = vpop.eup %1368 }
 0xe2b   :  { %v930_v46 = vadd.f32 1.0, %v1369_v45 }
 0xe2d   :  { %1370 = vrcp.f32 %v930_v46  ;;  %v942_v54 = vand.u32 2147483648, %v930_v46  ;;  %vm936_vm9 = vweird.f32 %v930_v46  ;;  %v940_v57 = vand.u32 2147483647, %v930_v46 }
 0xe2e   :  { %1372 = vpow2.f32 %v996_v51 }
 0xe2f   :  { %v943_v62 = vor.u32 1.1754944e-38, %v942_v54  ;;  %vm941_vm11 = vcmp.eq.f32.partialorder %v940_v57, 8.507059e+37 }
 0xe33   :  { %v1371_v47 = vpop.eup %1370 }
 0xe34   :  { %v932_v48 = vmul.f32 %v1371_v47, %v930_v46  ;;  %vm937_vm8 = vweird.f32 %v1371_v47  ;;  %v1373_v58 = vpop.eup %1372 }
 0xe35   :  { %vm938_vm10 = vmor %vm936_vm9, %vm937_vm8  ;;  %v998_v63 = vadd.f32 1.0, %v1373_v58 }
 0xe36   :  { %v933_v50 = vsub.f32 1.0, %v932_v48 }
 0xe37   :  { %1374 = vrcp.f32 %v998_v63  ;;  %v1010_v7 = vand.u32 2147483648, %v998_v63  ;;  %vm1004_vm13 = vweird.f32 %v998_v63  ;;  %v1008_v61 = vand.u32 2147483647, %v998_v63 }
 0xe38   :  { %v934_v52 = vmul.f32 %v1371_v47, %v933_v50 }
 0xe39   :  { %v1011_v1 = vor.u32 1.1754944e-38, %v1010_v7  ;;  %vm1009_vm15 = vcmp.eq.f32.partialorder %v1008_v61, 8.507059e+37 }
 0xe3a   :  { %v935_v53 = vadd.f32 %v1371_v47, %v934_v52 }
 0xe3c   :  { %v939_v59 = vsel %vm938_vm10, %v1371_v47, %v935_v53 }
 0xe3d   :  { %v944_v56 = vsel %vm941_vm11, %v943_v62, %v939_v59  ;;  %v1375_v9 = vpop.eup %1374 }
 0xe3e   :  { %v1000_v60 = vmul.f32 %v1375_v9, %v998_v63  ;;  %vm1005_vm12 = vweird.f32 %v1375_v9  ;;  %v947_v11 = vmul.f32 %v944_v56, %v1711_v23 }
 0xe3f   :  { %vm1006_vm14 = vmor %vm1004_vm13, %vm1005_vm12 }
 0xe40   :  { %v1001_v0 = vsub.f32 1.0, %v1000_v60 }
 0xe42   :  { %v1002_v2 = vmul.f32 %v1375_v9, %v1001_v0 }
 0xe44   :  { %v1003_v5 = vadd.f32 %v1375_v9, %v1002_v2 }
 0xe46   :  { %v1007_v10 = vsel %vm1006_vm14, %v1375_v9, %v1003_v5 }
 0xe47   :  { %v1012_v4 = vsel %vm1009_vm15, %v1011_v1, %v1007_v10 }
 0xe48   :  { %v1015_v14 = vmul.f32 %v1012_v4, %v1716_v27 }
 0xe7c   :  { %v950_v55 = vpop.permute.xlu2 %949 }
 0xe7d   :  { %v952_v3 = vmul.f32 %v950_v55, %v944_v56 }
 0xe7f   :  { %954 = vrot.lane.b32.xlu1 %v952_v3, %s1397_s2 }
 0xe9c   :  { %v1018_v6 = vpop.permute.xlu0 %1017 }
 0xe9d   :  { %v1020_v8 = vmul.f32 %v1018_v6, %v1012_v4 }
 0xe9f   :  { %1022 = vrot.lane.b32.xlu2 %v1020_v8, %s1397_s2 }
 0xef1   :  { %v955_v12 = vpop.permute.xlu1 %954 }
 0xef2   :  { %v1743_v13 = vadd.f32 %v955_v12, %v947_v11 }
 0xef4   :  { %1376 = vtanh.f32 %v1743_v13 }
 0xef9   :  { %v1023_v15 = vpop.permute.xlu2 %1022 }
 0xefa   :  { %v1377_v16 = vpop.eup %1376  ;;  %v1747_v17 = vadd.f32 %v1023_v15, %v1015_v14 }
 0xefb   :  { %960 = vrot.lane.b32.xlu0 %v1377_v16, %s1398_s12 }
 0xefc   :  { %1378 = vtanh.f32 %v1747_v17 }
 0xf02   :  { %v1379_v18 = vpop.eup %1378 }
 0xf03   :  { %1028 = vrot.lane.b32.xlu1 %v1379_v18, %s1398_s12 }
 0xf6d   :  { %v961_v19 = vpop.permute.xlu0 %960 }
 0xf6e   :  { %v963_v20 = vmul.f32 %v961_v19, %v944_v56 }
 0xf70   :  { %965 = vrot.lane.b32.xlu2 %v963_v20, %s1397_s2 }
 0xf75   :  { %v1029_v21 = vpop.permute.xlu1 %1028 }
 0xf76   :  { %v1031_v22 = vmul.f32 %v1029_v21, %v1012_v4 }
 0xf78   :  { %1033 = vrot.lane.b32.xlu0 %v1031_v22, %s1397_s2 }
 0xfca   :  { %v966_v23 = vpop.permute.xlu2 %965 }
 0xfcb   :  { %1256 = vst.msk [vmem:[%s1796_s4 + $0xc] sm:$0x3] %vm59_vm0, %v966_v23  ;;  %1261 = vmatmul.msk.f32.vlgmr.msrb.gmra.mxu2 %vm77_vm1, %v966_v23 }
 0xfea   :  { %v1034_v24 = vpop.permute.xlu0 %1033 }
 0xfeb   :  { %1259 = vst.msk [vmem:[%s1797_s5 + $0x2] sm:$0x3] %vm59_vm0, %v1034_v24  ;;  %1263 = vmatmul.msk.f32.vlgmr.msrb.gmra.mxu3 %vm77_vm1, %v1034_v24 }
0x104e   :  { %v1059_v26 = vpop.f32.mrf.mxu2 }
0x104f   :  { %v1062_v27 = vadd.f32 %v1260_v25, %v1059_v26 }
0x1051   :  { %1380 = vtanh.f32 %v1062_v27  ;;  %v1063_v33 = vsub.f32 0.0, %v1062_v27 }
0x1053   :  { %v1064_v34 = vmul.f32 1.442695, %v1063_v33 }
0x1057   :  { %v1381_v28 = vpop.eup %1380 }
0x1058   :  { %1085 = vrot.lane.b32.xlu1 %v1381_v28, %s1398_s12 }
0x106e   :  { %v1126_v30 = vpop.f32.mrf.mxu3 }
0x106f   :  { %v1129_v31 = vadd.f32 %v1126_v30, %v1106_v29 }
0x1071   :  { %1382 = vtanh.f32 %v1129_v31  ;;  %v1130_v35 = vsub.f32 0.0, %v1129_v31 }
0x1072   :  { %1384 = vpow2.f32 %v1064_v34 }
0x1073   :  { %v1131_v36 = vmul.f32 1.442695, %v1130_v35 }
0x1075   :  { %1386 = vpow2.f32 %v1131_v36 }
0x1077   :  { %v1383_v32 = vpop.eup %1382 }
0x1078   :  { %1152 = vrot.lane.b32.xlu2 %v1383_v32, %s1398_s12  ;;  %v1385_v37 = vpop.eup %1384 }
0x1079   :  { %v1066_v38 = vadd.f32 1.0, %v1385_v37 }
0x107b   :  { %1388 = vrcp.f32 %v1066_v38  ;;  %v1387_v39 = vpop.eup %1386  ;;  %v1078_v49 = vand.u32 2147483648, %v1066_v38  ;;  %vm1072_vm2 = vweird.f32 %v1066_v38  ;;  %v1076_v50 = vand.u32 2147483647, %v1066_v38 }
0x107c   :  { %v1133_v40 = vadd.f32 1.0, %v1387_v39 }
0x107d   :  { %v1079_v53 = vor.u32 1.1754944e-38, %v1078_v49  ;;  %vm1077_vm4 = vcmp.eq.f32.partialorder %v1076_v50, 8.507059e+37 }
0x107e   :  { %1390 = vrcp.f32 %v1133_v40  ;;  %v1145_v62 = vand.u32 2147483648, %v1133_v40  ;;  %vm1139_vm6 = vweird.f32 %v1133_v40  ;;  %v1143_v63 = vand.u32 2147483647, %v1133_v40 }
0x1080   :  { %v1146_v56 = vor.u32 1.1754944e-38, %v1145_v62  ;;  %vm1144_vm8 = vcmp.eq.f32.partialorder %v1143_v63, 8.507059e+37 }
0x1081   :  { %v1389_v41 = vpop.eup %1388 }
0x1082   :  { %v1068_v42 = vmul.f32 %v1389_v41, %v1066_v38  ;;  %vm1073_vm1 = vweird.f32 %v1389_v41 }
0x1083   :  { %vm1074_vm3 = vmor %vm1072_vm2, %vm1073_vm1 }
0x1084   :  { %v1069_v43 = vsub.f32 1.0, %v1068_v42  ;;  %v1391_v44 = vpop.eup %1390 }
0x1085   :  { %v1135_v46 = vmul.f32 %v1391_v44, %v1133_v40  ;;  %vm1140_vm5 = vweird.f32 %v1391_v44 }
0x1086   :  { %v1070_v45 = vmul.f32 %v1389_v41, %v1069_v43  ;;  %vm1141_vm7 = vmor %vm1139_vm6, %vm1140_vm5 }
0x1087   :  { %v1136_v48 = vsub.f32 1.0, %v1135_v46 }
0x1088   :  { %v1071_v47 = vadd.f32 %v1389_v41, %v1070_v45 }
0x1089   :  { %v1137_v52 = vmul.f32 %v1391_v44, %v1136_v48 }
0x108a   :  { %v1075_v51 = vsel %vm1074_vm3, %v1389_v41, %v1071_v47 }
0x108b   :  { %v1080_v57 = vsel %vm1077_vm4, %v1079_v53, %v1075_v51  ;;  %v1138_v59 = vadd.f32 %v1391_v44, %v1137_v52 }
0x108c   :  { %v1083_v0 = vmul.f32 %v1080_v57, %v1743_v13 }
0x108d   :  { %v1142_v55 = vsel %vm1141_vm7, %v1391_v44, %v1138_v59 }
0x108e   :  { %v1147_v9 = vsel %vm1144_vm8, %v1146_v56, %v1142_v55 }
0x108f   :  { %v1150_v7 = vmul.f32 %v1147_v9, %v1747_v17 }
0x10ca   :  { %v1086_v54 = vpop.permute.xlu1 %1085 }
0x10cb   :  { %v1088_v58 = vmul.f32 %v1086_v54, %v1080_v57 }
0x10cd   :  { %1090 = vrot.lane.b32.xlu0 %v1088_v58, %s1397_s2 }
0x10d2   :  { %v1153_v3 = vpop.permute.xlu2 %1152 }
0x10d3   :  { %v1155_v60 = vmul.f32 %v1153_v3, %v1147_v9 }
0x10d5   :  { %1157 = vrot.lane.b32.xlu1 %v1155_v60, %s1397_s2 }
0x113f   :  { %v1091_v2 = vpop.permute.xlu0 %1090 }
0x1140   :  { %v1093_v5 = vadd.f32 %v1091_v2, %v1083_v0 }
0x1142   :  { %1392 = vtanh.f32 %v1093_v5 }
0x1147   :  { %v1158_v61 = vpop.permute.xlu1 %1157 }
0x1148   :  { %v1393_v10 = vpop.eup %1392  ;;  %v1160_v1 = vadd.f32 %v1158_v61, %v1150_v7 }
0x1149   :  { %1096 = vrot.lane.b32.xlu2 %v1393_v10, %s1398_s12 }
0x114a   :  { %1394 = vtanh.f32 %v1160_v1 }
0x1150   :  { %v1395_v4 = vpop.eup %1394 }
0x1151   :  { %1163 = vrot.lane.b32.xlu0 %v1395_v4, %s1398_s12 }
0x1159   :  { %1174 = vrot.lane.b32.xlu0 %v1093_v5, %s1399_s0 }
0x11a3   :  { %v1097_v6 = vpop.permute.xlu2 %1096 }
0x11a4   :  { %v1099_v8 = vmul.f32 %v1097_v6, %v1080_v57 }
0x11a6   :  { %1101 = vrot.lane.b32.xlu1 %v1099_v8, %s1397_s2 }
0x11ae   :  { %1180 = vrot.lane.b32.xlu1 %v1160_v1, %s1399_s0 }
0x11c3   :  { %v1164_v11 = vpop.permute.xlu0 %1163 }
0x11c4   :  { %v1166_v12 = vmul.f32 %v1164_v11, %v1147_v9 }
0x11c6   :  { %1168 = vrot.lane.b32.xlu2 %v1166_v12, %s1397_s2 }
0x11cb   :  { %v1175_v13 = vpop.permute.xlu0 %1174 }
0x11cc   :  { %1177 = vst.msk [vmem:[#allocation3] sm:$0x3] %vm59_vm0, %v1175_v13 }
0x1218   :  { %v1102_v14 = vpop.permute.xlu1 %1101 }
0x1219   :  { %1262 = vst.msk [vmem:[%s1796_s4 + $0xe] sm:$0x3] %vm59_vm0, %v1102_v14 }
0x121a   :  { %1172 = vst.msk [vmem:[#allocation2] sm:$0x3] %vm59_vm0, %v1102_v14 }
0x1220   :  { %v1181_v15 = vpop.permute.xlu1 %1180  ;;  %v1169_v16 = vpop.permute.xlu2 %1168 }
0x1221   :  { %1183 = vst.msk [vmem:[#allocation5] sm:$0x3] %vm59_vm0, %v1181_v15 }
0x1222   :  { %1171 = vst.msk [vmem:[%s1797_s5] sm:$0x3] %vm59_vm0, %v1169_v16 }
0x1223   :  { %1178 = vst.msk [vmem:[#allocation4] sm:$0x3] %vm59_vm0, %v1169_v16 }

</bundles_post_ra>
